<compile_context>
chip_gen: v7x
topology: tpu7x:2x2x1
jax: 0.10.0
libtpu: 0.0.40
codegen_flags: <defaults>
</compile_context>

<pallas_src>
import math

import jax
import jax.numpy as jnp
from jax.experimental import pallas as pl

# ---- config (consistent with the module's cfg) ----
B = 2             # batch
S_COMP = 8        # compound sequence length (CLS at position 0)
S_PROT = 8        # protein sequence length
S = S_COMP + S_PROT             # 16
BS = B * S                      # 32
D = 32            # cfg['embed_dim']
H = 8             # nhead (fixed by the module)
DH = D // H       # 4
FF = 64           # cfg['enc_FF_dim_full']
LAYERS = 2        # cfg['att_layers_full']
N_CONT = 4        # continuous-feature width for the stand-in sub-models
VOCAB_COMP = 50
VOCAB_PROT = 30
EPS = 1e-5        # PyTorch LayerNorm default
NEG = -1e30       # additive cross-batch mask


def _ln_kernel(x, g, b):
    """Single-pass LayerNorm: var = E[x^2] - mu^2 (both reductions issue together)."""
    inv_n = 1.0 / x.shape[-1]
    s1 = jnp.sum(x, axis=-1, keepdims=True)
    s2 = jnp.sum(x * x, axis=-1, keepdims=True)
    mu = s1 * inv_n
    var = s2 * inv_n - mu * mu
    return (x - mu) * jax.lax.rsqrt(var + EPS) * g + b


# ---------------- fused Pallas kernel ----------------

def dtinn_kernel(comp_ids_ref, prot_ids_ref, comp_cont_ref, prot_cont_ref,
                 comp_emb_ref, comp_wc_ref, prot_emb_ref, prot_wc_ref,
                 kv_mask_ref, kvkv_mask_ref, batch_bias_ref,
                 g1_ref, b1_ref, wqkv_ref, bqkv_ref, wo_ref, bo_ref,
                 g2_ref, b2_ref, w1_ref, bf1_ref, w2_ref, bf2_ref,
                 pg_ref, pb_ref, pw_ref, pbw_ref,
                 o_ref):
    f32 = jnp.float32

    # ---- sub-model prologue: embedding lookup (one-hot matmul) + cont projection ----
    comp_oh = (comp_ids_ref[...] ==
               jax.lax.broadcasted_iota(jnp.int32, (B * S_COMP, VOCAB_COMP), 1)
               ).astype(f32)                                              # (16, 50)
    prot_oh = (prot_ids_ref[...] ==
               jax.lax.broadcasted_iota(jnp.int32, (B * S_PROT, VOCAB_PROT), 1)
               ).astype(f32)                                              # (16, 30)
    x_comp = (jnp.dot(comp_oh, comp_emb_ref[...], preferred_element_type=f32)
              + jnp.dot(comp_cont_ref[...], comp_wc_ref[...], preferred_element_type=f32))
    x_prot = (jnp.dot(prot_oh, prot_emb_ref[...], preferred_element_type=f32)
              + jnp.dot(prot_cont_ref[...], prot_wc_ref[...], preferred_element_type=f32))
    # interleave per batch: [comp_b, prot_b] -> (B*S, D) = (32, 32)
    x = jnp.concatenate(
        [blk for b in range(B)
         for blk in (x_comp[b * S_COMP:(b + 1) * S_COMP, :],
                     x_prot[b * S_PROT:(b + 1) * S_PROT, :])],
        axis=0)

    kv_mask = kv_mask_ref[...]          # (H*B*S, D)   — per-head channel mask (also den weights)
    kvkv_mask = kvkv_mask_ref[...]      # (H*B*S, 2D)  — same mask duplicated for packed K|V
    batch_bias = batch_bias_ref[...]    # (B*S, H*B*S) — 0 same-batch, -1e30 cross-batch
    scale = 1.0 / math.sqrt(DH)
    R = H * BS                          # 256 packed key rows (head-major)

    for l in range(LAYERS):             # static unroll over layers
        # --- self-attention block: x + Wo(MHA(LN1(x))) ---
        xn = _ln_kernel(x, g1_ref[l], b1_ref[l])
        qkv = jnp.dot(xn, wqkv_ref[l], preferred_element_type=f32) + bqkv_ref[l]   # (32, 96)
        q = qkv[:, :D] * scale                                                     # (32, 32)
        kv = qkv[:, D:]                                                            # (32, 64)
        # Pack all heads x batches along sublanes (head-major: r = h*B*S + b*S + t),
        # one shared masked-broadcast path for K and V.
        kvblk = (jnp.broadcast_to(kv, (H, BS, 2 * D)).reshape(R, 2 * D)
                 * kvkv_mask)                                                      # (256, 64)
        kblk = kvblk[:, :D]
        vblk = kvblk[:, D:]
        # One score matmul for all batches & heads; mask cross-batch BEFORE max/exp.
        s = jax.lax.dot_general(q, kblk, (((1,), (1,)), ((), ())),
                                preferred_element_type=f32) + batch_bias           # (32, 256)
        s = s - jnp.max(s, axis=-1, keepdims=True)
        p = jnp.exp(s)
        num = jnp.dot(p, vblk, preferred_element_type=f32)                         # (32, 32)
        den = jnp.dot(p, kv_mask, preferred_element_type=f32)                      # per-head sums
        # Guard: global-row-max shift could underflow an entire head with trained weights.
        den = jnp.maximum(den, 1e-20)
        attn = num * pl.reciprocal(den, approx=False)                              # exact (EUP idle)
        x = x + jnp.dot(attn, wo_ref[l], preferred_element_type=f32) + bo_ref[l]

        # --- feed-forward block: x + W2(relu(W1(LN2(x)))) ---
        xn2 = _ln_kernel(x, g2_ref[l], b2_ref[l])
        hid = jnp.maximum(
            jnp.dot(xn2, w1_ref[l], preferred_element_type=f32) + bf1_ref[l], 0.0)
        x = x + jnp.dot(hid, w2_ref[l], preferred_element_type=f32) + bf2_ref[l]

    # --- prediction head on CLS rows: LayerNorm -> ReLU -> Linear(D, 1) ---
    x_cls = jnp.concatenate([x[b * S:b * S + 1, :] for b in range(B)], axis=0)     # (B, D)
    xr = jnp.maximum(_ln_kernel(x_cls, pg_ref[...], pb_ref[...]), 0.0)
    o_ref[...] = jnp.sum(xr * pw_ref[...], axis=-1, keepdims=True) + pbw_ref[...]


def _full_spec(shape):
    zeros = (0,) * len(shape)
    return pl.BlockSpec(shape, lambda *_: zeros)    # gridless call -> index_map gets no args


def _forward_impl(params, comp_x_cat, comp_x_cont, prot_x_cat, prot_x_cont):
    comp_ids = comp_x_cat.astype(jnp.int32).reshape(B * S_COMP, 1)
    prot_ids = prot_x_cat.astype(jnp.int32).reshape(B * S_PROT, 1)
    comp_cont = comp_x_cont.reshape(B * S_COMP, N_CONT)
    prot_cont = prot_x_cont.reshape(B * S_PROT, N_CONT)
    args = (comp_ids, prot_ids, comp_cont, prot_cont) + tuple(params)
    return pl.pallas_call(
        dtinn_kernel,
        out_shape=jax.ShapeDtypeStruct((B, 1), jnp.float32),
        in_specs=[_full_spec(a.shape) for a in args],
        out_specs=_full_spec((B, 1)),
    )(*args)


# Single jit over the whole forward: one dispatch, all glue fused.
attention_dtinn_forward = jax.jit(_forward_impl)


# ---------------- deterministic parameter init ----------------

def _kaiming_uniform(key, shape_out_in):
    fan_in = shape_out_in[-1]
    bound = math.sqrt(6.0 / fan_in)
    return jax.random.uniform(key, shape_out_in, jnp.float32, -bound, bound)


def init_params(key):
    ks = jax.random.split(key, 16)

    # TODO(synk): model_comp / model_prot are external submodules not defined in the
    # reference; stood in with a deterministic embedding table + continuous projection.
    comp_emb = 0.02 * jax.random.normal(ks[0], (VOCAB_COMP, D), jnp.float32)
    comp_wc = 0.02 * jax.random.normal(ks[1], (N_CONT, D), jnp.float32)
    prot_emb = 0.02 * jax.random.normal(ks[2], (VOCAB_PROT, D), jnp.float32)
    prot_wc = 0.02 * jax.random.normal(ks[3], (N_CONT, D), jnp.float32)

    # ---- precomputed packing masks (host constants -> VMEM inputs) ----
    R = H * BS
    row = jnp.arange(R)
    head_of_row = row // BS                 # head-major packing: r = h*B*S + b*S + t
    batch_of_row = (row // S) % B
    col_head = jnp.arange(D) // DH
    kv_mask = (head_of_row[:, None] == col_head[None, :]).astype(jnp.float32)   # (R, D)
    kvkv_mask = jnp.concatenate([kv_mask, kv_mask], axis=1)                     # (R, 2D)
    q_batch = jnp.arange(BS) // S
    batch_bias = jnp.where(q_batch[:, None] == batch_of_row[None, :],
                           0.0, NEG).astype(jnp.float32)                        # (BS, R)

    # ---- encoder layers: per-layer params stacked on a leading LAYERS axis ----
    def lin_w(k, out_dim, in_dim):
        w = _kaiming_uniform(k, (LAYERS, out_dim, in_dim))   # PyTorch stores (out, in)
        return jnp.transpose(w, (0, 2, 1))                   # -> (L, in, out)

    def small_b(k, dim):
        return 0.01 * jax.random.normal(k, (LAYERS, 1, dim), jnp.float32)

    g1 = jnp.ones((LAYERS, 1, D), jnp.float32)
    b1 = jnp.zeros((LAYERS, 1, D), jnp.float32)
    wqkv = lin_w(ks[4], 3 * D, D)         # fused Q|K|V projection: (L, D, 3D)
    bqkv = small_b(ks[5], 3 * D)
    wo = lin_w(ks[6], D, D)
    bo = small_b(ks[7], D)
    g2 = jnp.ones((LAYERS, 1, D), jnp.float32)
    b2 = jnp.zeros((LAYERS, 1, D), jnp.float32)
    w1 = lin_w(ks[8], FF, D)              # (L, D, FF)
    bf1 = small_b(ks[9], FF)
    w2 = lin_w(ks[10], D, FF)             # (L, FF, D)
    bf2 = small_b(ks[11], D)

    # ---- prediction head ----
    pg = jnp.ones((1, D), jnp.float32)
    pb = jnp.zeros((1, D), jnp.float32)
    pw = _kaiming_uniform(ks[12], (1, D))                    # Linear(D, 1).weight is (1, D)
    pbw = 0.01 * jax.random.normal(ks[13], (1, 1), jnp.float32)

    return (comp_emb, comp_wc, prot_emb, prot_wc, kv_mask, kvkv_mask, batch_bias,
            g1, b1, wqkv, bqkv, wo, bo, g2, b2, w1, bf1, w2, bf2, pg, pb, pw, pbw)


# ---------------- pure-JAX reference ----------------

def attention_dtinn_reference(params, comp_x_cat, comp_x_cont, prot_x_cat, prot_x_cont):
    (comp_emb, comp_wc, prot_emb, prot_wc, _kv, _kvkv, _bias,
     g1, b1, wqkv, bqkv, wo, bo, g2, b2, w1, bf1, w2, bf2, pg, pb, pw, pbw) = params

    def ln(x, g, b):
        mu = jnp.mean(x, axis=-1, keepdims=True)
        var = jnp.mean((x - mu) ** 2, axis=-1, keepdims=True)
        return (x - mu) * jax.lax.rsqrt(var + EPS) * g + b

    x_comp = comp_emb[comp_x_cat] + jnp.einsum('bsf,fd->bsd', comp_x_cont, comp_wc)
    x_prot = prot_emb[prot_x_cat] + jnp.einsum('bsf,fd->bsd', prot_x_cont, prot_wc)
    x = jnp.concatenate((x_comp, x_prot), axis=1)            # (B, S, D)
    scale = 1.0 / math.sqrt(DH)

    for l in range(LAYERS):
        xn = ln(x, g1[l], b1[l])
        qkv = jnp.einsum('bsd,de->bse', xn, wqkv[l]) + bqkv[l]
        q, k, v = qkv[..., :D], qkv[..., D:2 * D], qkv[..., 2 * D:]
        qh = q.reshape(B, S, H, DH).transpose(0, 2, 1, 3) * scale
        kh = k.reshape(B, S, H, DH).transpose(0, 2, 1, 3)
        vh = v.reshape(B, S, H, DH).transpose(0, 2, 1, 3)
        sc = jnp.einsum('bhqd,bhkd->bhqk', qh, kh)
        p = jax.nn.softmax(sc, axis=-1)
        attn = jnp.einsum('bhqk,bhkd->bhqd', p, vh).transpose(0, 2, 1, 3).reshape(B, S, D)
        x = x + jnp.einsum('bsd,de->bse', attn, wo[l]) + bo[l]
        xn2 = ln(x, g2[l], b2[l])
        hid = jax.nn.relu(jnp.einsum('bsd,df->bsf', xn2, w1[l]) + bf1[l])
        x = x + jnp.einsum('bsf,fd->bsd', hid, w2[l]) + bf2[l]

    x_cls = x[:, 0, :]
    xr = jax.nn.relu(ln(x_cls, pg, pb))
    return jnp.sum(xr * pw, axis=-1, keepdims=True) + pbw


if __name__ == "__main__":
    root = jax.random.PRNGKey(0)
    k_params, k_in = jax.random.split(root)
    params = init_params(k_params)

    ki = jax.random.split(k_in, 4)
    comp_x_cat = jax.random.randint(ki[0], (B, S_COMP), 0, VOCAB_COMP)
    comp_x_cont = jax.random.normal(ki[1], (B, S_COMP, N_CONT), jnp.float32)
    prot_x_cat = jax.random.randint(ki[2], (B, S_PROT), 0, VOCAB_PROT)
    prot_x_cont = jax.random.normal(ki[3], (B, S_PROT, N_CONT), jnp.float32)

    out = attention_dtinn_forward(params, comp_x_cat, comp_x_cont,
                                  prot_x_cat, prot_x_cont)
    out = jax.block_until_ready(out)
    assert out.shape == (B, 1), out.shape

    ref = attention_dtinn_reference(params, comp_x_cat, comp_x_cont,
                                    prot_x_cat, prot_x_cont)
    # Exact reciprocal in the kernel -> tight tolerance (only reduction-order noise).
    assert jnp.allclose(out, ref, rtol=1e-4, atol=1e-4), (out, ref)

    print("KERNEL_OK")
</pallas_src>

<mosaic_0001>
module attributes {stable_mosaic.version = 11 : i64} {
  func.func @dtinn_kernel(%arg0: memref<16x1xi32, #tpu.memory_space<vmem>>, %arg1: memref<16x1xi32, #tpu.memory_space<vmem>>, %arg2: memref<16x4xf32, #tpu.memory_space<vmem>>, %arg3: memref<16x4xf32, #tpu.memory_space<vmem>>, %arg4: memref<50x32xf32, #tpu.memory_space<vmem>>, %arg5: memref<4x32xf32, #tpu.memory_space<vmem>>, %arg6: memref<30x32xf32, #tpu.memory_space<vmem>>, %arg7: memref<4x32xf32, #tpu.memory_space<vmem>>, %arg8: memref<256x32xf32, #tpu.memory_space<vmem>>, %arg9: memref<256x64xf32, #tpu.memory_space<vmem>>, %arg10: memref<32x256xf32, #tpu.memory_space<vmem>>, %arg11: memref<2x1x32xf32, #tpu.memory_space<vmem>>, %arg12: memref<2x1x32xf32, #tpu.memory_space<vmem>>, %arg13: memref<2x32x96xf32, #tpu.memory_space<vmem>>, %arg14: memref<2x1x96xf32, #tpu.memory_space<vmem>>, %arg15: memref<2x32x32xf32, #tpu.memory_space<vmem>>, %arg16: memref<2x1x32xf32, #tpu.memory_space<vmem>>, %arg17: memref<2x1x32xf32, #tpu.memory_space<vmem>>, %arg18: memref<2x1x32xf32, #tpu.memory_space<vmem>>, %arg19: memref<2x32x64xf32, #tpu.memory_space<vmem>>, %arg20: memref<2x1x64xf32, #tpu.memory_space<vmem>>, %arg21: memref<2x64x32xf32, #tpu.memory_space<vmem>>, %arg22: memref<2x1x32xf32, #tpu.memory_space<vmem>>, %arg23: memref<1x32xf32, #tpu.memory_space<vmem>>, %arg24: memref<1x32xf32, #tpu.memory_space<vmem>>, %arg25: memref<1x32xf32, #tpu.memory_space<vmem>>, %arg26: memref<1x1xf32, #tpu.memory_space<vmem>>, %arg27: memref<2x1xf32, #tpu.memory_space<vmem>>) attributes {dimension_semantics = [], scalar_prefetch = 0 : i64, scratch_operands = 0 : i64, tpu.core_type = #tpu.core_type<tc>} {
    %c0 = arith.constant 0 : index
    %c0_0 = arith.constant 0 : index
    %0 = vector.load %arg0[%c0, %c0_0] : memref<16x1xi32, #tpu.memory_space<vmem>>, vector<16x1xi32>
    %1 = tpu.iota {dimensions = array<i32: 1>} : vector<16x50xi32>
    %2 = vector.broadcast %0 : vector<16x1xi32> to vector<16x50xi32>
    %3 = arith.cmpi eq, %2, %1 : vector<16x50xi32>
    %4 = arith.extui %3 : vector<16x50xi1> to vector<16x50xi32>
    %5 = arith.sitofp %4 : vector<16x50xi32> to vector<16x50xf32>
    %c0_1 = arith.constant 0 : index
    %c0_2 = arith.constant 0 : index
    %6 = vector.load %arg1[%c0_1, %c0_2] : memref<16x1xi32, #tpu.memory_space<vmem>>, vector<16x1xi32>
    %7 = tpu.iota {dimensions = array<i32: 1>} : vector<16x30xi32>
    %8 = vector.broadcast %6 : vector<16x1xi32> to vector<16x30xi32>
    %9 = arith.cmpi eq, %8, %7 : vector<16x30xi32>
    %10 = arith.extui %9 : vector<16x30xi1> to vector<16x30xi32>
    %11 = arith.sitofp %10 : vector<16x30xi32> to vector<16x30xf32>
    %c0_3 = arith.constant 0 : index
    %c0_4 = arith.constant 0 : index
    %12 = vector.load %arg4[%c0_3, %c0_4] : memref<50x32xf32, #tpu.memory_space<vmem>>, vector<50x32xf32>
    %cst = arith.constant dense<0.000000e+00> : vector<16x32xf32>
    %13 = tpu.matmul %5, %12, %cst {dimension_numbers = #tpu.dot_dimension_numbers<[1], [0], [0], [1], [0, 0, 1, 1], [], []>} : vector<16x50xf32>, vector<50x32xf32>, vector<16x32xf32> -> vector<16x32xf32>
    %c0_5 = arith.constant 0 : index
    %c0_6 = arith.constant 0 : index
    %14 = vector.load %arg2[%c0_5, %c0_6] : memref<16x4xf32, #tpu.memory_space<vmem>>, vector<16x4xf32>
    %c0_7 = arith.constant 0 : index
    %c0_8 = arith.constant 0 : index
    %15 = vector.load %arg5[%c0_7, %c0_8] : memref<4x32xf32, #tpu.memory_space<vmem>>, vector<4x32xf32>
    %cst_9 = arith.constant dense<0.000000e+00> : vector<16x32xf32>
    %16 = tpu.matmul %14, %15, %cst_9 {dimension_numbers = #tpu.dot_dimension_numbers<[1], [0], [0], [1], [0, 0, 1, 1], [], []>} : vector<16x4xf32>, vector<4x32xf32>, vector<16x32xf32> -> vector<16x32xf32>
    %17 = arith.addf %13, %16 : vector<16x32xf32>
    %c0_10 = arith.constant 0 : index
    %c0_11 = arith.constant 0 : index
    %18 = vector.load %arg6[%c0_10, %c0_11] : memref<30x32xf32, #tpu.memory_space<vmem>>, vector<30x32xf32>
    %cst_12 = arith.constant dense<0.000000e+00> : vector<16x32xf32>
    %19 = tpu.matmul %11, %18, %cst_12 {dimension_numbers = #tpu.dot_dimension_numbers<[1], [0], [0], [1], [0, 0, 1, 1], [], []>} : vector<16x30xf32>, vector<30x32xf32>, vector<16x32xf32> -> vector<16x32xf32>
    %c0_13 = arith.constant 0 : index
    %c0_14 = arith.constant 0 : index
    %20 = vector.load %arg3[%c0_13, %c0_14] : memref<16x4xf32, #tpu.memory_space<vmem>>, vector<16x4xf32>
    %c0_15 = arith.constant 0 : index
    %c0_16 = arith.constant 0 : index
    %21 = vector.load %arg7[%c0_15, %c0_16] : memref<4x32xf32, #tpu.memory_space<vmem>>, vector<4x32xf32>
    %cst_17 = arith.constant dense<0.000000e+00> : vector<16x32xf32>
    %22 = tpu.matmul %20, %21, %cst_17 {dimension_numbers = #tpu.dot_dimension_numbers<[1], [0], [0], [1], [0, 0, 1, 1], [], []>} : vector<16x4xf32>, vector<4x32xf32>, vector<16x32xf32> -> vector<16x32xf32>
    %23 = arith.addf %19, %22 : vector<16x32xf32>
    %24 = vector.extract_strided_slice %17 {offsets = [0, 0], sizes = [8, 32], strides = [1, 1]} : vector<16x32xf32> to vector<8x32xf32>
    %25 = vector.extract_strided_slice %23 {offsets = [0, 0], sizes = [8, 32], strides = [1, 1]} : vector<16x32xf32> to vector<8x32xf32>
    %26 = vector.extract_strided_slice %17 {offsets = [8, 0], sizes = [8, 32], strides = [1, 1]} : vector<16x32xf32> to vector<8x32xf32>
    %27 = vector.extract_strided_slice %23 {offsets = [8, 0], sizes = [8, 32], strides = [1, 1]} : vector<16x32xf32> to vector<8x32xf32>
    %28 = tpu.concatenate %24, %25, %26, %27 in 0 : vector<8x32xf32>, vector<8x32xf32>, vector<8x32xf32>, vector<8x32xf32> -> vector<32x32xf32>
    %c0_18 = arith.constant 0 : index
    %c0_19 = arith.constant 0 : index
    %29 = vector.load %arg8[%c0_18, %c0_19] : memref<256x32xf32, #tpu.memory_space<vmem>>, vector<256x32xf32>
    %c0_20 = arith.constant 0 : index
    %c0_21 = arith.constant 0 : index
    %30 = vector.load %arg9[%c0_20, %c0_21] : memref<256x64xf32, #tpu.memory_space<vmem>>, vector<256x64xf32>
    %c0_22 = arith.constant 0 : index
    %c0_23 = arith.constant 0 : index
    %31 = vector.load %arg10[%c0_22, %c0_23] : memref<32x256xf32, #tpu.memory_space<vmem>>, vector<32x256xf32>
    %c0_24 = arith.constant 0 : index
    %c0_25 = arith.constant 0 : index
    %c0_26 = arith.constant 0 : index
    %32 = vector.load %arg11[%c0_24, %c0_25, %c0_26] : memref<2x1x32xf32, #tpu.memory_space<vmem>>, vector<1x1x32xf32>
    %33 = vector.shape_cast %32 : vector<1x1x32xf32> to vector<1x32xf32>
    %c0_27 = arith.constant 0 : index
    %c0_28 = arith.constant 0 : index
    %c0_29 = arith.constant 0 : index
    %34 = vector.load %arg12[%c0_27, %c0_28, %c0_29] : memref<2x1x32xf32, #tpu.memory_space<vmem>>, vector<1x1x32xf32>
    %35 = vector.shape_cast %34 : vector<1x1x32xf32> to vector<1x32xf32>
    %cst_30 = arith.constant dense<0.000000e+00> : vector<32xf32>
    %36 = vector.multi_reduction <add>, %28, %cst_30 [1] : vector<32x32xf32> to vector<32xf32>
    %37 = vector.shape_cast %36 : vector<32xf32> to vector<32x1xf32>
    %38 = arith.mulf %28, %28 : vector<32x32xf32>
    %cst_31 = arith.constant dense<0.000000e+00> : vector<32xf32>
    %39 = vector.multi_reduction <add>, %38, %cst_31 [1] : vector<32x32xf32> to vector<32xf32>
    %40 = vector.shape_cast %39 : vector<32xf32> to vector<32x1xf32>
    %cst_32 = arith.constant 3.125000e-02 : f32
    %41 = vector.broadcast %cst_32 : f32 to vector<32x1xf32>
    %42 = arith.mulf %37, %41 : vector<32x1xf32>
    %cst_33 = arith.constant 3.125000e-02 : f32
    %43 = vector.broadcast %cst_33 : f32 to vector<32x1xf32>
    %44 = arith.mulf %40, %43 : vector<32x1xf32>
    %45 = arith.mulf %42, %42 : vector<32x1xf32>
    %46 = arith.subf %44, %45 : vector<32x1xf32>
    %47 = vector.broadcast %42 : vector<32x1xf32> to vector<32x32xf32>
    %48 = arith.subf %28, %47 : vector<32x32xf32>
    %cst_34 = arith.constant 9.99999974E-6 : f32
    %49 = vector.broadcast %cst_34 : f32 to vector<32x1xf32>
    %50 = arith.addf %46, %49 : vector<32x1xf32>
    %51 = math.rsqrt %50 : vector<32x1xf32>
    %52 = vector.broadcast %51 : vector<32x1xf32> to vector<32x32xf32>
    %53 = arith.mulf %48, %52 : vector<32x32xf32>
    %54 = vector.broadcast %33 : vector<1x32xf32> to vector<32x32xf32>
    %55 = arith.mulf %53, %54 : vector<32x32xf32>
    %56 = vector.broadcast %35 : vector<1x32xf32> to vector<32x32xf32>
    %57 = arith.addf %55, %56 : vector<32x32xf32>
    %c0_35 = arith.constant 0 : index
    %c0_36 = arith.constant 0 : index
    %c0_37 = arith.constant 0 : index
    %58 = vector.load %arg13[%c0_35, %c0_36, %c0_37] : memref<2x32x96xf32, #tpu.memory_space<vmem>>, vector<1x32x96xf32>
    %59 = vector.shape_cast %58 : vector<1x32x96xf32> to vector<32x96xf32>
    %cst_38 = arith.constant dense<0.000000e+00> : vector<32x96xf32>
    %60 = tpu.matmul %57, %59, %cst_38 {dimension_numbers = #tpu.dot_dimension_numbers<[1], [0], [0], [1], [0, 0, 1, 1], [], []>} : vector<32x32xf32>, vector<32x96xf32>, vector<32x96xf32> -> vector<32x96xf32>
    %c0_39 = arith.constant 0 : index
    %c0_40 = arith.constant 0 : index
    %c0_41 = arith.constant 0 : index
    %61 = vector.load %arg14[%c0_39, %c0_40, %c0_41] : memref<2x1x96xf32, #tpu.memory_space<vmem>>, vector<1x1x96xf32>
    %62 = vector.shape_cast %61 : vector<1x1x96xf32> to vector<1x96xf32>
    %63 = vector.broadcast %62 : vector<1x96xf32> to vector<32x96xf32>
    %64 = arith.addf %60, %63 : vector<32x96xf32>
    %65 = vector.extract_strided_slice %64 {offsets = [0, 0], sizes = [32, 32], strides = [1, 1]} : vector<32x96xf32> to vector<32x32xf32>
    %cst_42 = arith.constant 5.000000e-01 : f32
    %66 = vector.broadcast %cst_42 : f32 to vector<32x32xf32>
    %67 = arith.mulf %65, %66 : vector<32x32xf32>
    %68 = vector.extract_strided_slice %64 {offsets = [0, 32], sizes = [32, 64], strides = [1, 1]} : vector<32x96xf32> to vector<32x64xf32>
    %69 = vector.shape_cast %68 : vector<32x64xf32> to vector<1x32x64xf32>
    %70 = vector.broadcast %69 : vector<1x32x64xf32> to vector<8x32x64xf32>
    %71 = vector.shape_cast %70 : vector<8x32x64xf32> to vector<256x64xf32>
    %72 = arith.mulf %71, %30 : vector<256x64xf32>
    %73 = vector.extract_strided_slice %72 {offsets = [0, 0], sizes = [256, 32], strides = [1, 1]} : vector<256x64xf32> to vector<256x32xf32>
    %74 = vector.extract_strided_slice %72 {offsets = [0, 32], sizes = [256, 32], strides = [1, 1]} : vector<256x64xf32> to vector<256x32xf32>
    %cst_43 = arith.constant dense<0.000000e+00> : vector<32x256xf32>
    %75 = tpu.matmul %67, %73, %cst_43 {dimension_numbers = #tpu.dot_dimension_numbers<[1], [1], [0], [0], [0, 0, 1, 0], [], []>} : vector<32x32xf32>, vector<256x32xf32>, vector<32x256xf32> -> vector<32x256xf32>
    %76 = arith.addf %75, %31 : vector<32x256xf32>
    %cst_44 = arith.constant dense<0xFF800000> : vector<32xf32>
    %77 = vector.multi_reduction <maximumf>, %76, %cst_44 [1] : vector<32x256xf32> to vector<32xf32>
    %78 = vector.shape_cast %77 : vector<32xf32> to vector<32x1xf32>
    %79 = vector.broadcast %78 : vector<32x1xf32> to vector<32x256xf32>
    %80 = arith.subf %76, %79 : vector<32x256xf32>
    %81 = math.exp %80 : vector<32x256xf32>
    %cst_45 = arith.constant dense<0.000000e+00> : vector<32x32xf32>
    %82 = tpu.matmul %81, %74, %cst_45 {dimension_numbers = #tpu.dot_dimension_numbers<[1], [0], [0], [1], [0, 0, 1, 1], [], []>} : vector<32x256xf32>, vector<256x32xf32>, vector<32x32xf32> -> vector<32x32xf32>
    %cst_46 = arith.constant dense<0.000000e+00> : vector<32x32xf32>
    %83 = tpu.matmul %81, %29, %cst_46 {dimension_numbers = #tpu.dot_dimension_numbers<[1], [0], [0], [1], [0, 0, 1, 1], [], []>} : vector<32x256xf32>, vector<256x32xf32>, vector<32x32xf32> -> vector<32x32xf32>
    %cst_47 = arith.constant 9.99999968E-21 : f32
    %84 = vector.broadcast %cst_47 : f32 to vector<32x32xf32>
    %85 = arith.maximumf %83, %84 : vector<32x32xf32>
    %86 = tpu.reciprocal %85 : vector<32x32xf32> -> vector<32x32xf32>
    %87 = arith.mulf %82, %86 : vector<32x32xf32>
    %c0_48 = arith.constant 0 : index
    %c0_49 = arith.constant 0 : index
    %c0_50 = arith.constant 0 : index
    %88 = vector.load %arg15[%c0_48, %c0_49, %c0_50] : memref<2x32x32xf32, #tpu.memory_space<vmem>>, vector<1x32x32xf32>
    %89 = vector.shape_cast %88 : vector<1x32x32xf32> to vector<32x32xf32>
    %cst_51 = arith.constant dense<0.000000e+00> : vector<32x32xf32>
    %90 = tpu.matmul %87, %89, %cst_51 {dimension_numbers = #tpu.dot_dimension_numbers<[1], [0], [0], [1], [0, 0, 1, 1], [], []>} : vector<32x32xf32>, vector<32x32xf32>, vector<32x32xf32> -> vector<32x32xf32>
    %91 = arith.addf %28, %90 : vector<32x32xf32>
    %c0_52 = arith.constant 0 : index
    %c0_53 = arith.constant 0 : index
    %c0_54 = arith.constant 0 : index
    %92 = vector.load %arg16[%c0_52, %c0_53, %c0_54] : memref<2x1x32xf32, #tpu.memory_space<vmem>>, vector<1x1x32xf32>
    %93 = vector.shape_cast %92 : vector<1x1x32xf32> to vector<1x32xf32>
    %94 = vector.broadcast %93 : vector<1x32xf32> to vector<32x32xf32>
    %95 = arith.addf %91, %94 : vector<32x32xf32>
    %c0_55 = arith.constant 0 : index
    %c0_56 = arith.constant 0 : index
    %c0_57 = arith.constant 0 : index
    %96 = vector.load %arg17[%c0_55, %c0_56, %c0_57] : memref<2x1x32xf32, #tpu.memory_space<vmem>>, vector<1x1x32xf32>
    %97 = vector.shape_cast %96 : vector<1x1x32xf32> to vector<1x32xf32>
    %c0_58 = arith.constant 0 : index
    %c0_59 = arith.constant 0 : index
    %c0_60 = arith.constant 0 : index
    %98 = vector.load %arg18[%c0_58, %c0_59, %c0_60] : memref<2x1x32xf32, #tpu.memory_space<vmem>>, vector<1x1x32xf32>
    %99 = vector.shape_cast %98 : vector<1x1x32xf32> to vector<1x32xf32>
    %cst_61 = arith.constant dense<0.000000e+00> : vector<32xf32>
    %100 = vector.multi_reduction <add>, %95, %cst_61 [1] : vector<32x32xf32> to vector<32xf32>
    %101 = vector.shape_cast %100 : vector<32xf32> to vector<32x1xf32>
    %102 = arith.mulf %95, %95 : vector<32x32xf32>
    %cst_62 = arith.constant dense<0.000000e+00> : vector<32xf32>
    %103 = vector.multi_reduction <add>, %102, %cst_62 [1] : vector<32x32xf32> to vector<32xf32>
    %104 = vector.shape_cast %103 : vector<32xf32> to vector<32x1xf32>
    %cst_63 = arith.constant 3.125000e-02 : f32
    %105 = vector.broadcast %cst_63 : f32 to vector<32x1xf32>
    %106 = arith.mulf %101, %105 : vector<32x1xf32>
    %cst_64 = arith.constant 3.125000e-02 : f32
    %107 = vector.broadcast %cst_64 : f32 to vector<32x1xf32>
    %108 = arith.mulf %104, %107 : vector<32x1xf32>
    %109 = arith.mulf %106, %106 : vector<32x1xf32>
    %110 = arith.subf %108, %109 : vector<32x1xf32>
    %111 = vector.broadcast %106 : vector<32x1xf32> to vector<32x32xf32>
    %112 = arith.subf %95, %111 : vector<32x32xf32>
    %cst_65 = arith.constant 9.99999974E-6 : f32
    %113 = vector.broadcast %cst_65 : f32 to vector<32x1xf32>
    %114 = arith.addf %110, %113 : vector<32x1xf32>
    %115 = math.rsqrt %114 : vector<32x1xf32>
    %116 = vector.broadcast %115 : vector<32x1xf32> to vector<32x32xf32>
    %117 = arith.mulf %112, %116 : vector<32x32xf32>
    %118 = vector.broadcast %97 : vector<1x32xf32> to vector<32x32xf32>
    %119 = arith.mulf %117, %118 : vector<32x32xf32>
    %120 = vector.broadcast %99 : vector<1x32xf32> to vector<32x32xf32>
    %121 = arith.addf %119, %120 : vector<32x32xf32>
    %c0_66 = arith.constant 0 : index
    %c0_67 = arith.constant 0 : index
    %c0_68 = arith.constant 0 : index
    %122 = vector.load %arg19[%c0_66, %c0_67, %c0_68] : memref<2x32x64xf32, #tpu.memory_space<vmem>>, vector<1x32x64xf32>
    %123 = vector.shape_cast %122 : vector<1x32x64xf32> to vector<32x64xf32>
    %cst_69 = arith.constant dense<0.000000e+00> : vector<32x64xf32>
    %124 = tpu.matmul %121, %123, %cst_69 {dimension_numbers = #tpu.dot_dimension_numbers<[1], [0], [0], [1], [0, 0, 1, 1], [], []>} : vector<32x32xf32>, vector<32x64xf32>, vector<32x64xf32> -> vector<32x64xf32>
    %c0_70 = arith.constant 0 : index
    %c0_71 = arith.constant 0 : index
    %c0_72 = arith.constant 0 : index
    %125 = vector.load %arg20[%c0_70, %c0_71, %c0_72] : memref<2x1x64xf32, #tpu.memory_space<vmem>>, vector<1x1x64xf32>
    %126 = vector.shape_cast %125 : vector<1x1x64xf32> to vector<1x64xf32>
    %127 = vector.broadcast %126 : vector<1x64xf32> to vector<32x64xf32>
    %128 = arith.addf %124, %127 : vector<32x64xf32>
    %cst_73 = arith.constant 0.000000e+00 : f32
    %129 = vector.broadcast %cst_73 : f32 to vector<32x64xf32>
    %130 = arith.maximumf %128, %129 : vector<32x64xf32>
    %c0_74 = arith.constant 0 : index
    %c0_75 = arith.constant 0 : index
    %c0_76 = arith.constant 0 : index
    %131 = vector.load %arg21[%c0_74, %c0_75, %c0_76] : memref<2x64x32xf32, #tpu.memory_space<vmem>>, vector<1x64x32xf32>
    %132 = vector.shape_cast %131 : vector<1x64x32xf32> to vector<64x32xf32>
    %cst_77 = arith.constant dense<0.000000e+00> : vector<32x32xf32>
    %133 = tpu.matmul %130, %132, %cst_77 {dimension_numbers = #tpu.dot_dimension_numbers<[1], [0], [0], [1], [0, 0, 1, 1], [], []>} : vector<32x64xf32>, vector<64x32xf32>, vector<32x32xf32> -> vector<32x32xf32>
    %134 = arith.addf %95, %133 : vector<32x32xf32>
    %c0_78 = arith.constant 0 : index
    %c0_79 = arith.constant 0 : index
    %c0_80 = arith.constant 0 : index
    %135 = vector.load %arg22[%c0_78, %c0_79, %c0_80] : memref<2x1x32xf32, #tpu.memory_space<vmem>>, vector<1x1x32xf32>
    %136 = vector.shape_cast %135 : vector<1x1x32xf32> to vector<1x32xf32>
    %137 = vector.broadcast %136 : vector<1x32xf32> to vector<32x32xf32>
    %138 = arith.addf %134, %137 : vector<32x32xf32>
    %c1 = arith.constant 1 : index
    %c0_81 = arith.constant 0 : index
    %c0_82 = arith.constant 0 : index
    %139 = vector.load %arg11[%c1, %c0_81, %c0_82] : memref<2x1x32xf32, #tpu.memory_space<vmem>>, vector<1x1x32xf32>
    %140 = vector.shape_cast %139 : vector<1x1x32xf32> to vector<1x32xf32>
    %c1_83 = arith.constant 1 : index
    %c0_84 = arith.constant 0 : index
    %c0_85 = arith.constant 0 : index
    %141 = vector.load %arg12[%c1_83, %c0_84, %c0_85] : memref<2x1x32xf32, #tpu.memory_space<vmem>>, vector<1x1x32xf32>
    %142 = vector.shape_cast %141 : vector<1x1x32xf32> to vector<1x32xf32>
    %cst_86 = arith.constant dense<0.000000e+00> : vector<32xf32>
    %143 = vector.multi_reduction <add>, %138, %cst_86 [1] : vector<32x32xf32> to vector<32xf32>
    %144 = vector.shape_cast %143 : vector<32xf32> to vector<32x1xf32>
    %145 = arith.mulf %138, %138 : vector<32x32xf32>
    %cst_87 = arith.constant dense<0.000000e+00> : vector<32xf32>
    %146 = vector.multi_reduction <add>, %145, %cst_87 [1] : vector<32x32xf32> to vector<32xf32>
    %147 = vector.shape_cast %146 : vector<32xf32> to vector<32x1xf32>
    %cst_88 = arith.constant 3.125000e-02 : f32
    %148 = vector.broadcast %cst_88 : f32 to vector<32x1xf32>
    %149 = arith.mulf %144, %148 : vector<32x1xf32>
    %cst_89 = arith.constant 3.125000e-02 : f32
    %150 = vector.broadcast %cst_89 : f32 to vector<32x1xf32>
    %151 = arith.mulf %147, %150 : vector<32x1xf32>
    %152 = arith.mulf %149, %149 : vector<32x1xf32>
    %153 = arith.subf %151, %152 : vector<32x1xf32>
    %154 = vector.broadcast %149 : vector<32x1xf32> to vector<32x32xf32>
    %155 = arith.subf %138, %154 : vector<32x32xf32>
    %cst_90 = arith.constant 9.99999974E-6 : f32
    %156 = vector.broadcast %cst_90 : f32 to vector<32x1xf32>
    %157 = arith.addf %153, %156 : vector<32x1xf32>
    %158 = math.rsqrt %157 : vector<32x1xf32>
    %159 = vector.broadcast %158 : vector<32x1xf32> to vector<32x32xf32>
    %160 = arith.mulf %155, %159 : vector<32x32xf32>
    %161 = vector.broadcast %140 : vector<1x32xf32> to vector<32x32xf32>
    %162 = arith.mulf %160, %161 : vector<32x32xf32>
    %163 = vector.broadcast %142 : vector<1x32xf32> to vector<32x32xf32>
    %164 = arith.addf %162, %163 : vector<32x32xf32>
    %c1_91 = arith.constant 1 : index
    %c0_92 = arith.constant 0 : index
    %c0_93 = arith.constant 0 : index
    %165 = vector.load %arg13[%c1_91, %c0_92, %c0_93] : memref<2x32x96xf32, #tpu.memory_space<vmem>>, vector<1x32x96xf32>
    %166 = vector.shape_cast %165 : vector<1x32x96xf32> to vector<32x96xf32>
    %cst_94 = arith.constant dense<0.000000e+00> : vector<32x96xf32>
    %167 = tpu.matmul %164, %166, %cst_94 {dimension_numbers = #tpu.dot_dimension_numbers<[1], [0], [0], [1], [0, 0, 1, 1], [], []>} : vector<32x32xf32>, vector<32x96xf32>, vector<32x96xf32> -> vector<32x96xf32>
    %c1_95 = arith.constant 1 : index
    %c0_96 = arith.constant 0 : index
    %c0_97 = arith.constant 0 : index
    %168 = vector.load %arg14[%c1_95, %c0_96, %c0_97] : memref<2x1x96xf32, #tpu.memory_space<vmem>>, vector<1x1x96xf32>
    %169 = vector.shape_cast %168 : vector<1x1x96xf32> to vector<1x96xf32>
    %170 = vector.broadcast %169 : vector<1x96xf32> to vector<32x96xf32>
    %171 = arith.addf %167, %170 : vector<32x96xf32>
    %172 = vector.extract_strided_slice %171 {offsets = [0, 0], sizes = [32, 32], strides = [1, 1]} : vector<32x96xf32> to vector<32x32xf32>
    %cst_98 = arith.constant 5.000000e-01 : f32
    %173 = vector.broadcast %cst_98 : f32 to vector<32x32xf32>
    %174 = arith.mulf %172, %173 : vector<32x32xf32>
    %175 = vector.extract_strided_slice %171 {offsets = [0, 32], sizes = [32, 64], strides = [1, 1]} : vector<32x96xf32> to vector<32x64xf32>
    %176 = vector.shape_cast %175 : vector<32x64xf32> to vector<1x32x64xf32>
    %177 = vector.broadcast %176 : vector<1x32x64xf32> to vector<8x32x64xf32>
    %178 = vector.shape_cast %177 : vector<8x32x64xf32> to vector<256x64xf32>
    %179 = arith.mulf %178, %30 : vector<256x64xf32>
    %180 = vector.extract_strided_slice %179 {offsets = [0, 0], sizes = [256, 32], strides = [1, 1]} : vector<256x64xf32> to vector<256x32xf32>
    %181 = vector.extract_strided_slice %179 {offsets = [0, 32], sizes = [256, 32], strides = [1, 1]} : vector<256x64xf32> to vector<256x32xf32>
    %cst_99 = arith.constant dense<0.000000e+00> : vector<32x256xf32>
    %182 = tpu.matmul %174, %180, %cst_99 {dimension_numbers = #tpu.dot_dimension_numbers<[1], [1], [0], [0], [0, 0, 1, 0], [], []>} : vector<32x32xf32>, vector<256x32xf32>, vector<32x256xf32> -> vector<32x256xf32>
    %183 = arith.addf %182, %31 : vector<32x256xf32>
    %cst_100 = arith.constant dense<0xFF800000> : vector<32xf32>
    %184 = vector.multi_reduction <maximumf>, %183, %cst_100 [1] : vector<32x256xf32> to vector<32xf32>
    %185 = vector.shape_cast %184 : vector<32xf32> to vector<32x1xf32>
    %186 = vector.broadcast %185 : vector<32x1xf32> to vector<32x256xf32>
    %187 = arith.subf %183, %186 : vector<32x256xf32>
    %188 = math.exp %187 : vector<32x256xf32>
    %cst_101 = arith.constant dense<0.000000e+00> : vector<32x32xf32>
    %189 = tpu.matmul %188, %181, %cst_101 {dimension_numbers = #tpu.dot_dimension_numbers<[1], [0], [0], [1], [0, 0, 1, 1], [], []>} : vector<32x256xf32>, vector<256x32xf32>, vector<32x32xf32> -> vector<32x32xf32>
    %cst_102 = arith.constant dense<0.000000e+00> : vector<32x32xf32>
    %190 = tpu.matmul %188, %29, %cst_102 {dimension_numbers = #tpu.dot_dimension_numbers<[1], [0], [0], [1], [0, 0, 1, 1], [], []>} : vector<32x256xf32>, vector<256x32xf32>, vector<32x32xf32> -> vector<32x32xf32>
    %cst_103 = arith.constant 9.99999968E-21 : f32
    %191 = vector.broadcast %cst_103 : f32 to vector<32x32xf32>
    %192 = arith.maximumf %190, %191 : vector<32x32xf32>
    %193 = tpu.reciprocal %192 : vector<32x32xf32> -> vector<32x32xf32>
    %194 = arith.mulf %189, %193 : vector<32x32xf32>
    %c1_104 = arith.constant 1 : index
    %c0_105 = arith.constant 0 : index
    %c0_106 = arith.constant 0 : index
    %195 = vector.load %arg15[%c1_104, %c0_105, %c0_106] : memref<2x32x32xf32, #tpu.memory_space<vmem>>, vector<1x32x32xf32>
    %196 = vector.shape_cast %195 : vector<1x32x32xf32> to vector<32x32xf32>
    %cst_107 = arith.constant dense<0.000000e+00> : vector<32x32xf32>
    %197 = tpu.matmul %194, %196, %cst_107 {dimension_numbers = #tpu.dot_dimension_numbers<[1], [0], [0], [1], [0, 0, 1, 1], [], []>} : vector<32x32xf32>, vector<32x32xf32>, vector<32x32xf32> -> vector<32x32xf32>
    %198 = arith.addf %138, %197 : vector<32x32xf32>
    %c1_108 = arith.constant 1 : index
    %c0_109 = arith.constant 0 : index
    %c0_110 = arith.constant 0 : index
    %199 = vector.load %arg16[%c1_108, %c0_109, %c0_110] : memref<2x1x32xf32, #tpu.memory_space<vmem>>, vector<1x1x32xf32>
    %200 = vector.shape_cast %199 : vector<1x1x32xf32> to vector<1x32xf32>
    %201 = vector.broadcast %200 : vector<1x32xf32> to vector<32x32xf32>
    %202 = arith.addf %198, %201 : vector<32x32xf32>
    %c1_111 = arith.constant 1 : index
    %c0_112 = arith.constant 0 : index
    %c0_113 = arith.constant 0 : index
    %203 = vector.load %arg17[%c1_111, %c0_112, %c0_113] : memref<2x1x32xf32, #tpu.memory_space<vmem>>, vector<1x1x32xf32>
    %204 = vector.shape_cast %203 : vector<1x1x32xf32> to vector<1x32xf32>
    %c1_114 = arith.constant 1 : index
    %c0_115 = arith.constant 0 : index
    %c0_116 = arith.constant 0 : index
    %205 = vector.load %arg18[%c1_114, %c0_115, %c0_116] : memref<2x1x32xf32, #tpu.memory_space<vmem>>, vector<1x1x32xf32>
    %206 = vector.shape_cast %205 : vector<1x1x32xf32> to vector<1x32xf32>
    %cst_117 = arith.constant dense<0.000000e+00> : vector<32xf32>
    %207 = vector.multi_reduction <add>, %202, %cst_117 [1] : vector<32x32xf32> to vector<32xf32>
    %208 = vector.shape_cast %207 : vector<32xf32> to vector<32x1xf32>
    %209 = arith.mulf %202, %202 : vector<32x32xf32>
    %cst_118 = arith.constant dense<0.000000e+00> : vector<32xf32>
    %210 = vector.multi_reduction <add>, %209, %cst_118 [1] : vector<32x32xf32> to vector<32xf32>
    %211 = vector.shape_cast %210 : vector<32xf32> to vector<32x1xf32>
    %cst_119 = arith.constant 3.125000e-02 : f32
    %212 = vector.broadcast %cst_119 : f32 to vector<32x1xf32>
    %213 = arith.mulf %208, %212 : vector<32x1xf32>
    %cst_120 = arith.constant 3.125000e-02 : f32
    %214 = vector.broadcast %cst_120 : f32 to vector<32x1xf32>
    %215 = arith.mulf %211, %214 : vector<32x1xf32>
    %216 = arith.mulf %213, %213 : vector<32x1xf32>
    %217 = arith.subf %215, %216 : vector<32x1xf32>
    %218 = vector.broadcast %213 : vector<32x1xf32> to vector<32x32xf32>
    %219 = arith.subf %202, %218 : vector<32x32xf32>
    %cst_121 = arith.constant 9.99999974E-6 : f32
    %220 = vector.broadcast %cst_121 : f32 to vector<32x1xf32>
    %221 = arith.addf %217, %220 : vector<32x1xf32>
    %222 = math.rsqrt %221 : vector<32x1xf32>
    %223 = vector.broadcast %222 : vector<32x1xf32> to vector<32x32xf32>
    %224 = arith.mulf %219, %223 : vector<32x32xf32>
    %225 = vector.broadcast %204 : vector<1x32xf32> to vector<32x32xf32>
    %226 = arith.mulf %224, %225 : vector<32x32xf32>
    %227 = vector.broadcast %206 : vector<1x32xf32> to vector<32x32xf32>
    %228 = arith.addf %226, %227 : vector<32x32xf32>
    %c1_122 = arith.constant 1 : index
    %c0_123 = arith.constant 0 : index
    %c0_124 = arith.constant 0 : index
    %229 = vector.load %arg19[%c1_122, %c0_123, %c0_124] : memref<2x32x64xf32, #tpu.memory_space<vmem>>, vector<1x32x64xf32>
    %230 = vector.shape_cast %229 : vector<1x32x64xf32> to vector<32x64xf32>
    %cst_125 = arith.constant dense<0.000000e+00> : vector<32x64xf32>
    %231 = tpu.matmul %228, %230, %cst_125 {dimension_numbers = #tpu.dot_dimension_numbers<[1], [0], [0], [1], [0, 0, 1, 1], [], []>} : vector<32x32xf32>, vector<32x64xf32>, vector<32x64xf32> -> vector<32x64xf32>
    %c1_126 = arith.constant 1 : index
    %c0_127 = arith.constant 0 : index
    %c0_128 = arith.constant 0 : index
    %232 = vector.load %arg20[%c1_126, %c0_127, %c0_128] : memref<2x1x64xf32, #tpu.memory_space<vmem>>, vector<1x1x64xf32>
    %233 = vector.shape_cast %232 : vector<1x1x64xf32> to vector<1x64xf32>
    %234 = vector.broadcast %233 : vector<1x64xf32> to vector<32x64xf32>
    %235 = arith.addf %231, %234 : vector<32x64xf32>
    %cst_129 = arith.constant 0.000000e+00 : f32
    %236 = vector.broadcast %cst_129 : f32 to vector<32x64xf32>
    %237 = arith.maximumf %235, %236 : vector<32x64xf32>
    %c1_130 = arith.constant 1 : index
    %c0_131 = arith.constant 0 : index
    %c0_132 = arith.constant 0 : index
    %238 = vector.load %arg21[%c1_130, %c0_131, %c0_132] : memref<2x64x32xf32, #tpu.memory_space<vmem>>, vector<1x64x32xf32>
    %239 = vector.shape_cast %238 : vector<1x64x32xf32> to vector<64x32xf32>
    %cst_133 = arith.constant dense<0.000000e+00> : vector<32x32xf32>
    %240 = tpu.matmul %237, %239, %cst_133 {dimension_numbers = #tpu.dot_dimension_numbers<[1], [0], [0], [1], [0, 0, 1, 1], [], []>} : vector<32x64xf32>, vector<64x32xf32>, vector<32x32xf32> -> vector<32x32xf32>
    %241 = arith.addf %202, %240 : vector<32x32xf32>
    %c1_134 = arith.constant 1 : index
    %c0_135 = arith.constant 0 : index
    %c0_136 = arith.constant 0 : index
    %242 = vector.load %arg22[%c1_134, %c0_135, %c0_136] : memref<2x1x32xf32, #tpu.memory_space<vmem>>, vector<1x1x32xf32>
    %243 = vector.shape_cast %242 : vector<1x1x32xf32> to vector<1x32xf32>
    %244 = vector.broadcast %243 : vector<1x32xf32> to vector<32x32xf32>
    %245 = arith.addf %241, %244 : vector<32x32xf32>
    %246 = vector.extract_strided_slice %245 {offsets = [0, 0], sizes = [1, 32], strides = [1, 1]} : vector<32x32xf32> to vector<1x32xf32>
    %247 = vector.extract_strided_slice %245 {offsets = [16, 0], sizes = [1, 32], strides = [1, 1]} : vector<32x32xf32> to vector<1x32xf32>
    %248 = tpu.concatenate %246, %247 in 0 : vector<1x32xf32>, vector<1x32xf32> -> vector<2x32xf32>
    %c0_137 = arith.constant 0 : index
    %c0_138 = arith.constant 0 : index
    %249 = vector.load %arg23[%c0_137, %c0_138] : memref<1x32xf32, #tpu.memory_space<vmem>>, vector<1x32xf32>
    %c0_139 = arith.constant 0 : index
    %c0_140 = arith.constant 0 : index
    %250 = vector.load %arg24[%c0_139, %c0_140] : memref<1x32xf32, #tpu.memory_space<vmem>>, vector<1x32xf32>
    %cst_141 = arith.constant dense<0.000000e+00> : vector<2xf32>
    %251 = vector.multi_reduction <add>, %248, %cst_141 [1] : vector<2x32xf32> to vector<2xf32>
    %252 = vector.shape_cast %251 : vector<2xf32> to vector<2x1xf32>
    %253 = arith.mulf %248, %248 : vector<2x32xf32>
    %cst_142 = arith.constant dense<0.000000e+00> : vector<2xf32>
    %254 = vector.multi_reduction <add>, %253, %cst_142 [1] : vector<2x32xf32> to vector<2xf32>
    %255 = vector.shape_cast %254 : vector<2xf32> to vector<2x1xf32>
    %cst_143 = arith.constant 3.125000e-02 : f32
    %256 = vector.broadcast %cst_143 : f32 to vector<2x1xf32>
    %257 = arith.mulf %252, %256 : vector<2x1xf32>
    %cst_144 = arith.constant 3.125000e-02 : f32
    %258 = vector.broadcast %cst_144 : f32 to vector<2x1xf32>
    %259 = arith.mulf %255, %258 : vector<2x1xf32>
    %260 = arith.mulf %257, %257 : vector<2x1xf32>
    %261 = arith.subf %259, %260 : vector<2x1xf32>
    %262 = vector.broadcast %257 : vector<2x1xf32> to vector<2x32xf32>
    %263 = arith.subf %248, %262 : vector<2x32xf32>
    %cst_145 = arith.constant 9.99999974E-6 : f32
    %264 = vector.broadcast %cst_145 : f32 to vector<2x1xf32>
    %265 = arith.addf %261, %264 : vector<2x1xf32>
    %266 = math.rsqrt %265 : vector<2x1xf32>
    %267 = vector.broadcast %266 : vector<2x1xf32> to vector<2x32xf32>
    %268 = arith.mulf %263, %267 : vector<2x32xf32>
    %269 = vector.broadcast %249 : vector<1x32xf32> to vector<2x32xf32>
    %270 = arith.mulf %268, %269 : vector<2x32xf32>
    %271 = vector.broadcast %250 : vector<1x32xf32> to vector<2x32xf32>
    %272 = arith.addf %270, %271 : vector<2x32xf32>
    %cst_146 = arith.constant 0.000000e+00 : f32
    %273 = vector.broadcast %cst_146 : f32 to vector<2x32xf32>
    %274 = arith.maximumf %272, %273 : vector<2x32xf32>
    %c0_147 = arith.constant 0 : index
    %c0_148 = arith.constant 0 : index
    %275 = vector.load %arg25[%c0_147, %c0_148] : memref<1x32xf32, #tpu.memory_space<vmem>>, vector<1x32xf32>
    %276 = vector.broadcast %275 : vector<1x32xf32> to vector<2x32xf32>
    %277 = arith.mulf %274, %276 : vector<2x32xf32>
    %cst_149 = arith.constant dense<0.000000e+00> : vector<2xf32>
    %278 = vector.multi_reduction <add>, %277, %cst_149 [1] : vector<2x32xf32> to vector<2xf32>
    %279 = vector.shape_cast %278 : vector<2xf32> to vector<2x1xf32>
    %c0_150 = arith.constant 0 : index
    %c0_151 = arith.constant 0 : index
    %280 = vector.load %arg26[%c0_150, %c0_151] : memref<1x1xf32, #tpu.memory_space<vmem>>, vector<1x1xf32>
    %281 = vector.broadcast %280 : vector<1x1xf32> to vector<2x1xf32>
    %282 = arith.addf %279, %281 : vector<2x1xf32>
    %c0_152 = arith.constant 0 : index
    %c0_153 = arith.constant 0 : index
    %283 = vector.load %arg27[%c0_152, %c0_153] : memref<2x1xf32, #tpu.memory_space<vmem>>, vector<2x1xf32>
    tpu.vector_store %arg27[%c0_152, %c0_153], %282 {strides = array<i32>} : memref<2x1xf32, #tpu.memory_space<vmem>>, vector<2x1xf32>,
    return
  }
}

</mosaic_0001>

<bundles_post_ra>
// kernel: _forward_impl.1
= control target key start
LH: loop header
LB: loop body
LE: loop exit
PB: predicated region body
PF: predicated region fallthrough
CT: control target
= control target key end

     0   :  { %vm135_vm0 = vcmask 1043456   ;;  %vm128_vm1 = vcmask 31744   ;;  %v4641_v0 = vmov 0   ;;  %vm398_vm2 = vcmask 1045504   ;;  %s5974_s1 = inlined_call_operand.vmem [shape: s32[16,1], index: 1, kind: input, shape index: {}]   ;;  %s5975_s0 = inlined_call_operand.vmem [shape: s32[16,1], index: 0, kind: input, shape index: {}]   ;;  %s5976_s5 = inlined_call_operand.vmem [shape: f32[4,32], index: 5, kind: input, shape index: {}]   ;;  %s5977_s2 = inlined_call_operand.vmem [shape: f32[16,4], index: 2, kind: input, shape index: {}]   ;;  %s5978_s4 = inlined_call_operand.vmem [shape: f32[50,32], index: 4, kind: input, shape index: {}]   ;;  %s5979_s6 = inlined_call_operand.vmem [shape: f32[30,32], index: 6, kind: input, shape index: {}]   ;;  %s5980_s7 = inlined_call_operand.vmem [shape: f32[4,32], index: 7, kind: input, shape index: {}]   ;;  %s5981_s3 = inlined_call_operand.vmem [shape: f32[16,4], index: 3, kind: input, shape index: {}]   ;;  %s5982_s13 = inlined_call_operand.vmem [shape: f32[2,32,96], index: 13, kind: input, shape index: {}]   ;;  %s5983_s9 = inlined_call_operand.vmem [shape: f32[256,64], index: 9, kind: input, shape index: {}]   ;;  %s5984_s11 = inlined_call_operand.vmem [shape: f32[2,1,32], index: 11, kind: input, shape index: {}]   ;;  %s5985_s12 = inlined_call_operand.vmem [shape: f32[2,1,32], index: 12, kind: input, shape index: {}]   ;;  %s5986_s14 = inlined_call_operand.vmem [shape: f32[2,1,96], index: 14, kind: input, shape index: {}]   ;;  %s5987_s10 = inlined_call_operand.vmem [shape: f32[32,256], index: 10, kind: input, shape index: {}]   ;;  %s5988_s8 = inlined_call_operand.vmem [shape: f32[256,32], index: 8, kind: input, shape index: {}]   ;;  %s5989_s15 = inlined_call_operand.vmem [shape: f32[2,32,32], index: 15, kind: input, shape index: {}]   ;;  %s5990_s16 = inlined_call_operand.vmem [shape: f32[2,1,32], index: 16, kind: input, shape index: {}]   ;;  %s5991_s19 = inlined_call_operand.vmem [shape: f32[2,32,64], index: 19, kind: input, shape index: {}]   ;;  %s5992_s21 = inlined_call_operand.vmem [shape: f32[2,64,32], index: 21, kind: input, shape index: {}]   ;;  %s5993_s17 = inlined_call_operand.vmem [shape: f32[2,1,32], index: 17, kind: input, shape index: {}]   ;;  %s5994_s18 = inlined_call_operand.vmem [shape: f32[2,1,32], index: 18, kind: input, shape index: {}]   ;;  %s5995_s20 = inlined_call_operand.vmem [shape: f32[2,1,64], index: 20, kind: input, shape index: {}]   ;;  %s5996_s22 = inlined_call_operand.vmem [shape: f32[2,1,32], index: 22, kind: input, shape index: {}]   ;;  %s5997_s26 = inlined_call_operand.<no memory space> [shape: f32[1,1], index: 26, kind: input, shape index: {}]   ;;  %s5998_s23 = inlined_call_operand.vmem [shape: f32[1,32], index: 23, kind: input, shape index: {}]   ;;  %s5999_s24 = inlined_call_operand.vmem [shape: f32[1,32], index: 24, kind: input, shape index: {}]   ;;  %s6000_s25 = inlined_call_operand.vmem [shape: f32[1,32], index: 25, kind: input, shape index: {}]   ;;  %s6001_s27 = inlined_call_operand.vmem [shape: f32[2,1], index: 27, kind: output, shape index: {}]  }
   0x1   :  { %6024 = sst [smem:[#allocation15_spill]] %s5974_s1  ;;  %4230 = vset.pattern.permute.xlu1 %v4641_v0  ;;  %4229 = vset.pattern.permute.xlu0 %v4641_v0  ;;  %vm4642_vm3 = vmmov 1   ;;  %vm221_vm5 = vcmask 1041408   ;;  %v90_v25 = vlaneseq  ;;  %vm214_vm6 = vcmask 408576  }
   0x2   :  { %6025 = sst [smem:[#allocation16_spill]] %s5975_s0  ;;  %vm3910_vm4 = vmpackc.low %vm398_vm2, %vm4642_vm3  ;;  %vm391_vm7 = vcmask 244736   ;;  %v4643_v29 = vmov 0.0   ;;  %vm551_vm12 = vcmask 261120   ;;  %vm1797_vm14 = vcmask 523264  }
   0x3   :  { %6026 = sst [smem:[#allocation17_spill]] %s5976_s5  ;;  %v91_v26 = vand.u32 127, %v90_v25  ;;  %vm5215_vm13 = vmpackc.low %vm551_vm12, %vm551_vm12  ;;  %vm3150_vm15 = vcmask 1040384  }
   0x4   :  { %6027 = sst [smem:[#allocation18_spill]] %s5977_s2 }
   0x5   :  { %6028 = sst [smem:[#allocation19_spill]] %s5978_s4  ;;  %s6039_s4 = sld [smem:[#allocation18_spill]] }
   0x6   :  { %6029 = sst [smem:[#allocation20_spill]] %s5979_s6  ;;  %s6037_s6 = sld [smem:[#allocation16_spill]] }
   0x7   :  { %6030 = sst [smem:[#allocation21_spill]] %s5980_s7  ;;  %s6040_s28 = sld [smem:[#allocation19_spill]] }
   0x8   :  { %6031 = sst [smem:[#allocation22_spill]] %s5981_s3  ;;  %s6041_s2 = sld [smem:[#allocation20_spill]] }
   0x9   :  { %6032 = sst [smem:[#allocation23_spill]] %s5982_s13  ;;  %s6043_s30 = sld [smem:[#allocation22_spill]] }
   0xa   :  { %6033 = sst [smem:[#allocation24_spill]] %s5983_s9  ;;  %s6036_s13 = sld [smem:[#allocation15_spill]] }
   0xb   :  { %6034 = sst [smem:[#allocation25_spill]] %s5984_s11  ;;  %v125_v6 = vld [vmem:[%s6039_s4] sm:$0xff]  ;;  %v126_v7 = vld [vmem:[%s6039_s4 + $0x8] sm:$0xff]  ;;  %s6042_s4 = sld [smem:[#allocation21_spill]] }
   0xc   :  { %6035 = sst [smem:[#allocation26_spill]] %s5985_s12  ;;  %v88_v2 = vld [vmem:[%s6037_s6] sm:$0xff]  ;;  %v89_v4 = vld [vmem:[%s6037_s6 + $0x8] sm:$0xff]  ;;  %s6038_s12 = sld [smem:[#allocation17_spill]]  ;;  %3729 = vmatprep.mubr.msk.f32.mxu0 %vm128_vm1, %v125_v6 }
   0xd   :  { %93 = vperm.xlu0 %4229, %v88_v2   ;;  %v118_v8 = vld [vmem:[%s6040_s28] sm:$0xff]  ;;  %v119_v9 = vld [vmem:[%s6040_s28 + $0x8] sm:$0xff]  ;;  %v120_v11 = vld [vmem:[%s6040_s28 + $0x10] sm:$0xff]  ;;  %s6044_s11 = sld [smem:[#allocation23_spill]]  ;;  %s6045_s5 = sld [smem:[#allocation24_spill]] }
   0xe   :  { %v3893_v10 = vpack.c.bf16 %v119_v9, %v118_v8  ;;  %v121_v12 = vld [vmem:[%s6040_s28 + $0x18] sm:$0xff]  ;;  %v300_v13 = vld [vmem:[%s6041_s2] sm:$0xff]  ;;  %v301_v15 = vld [vmem:[%s6041_s2 + $0x8] sm:$0xff]  ;;  %s6046_s6 = sld [smem:[#allocation25_spill]]  ;;  %s6047_s1 = sld [smem:[#allocation26_spill]] }
   0xf   :  { %v3897_v14 = vpack.c.bf16 %v121_v12, %v120_v11  ;;  %v122_v16 = vld [vmem:[%s6040_s28 + $0x20] sm:$0xff]  ;;  %v3905_v17 = vpack.c.bf16 %v301_v15, %v300_v13  ;;  %v123_v18 = vld [vmem:[%s6040_s28 + $0x28] sm:$0xff]  ;;  %v302_v19 = vld [vmem:[%s6041_s2 + $0x10] sm:$0xff]  ;;  %s4645_s3 = smov 96  }
  0x10   :  { %v104_v1 = vld [vmem:[%s6036_s13] sm:$0xff]  ;;  %v105_v3 = vld [vmem:[%s6036_s13 + $0x8] sm:$0xff]  ;;  %v303_v20 = vld [vmem:[%s6041_s2 + $0x18] sm:$0x3f]  ;;  %v3901_v22 = vpack.c.bf16 %v123_v18, %v122_v16  ;;  %s4646_s2 = smov 64  }
  0x11   :  { %107 = vperm.xlu1 %4230, %v104_v1   ;;  %96 = vperm.xlu0 %4229, %v89_v4   ;;  %v3909_v21 = vpack.c.bf16 %v303_v20, %v302_v19  ;;  %v124_v23 = vld [vmem:[%s6040_s28 + $0x30] sm:$0x3]  ;;  %v306_v24 = vld [vmem:[%s6042_s4] sm:$0xf]  ;;  %v305_v37 = vld [vmem:[%s6043_s30 + $0x8] sm:$0xff] }
  0x12   :  { %v127_v5 = vld [vmem:[%s6038_s12] sm:$0xf]  ;;  %3906 = vmatprep.subr.bf16.mxu1 %v3905_v17 }
  0x13   :  { %3727 = vmatprep.subr.msk.mxu0 %vm135_vm0, %v127_v5  ;;  %3908 = vmatpush3.bf16.msra.mxu1 %v3905_v17  ;;  %v304_v34 = vld [vmem:[%s6043_s30] sm:$0xff]  ;;  %v633_v59 = vld [vmem:[%s6044_s11 + $0x8] sm:$0xff]  ;;  %v634_v61 = vld [vmem:[%s6044_s11 + $0x10] sm:$0xff]  ;;  %s4644_s30 = smov 32  }
  0x14   :  { %3728 = vmatpush3.msk.msra.mxu0 %vm135_vm0, %v127_v5  ;;  %3911 = vmatprep.subr.msk.bf16.mxu1 %vm3910_vm4, %v3909_v21  ;;  %v632_v58 = vld [vmem:[%s6044_s11] sm:$0xff]  ;;  %v635_v62 = vld [vmem:[%s6044_s11 + $0x18] sm:$0xff]  ;;  %v526_v1 = vld [vmem:[%s6045_s5 + $0x88] sm:$0xff] }
  0x15   :  { %3730 = vmatmul.mubr.msk.f32.vlgmr.msra.gmra.mrb[0].mxu0 %vm128_vm1, %v126_v7  ;;  %110 = vperm.xlu1 %4230, %v105_v3   ;;  %v3915_v60 = vpack.c.bf16 %v633_v59, %v632_v58  ;;  %v3919_v63 = vpack.c.bf16 %v635_v62, %v634_v61  ;;  %v525_v0 = vld [vmem:[%s6045_s5 + $0x80] sm:$0xff]  ;;  %v527_v3 = vld [vmem:[%s6045_s5 + $0x90] sm:$0xff]  ;;  %v510_v4 = vld [vmem:[%s6045_s5 + $0x8] sm:$0xff] }
  0x16   :  { %3894 = vmatprep.subr.bf16.mxu0 %v3893_v10  ;;  %v509_v2 = vld [vmem:[%s6045_s5] sm:$0xff]  ;;  %v511_v5 = vld [vmem:[%s6045_s5 + $0x10] sm:$0xff]  ;;  %v528_v6 = vld [vmem:[%s6045_s5 + $0x98] sm:$0xff] }
  0x17   :  { %3896 = vmatpush3.bf16.msra.mxu0 %v3893_v10  ;;  %3914 = vmatpush3.bf16.msk.msra.mxu1 %vm3910_vm4, %v3909_v21  ;;  %v529_v7 = vld [vmem:[%s6045_s5 + $0xa0] sm:$0xff]  ;;  %v512_v8 = vld [vmem:[%s6045_s5 + $0x18] sm:$0xff]  ;;  %v530_v10 = vld [vmem:[%s6045_s5 + $0xa8] sm:$0xff] }
  0x18   :  { %3898 = vmatprep.subr.bf16.mxu0 %v3897_v14  ;;  %3916 = vmatprep.subr.bf16.mxu1 %v3915_v60  ;;  %v513_v9 = vld [vmem:[%s6045_s5 + $0x20] sm:$0xff]  ;;  %v531_v11 = vld [vmem:[%s6045_s5 + $0xb0] sm:$0xff]  ;;  %v514_v12 = vld [vmem:[%s6045_s5 + $0x28] sm:$0xff] }
  0x19   :  { %v515_v13 = vld [vmem:[%s6045_s5 + $0x30] sm:$0xff]  ;;  %v533_v15 = vld [vmem:[%s6045_s5 + $0xc0] sm:$0xff]  ;;  %v516_v16 = vld [vmem:[%s6045_s5 + $0x38] sm:$0xff] }
  0x1a   :  { %v517_v17 = vld [vmem:[%s6045_s5 + $0x40] sm:$0xff]  ;;  %v534_v18 = vld [vmem:[%s6045_s5 + $0xc8] sm:$0xff]  ;;  %v535_v19 = vld [vmem:[%s6045_s5 + $0xd0] sm:$0xff] }
  0x1b   :  { %3900 = vmatpush3.bf16.msra.mxu0 %v3897_v14  ;;  %v532_v14 = vld [vmem:[%s6045_s5 + $0xb8] sm:$0xff]  ;;  %v518_v20 = vld [vmem:[%s6045_s5 + $0x48] sm:$0xff]  ;;  %v519_v21 = vld [vmem:[%s6045_s5 + $0x50] sm:$0xff] }
  0x1c   :  { %3902 = vmatprep.subr.bf16.mxu0 %v3901_v22  ;;  %v521_v25 = vld [vmem:[%s6045_s5 + $0x60] sm:$0xff] }
  0x1f   :  { %3904 = vmatpush3.bf16.msra.mxu0 %v3901_v22  ;;  %v536_v22 = vld [vmem:[%s6045_s5 + $0xd8] sm:$0xff] }
  0x20   :  { %3744 = vmatprep.subr.msk.mxu0 %vm221_vm5, %v124_v23 }
  0x23   :  { %3745 = vmatpush3.msk.msra.mxu0 %vm221_vm5, %v124_v23  ;;  %v537_v23 = vld [vmem:[%s6045_s5 + $0xe0] sm:$0xff] }
  0x24   :  { %3749 = vmatprep.subr.msk.mxu0 %vm135_vm0, %v306_v24 }
  0x8c   :  { %v94_v28 = vpop.permute.xlu0 %93 }
  0x8d   :  { %vm98_vm8 = vcmp.eq.s32.totalorder %v94_v28, %v91_v26  ;;  %v522_v28 = vld [vmem:[%s6045_s5 + $0x68] sm:$0xff] }
  0x8e   :  { %v3210_v30 = vsel %vm98_vm8, 1.0, %v4643_v29 }
  0x8f   :  { %3746 = vmatprep.mubr.msk.f32.mxu0 %vm214_vm6, %v3210_v30  ;;  %v540_v30 = vld [vmem:[%s6045_s5 + $0xf8] sm:$0xff] }
  0x90   :  { %v108_v27 = vpop.permute.xlu1 %107  ;;  %v97_v33 = vpop.permute.xlu0 %96 }
  0x91   :  { %vm112_vm9 = vcmp.eq.s32.totalorder %v108_v27, %v91_v26  ;;  %vm99_vm11 = vcmp.eq.s32.totalorder %v97_v33, %v91_v26  ;;  %v539_v27 = vld [vmem:[%s6045_s5 + $0xf0] sm:$0xff] }
  0x92   :  { %v3212_v31 = vsel %vm112_vm9, 1.0, %v4643_v29  ;;  %v3211_v36 = vsel %vm99_vm11, 1.0, %v4643_v29 }
  0x93   :  { %3762 = vmatprep.mubr.msk.f32.mxu1 %vm391_vm7, %v3212_v31  ;;  %3747 = vmatmul.mubr.msk.f32.vlgmr.msra.gmra.mrb[0].mxu0 %vm214_vm6, %v3211_v36  ;;  %v524_v31 = vld [vmem:[%s6045_s5 + $0x78] sm:$0xff] }
  0x94   :  { %v111_v32 = vpop.permute.xlu1 %110  ;;  %3750 = vmatpush3.msk.msra.mxu0 %vm135_vm0, %v306_v24  ;;  %3751 = vmatprep.mubr.msk.f32.mxu0 %vm128_vm1, %v304_v34  ;;  %v520_v24 = vld [vmem:[%s6045_s5 + $0x58] sm:$0xff]  ;;  %vm3154_vm0 = vcmask 254976  }
  0x95   :  { %vm113_vm10 = vcmp.eq.s32.totalorder %v111_v32, %v91_v26  ;;  %v538_v26 = vld [vmem:[%s6045_s5 + $0xe8] sm:$0xff] }
  0x96   :  { %v3213_v35 = vsel %vm113_vm10, 1.0, %v4643_v29  ;;  %v523_v29 = vld [vmem:[%s6045_s5 + $0x70] sm:$0xff] }
  0x97   :  { %3763 = vmatmul.mubr.msk.f32.vlgmr.msra.gmra.mrb[0].mxu1 %vm391_vm7, %v3213_v35  ;;  %3752 = vmatmul.mubr.msk.f32.vlgmr.msra.gmra.mrb[2].mxu0 %vm128_vm1, %v305_v37  ;;  %vm3204_vm1 = vcmask 1024  }
  0x98   :  { %3918 = vmatpush3.bf16.msra.mxu1 %v3915_v60 }
  0x99   :  { %3920 = vmatprep.subr.bf16.mxu1 %v3919_v63 }
  0x9c   :  { %3922 = vmatpush3.bf16.msra.mxu1 %v3919_v63 }
 0x166   :  { %v4862_v38 = vpop.f32.mrb[0].mxu0 }
 0x167   :  { %v4864_v40 = vpop.f32.mrb[1].mxu0  ;;  %v558_v52 = vsel %vm551_vm12, %v4862_v38, 0.0  ;;  %v566_v53 = vmul.f32 %v4862_v38, %v4862_v38 }
 0x168   :  { %v552_v42 = vsel %vm551_vm12, %v4864_v40, 0.0  ;;  %v564_v43 = vmul.f32 %v4864_v40, %v4864_v40 }
 0x169   :  { %553 = vadd.xlane.f32.xlu0 %v552_v42  ;;  %v574_v56 = vsel %vm551_vm12, %v566_v53, 0.0 }
 0x16a   :  { %v3764_v39 = vpop.f32.mrb[0].mxu1  ;;  %v3753_v44 = vpop.f32.mrb[2].mxu0  ;;  %v568_v48 = vsel %vm551_vm12, %v564_v43, 0.0 }
 0x16b   :  { %v468_v41 = vpop.f32.mrb[1].mxu1  ;;  %v4870_v45 = vadd.f32 %v3764_v39, %v3753_v44  ;;  %v382_v46 = vpop.f32.mrb[3].mxu0 }
 0x16c   :  { %v4872_v47 = vadd.f32 %v468_v41, %v382_v46 }
 0x16d   :  { %569 = vadd.xlane.f32.xlu0 %v568_v48  ;;  %v561_v54 = vsel %vm551_vm12, %v4870_v45, 0.0  ;;  %v567_v55 = vmul.f32 %v4870_v45, %v4870_v45 }
 0x16e   :  { %v555_v49 = vsel %vm551_vm12, %v4872_v47, 0.0  ;;  %v565_v50 = vmul.f32 %v4872_v47, %v4872_v47 }
 0x16f   :  { %556 = vadd.xlane.f32.xlu1 %v555_v49  ;;  %v577_v57 = vsel %vm551_vm12, %v567_v55, 0.0 }
 0x170   :  { %v571_v51 = vsel %vm551_vm12, %v565_v50, 0.0 }
 0x171   :  { %572 = vadd.xlane.f32.xlu0 %v571_v51 }
 0x173   :  { %559 = vadd.xlane.f32.xlu1 %v558_v52 }
 0x175   :  { %562 = vadd.xlane.f32.xlu0 %v561_v54 }
 0x177   :  { %575 = vadd.xlane.f32.xlu1 %v574_v56 }
 0x179   :  { %578 = vadd.xlane.f32.xlu0 %v577_v57 }
 0x188   :  { %808 = vrot.lane.b32.xlu1 %v525_v0, %s4644_s30 }
 0x18c   :  { %776 = vrot.lane.b32.xlu1 %v509_v2, %s4644_s30  ;;  %v3226_v2 = vld [vmem:[%s6046_s6] ss:$0 sm:$0xff] }
 0x18f   :  { %810 = vrot.lane.b32.xlu0 %v526_v1, %s4644_s30 }
 0x190   :  { %778 = vrot.lane.b32.xlu1 %v510_v4, %s4644_s30  ;;  %v3227_v4 = vld [vmem:[%s6047_s1] ss:$0 sm:$0xff] }
 0x193   :  { %812 = vrot.lane.b32.xlu0 %v527_v3, %s4644_s30 }
 0x194   :  { %814 = vrot.lane.b32.xlu1 %v528_v6, %s4644_s30 }
 0x197   :  { %780 = vrot.lane.b32.xlu0 %v511_v5, %s4644_s30 }
 0x198   :  { %782 = vrot.lane.b32.xlu1 %v512_v8, %s4644_s30 }
 0x19b   :  { %816 = vrot.lane.b32.xlu0 %v529_v7, %s4644_s30 }
 0x19c   :  { %818 = vrot.lane.b32.xlu1 %v530_v10, %s4644_s30 }
 0x19f   :  { %784 = vrot.lane.b32.xlu0 %v513_v9, %s4644_s30 }
 0x1a0   :  { %786 = vrot.lane.b32.xlu1 %v514_v12, %s4644_s30 }
 0x1a3   :  { %820 = vrot.lane.b32.xlu0 %v531_v11, %s4644_s30 }
 0x1a4   :  { %822 = vrot.lane.b32.xlu1 %v532_v14, %s4644_s30 }
 0x1a7   :  { %788 = vrot.lane.b32.xlu0 %v515_v13, %s4644_s30 }
 0x1a8   :  { %790 = vrot.lane.b32.xlu1 %v516_v16, %s4644_s30 }
 0x1ab   :  { %824 = vrot.lane.b32.xlu0 %v533_v15, %s4644_s30 }
 0x1ac   :  { %826 = vrot.lane.b32.xlu1 %v534_v18, %s4644_s30 }
 0x1af   :  { %792 = vrot.lane.b32.xlu0 %v517_v17, %s4644_s30 }
 0x1b0   :  { %794 = vrot.lane.b32.xlu1 %v518_v20, %s4644_s30 }
 0x1b3   :  { %828 = vrot.lane.b32.xlu0 %v535_v19, %s4644_s30 }
 0x1b4   :  { %830 = vrot.lane.b32.xlu1 %v536_v22, %s4644_s30 }
 0x1b7   :  { %796 = vrot.lane.b32.xlu0 %v519_v21, %s4644_s30 }
 0x1b8   :  { %798 = vrot.lane.b32.xlu1 %v520_v24, %s4644_s30 }
 0x1bb   :  { %832 = vrot.lane.b32.xlu0 %v537_v23, %s4644_s30 }
 0x1bc   :  { %834 = vrot.lane.b32.xlu1 %v538_v26, %s4644_s30 }
 0x1bf   :  { %800 = vrot.lane.b32.xlu0 %v521_v25, %s4644_s30 }
 0x1c0   :  { %802 = vrot.lane.b32.xlu1 %v522_v28, %s4644_s30 }
 0x1c3   :  { %836 = vrot.lane.b32.xlu0 %v539_v27, %s4644_s30 }
 0x1c4   :  { %838 = vrot.lane.b32.xlu1 %v540_v30, %s4644_s30 }
 0x1c7   :  { %804 = vrot.lane.b32.xlu0 %v523_v29, %s4644_s30 }
 0x1c8   :  { %806 = vrot.lane.b32.xlu1 %v524_v31, %s4644_s30 }
 0x1f6   :  { %v554_v32 = vpop.xlane.xlu0 %553 }
 0x1f7   :  { %v580_v33 = vmul.f32 0.03125, %v554_v32 }
 0x1f9   :  { %v588_v35 = vmul.f32 %v580_v33, %v580_v33  ;;  %v596_v63 = vsub.f32 %v4864_v40, %v580_v33 }
 0x1fa   :  { %v570_v34 = vpop.xlane.xlu0 %569 }
 0x1fb   :  { %v584_v36 = vmul.f32 0.03125, %v570_v34 }
 0x1fc   :  { %v557_v37 = vpop.xlane.xlu1 %556 }
 0x1fd   :  { %v592_v39 = vsub.f32 %v584_v36, %v588_v35  ;;  %v581_v41 = vmul.f32 0.03125, %v557_v37 }
 0x1fe   :  { %v573_v42 = vpop.xlane.xlu0 %572 }
 0x1ff   :  { %v600_v43 = vadd.f32 1e-05, %v592_v39  ;;  %v589_v44 = vmul.f32 %v581_v41, %v581_v41  ;;  %v585_v46 = vmul.f32 0.03125, %v573_v42  ;;  %v597_v5 = vsub.f32 %v4872_v47, %v581_v41 }
 0x200   :  { %v560_v48 = vpop.xlane.xlu1 %559 }
 0x201   :  { %4551 = vrsqrt.f32 %v600_v43  ;;  %v593_v49 = vsub.f32 %v585_v46, %v589_v44  ;;  %v582_v50 = vmul.f32 0.03125, %v560_v48 }
 0x202   :  { %v563_v51 = vpop.xlane.xlu0 %562 }
 0x203   :  { %v601_v52 = vadd.f32 1e-05, %v593_v49  ;;  %v583_v53 = vmul.f32 0.03125, %v563_v51  ;;  %v590_v55 = vmul.f32 %v582_v50, %v582_v50  ;;  %v598_v11 = vsub.f32 %v4862_v38, %v582_v50 }
 0x204   :  { %v576_v54 = vpop.xlane.xlu1 %575 }
 0x205   :  { %4553 = vrsqrt.f32 %v601_v52  ;;  %v586_v56 = vmul.f32 0.03125, %v576_v54  ;;  %v591_v58 = vmul.f32 %v583_v53, %v583_v53  ;;  %v599_v14 = vsub.f32 %v4870_v45, %v583_v53  ;;  %v3228_v54 = vld [vmem:[%s5986_s14] ss:$0 sm:$0xff] }
 0x206   :  { %v579_v57 = vpop.xlane.xlu0 %578 }
 0x207   :  { %v594_v59 = vsub.f32 %v586_v56, %v590_v55  ;;  %v587_v60 = vmul.f32 0.03125, %v579_v57 }
 0x208   :  { %v5044_v22 = vpop.permute.xlu1 %808 }
 0x209   :  { %v602_v61 = vadd.f32 1e-05, %v594_v59  ;;  %v595_v62 = vsub.f32 %v587_v60, %v591_v58 }
 0x20a   :  { %v5050_v25 = vpop.permute.xlu0 %810 }
 0x20b   :  { %v4552_v0 = vpop.eup %4551  ;;  %4555 = vrsqrt.f32 %v602_v61  ;;  %v603_v1 = vadd.f32 1e-05, %v595_v62 }
 0x20c   :  { %v608_v3 = vmul.f32 %v4552_v0, %v596_v63  ;;  %v5046_v23 = vpop.permute.xlu1 %776 }
 0x20d   :  { %4557 = vrsqrt.f32 %v603_v1 }
 0x20e   :  { %v618_v6 = vmul.f32 %v3226_v2, %v608_v3  ;;  %v5054_v27 = vpop.permute.xlu0 %812 }
 0x20f   :  { %v4554_v7 = vpop.eup %4553 }
 0x210   :  { %v609_v8 = vmul.f32 %v4554_v7, %v597_v5  ;;  %v628_v9 = vadd.f32 %v3227_v4, %v618_v6  ;;  %v5048_v24 = vpop.permute.xlu1 %778 }
 0x212   :  { %3773 = vmatprep.mubr.msk.f32.mxu1 %vm551_vm12, %v628_v9  ;;  %v619_v10 = vmul.f32 %v3226_v2, %v609_v8  ;;  %v5058_v29 = vpop.permute.xlu0 %780 }
 0x214   :  { %v629_v12 = vadd.f32 %v3227_v4, %v619_v10  ;;  %v5052_v26 = vpop.permute.xlu1 %814 }
 0x215   :  { %v4556_v13 = vpop.eup %4555 }
 0x216   :  { %3774 = vmatmul.mubr.msk.f32.vlgmr.msra.gmra.mrb[2].mxu1 %vm551_vm12, %v629_v12  ;;  %v610_v15 = vmul.f32 %v4556_v13, %v598_v11  ;;  %v5062_v31 = vpop.permute.xlu0 %816 }
 0x217   :  { %v4558_v16 = vpop.eup %4557 }
 0x218   :  { %v620_v17 = vmul.f32 %v3226_v2, %v610_v15  ;;  %v611_v18 = vmul.f32 %v4558_v16, %v599_v14  ;;  %v5056_v28 = vpop.permute.xlu1 %782 }
 0x21a   :  { %v630_v19 = vadd.f32 %v3227_v4, %v620_v17  ;;  %v621_v20 = vmul.f32 %v3226_v2, %v611_v18  ;;  %v5066_v33 = vpop.permute.xlu0 %784 }
 0x21c   :  { %3776 = vmatprep.mubr.msk.f32.mxu1 %vm551_vm12, %v630_v19  ;;  %v631_v21 = vadd.f32 %v3227_v4, %v621_v20  ;;  %v5060_v30 = vpop.permute.xlu1 %818 }
 0x21e   :  { %3777 = vmatmul.mubr.msk.f32.gmra.mrb[4].mxu1 %vm551_vm12, %v631_v21  ;;  %v5070_v35 = vpop.permute.xlu0 %820 }
 0x21f   :  { %6048 = vst [vmem:[#allocation3_spill] sm:$0xff] %v5070_v35 }
 0x220   :  { %v5064_v32 = vpop.permute.xlu1 %786 }
 0x222   :  { %v5074_v37 = vpop.permute.xlu0 %788 }
 0x223   :  { %6049 = vst [vmem:[#allocation4_spill] sm:$0xff] %v5074_v37 }
 0x224   :  { %v5068_v34 = vpop.permute.xlu1 %822 }
 0x226   :  { %v5078_v41 = vpop.permute.xlu0 %824 }
 0x228   :  { %v5072_v36 = vpop.permute.xlu1 %790 }
 0x22a   :  { %v5082_v43 = vpop.permute.xlu0 %792 }
 0x22c   :  { %v5076_v39 = vpop.permute.xlu1 %826 }
 0x22e   :  { %v5086_v46 = vpop.permute.xlu0 %828 }
 0x230   :  { %v5080_v42 = vpop.permute.xlu1 %794 }
 0x232   :  { %v5090_v49 = vpop.permute.xlu0 %796 }
 0x234   :  { %v5084_v44 = vpop.permute.xlu1 %830 }
 0x236   :  { %v5094_v51 = vpop.permute.xlu0 %832 }
 0x238   :  { %v5088_v48 = vpop.permute.xlu1 %798 }
 0x23a   :  { %v5098_v53 = vpop.permute.xlu0 %800 }
 0x23c   :  { %v5092_v50 = vpop.permute.xlu1 %834 }
 0x23e   :  { %v5109_v61 = vpop.permute.xlu0 %836 }
 0x240   :  { %v5096_v52 = vpop.permute.xlu1 %802 }
 0x244   :  { %v5105_v59 = vpop.permute.xlu1 %838 }
 0x248   :  { %v5137_v18 = vpop.permute.xlu1 %806 }
 0x249   :  { %6050 = vst [vmem:[#allocation5_spill] sm:$0xff] %v5137_v18 }
 0x2e9   :  { %v3775_v55 = vpop.f32.mrb[2].mxu1 }
 0x2ea   :  { %v5103_v56 = vadd.f32 %v3775_v55, %v3228_v54  ;;  %v721_v57 = vpop.f32.mrb[3].mxu1 }
 0x2eb   :  { %v722_v58 = vadd.f32 %v3228_v54, %v721_v57 }
 0x2ec   :  { %v885_v60 = vmul.f32 %v5096_v52, %v5103_v56  ;;  %v889_v62 = vmul.f32 %v5050_v25, %v5103_v56  ;;  %v873_v63 = vmul.f32 %v5048_v24, %v5103_v56  ;;  %v893_v0 = vmul.f32 %v5060_v30, %v5103_v56 }
 0x2ed   :  { %v884_v1 = vmul.f32 %v5098_v53, %v722_v58  ;;  %v5118_v2 = vmul.f32 0.5, %v722_v58  ;;  %v888_v3 = vmul.f32 %v5044_v22, %v722_v58  ;;  %v872_v4 = vmul.f32 %v5046_v23, %v722_v58 }
 0x2ee   :  { %v892_v5 = vmul.f32 %v5062_v31, %v722_v58  ;;  %v876_v6 = vmul.f32 %v5066_v33, %v722_v58  ;;  %v877_v7 = vmul.f32 %v5064_v32, %v5103_v56  ;;  %v896_v8 = vmul.f32 %v5078_v41, %v722_v58 }
 0x2ef   :  { %3439 = vmatprep.mubr.msk.f32.mxu0 %vm551_vm12, %v5118_v2  ;;  %v4231_v9 = vpack.i.bf16 %v889_v62, %v888_v3  ;;  %v4236_v10 = vpack.i.bf16 %v873_v63, %v872_v4  ;;  %v897_v11 = vmul.f32 %v5076_v39, %v5103_v56  ;;  %v880_v12 = vmul.f32 %v5082_v43, %v722_v58  ;;  %v5143_v62 = vpop.permute.xlu0 %804 }
 0x2f0   :  { %v4251_v13 = vpack.i.bf16 %v893_v0, %v892_v5  ;;  %v4256_v14 = vpack.i.bf16 %v877_v7, %v876_v6  ;;  %v881_v15 = vmul.f32 %v5080_v42, %v5103_v56  ;;  %v900_v16 = vmul.f32 %v5094_v51, %v722_v58  ;;  %6051 = vst [vmem:[#allocation6_spill] sm:$0xff] %v5143_v62 }
 0x2f1   :  { %v3778_v17 = vpop.f32.mrb[4].mxu1  ;;  %4232 = vrot.lane.b32.xlu0 %v4231_v9, %s4645_s3  ;;  %4237 = vrot.lane.b32.xlu1 %v4236_v10, %s4645_s3  ;;  %v4271_v19 = vpack.i.bf16 %v897_v11, %v896_v8  ;;  %v901_v20 = vmul.f32 %v5092_v50, %v5103_v56  ;;  %v4296_v21 = vpack.i.bf16 %v885_v60, %v884_v1 }
 0x2f2   :  { %v5141_v55 = vadd.f32 %v3778_v17, %v3228_v54  ;;  %v731_v57 = vpop.f32.mrb[5].mxu1  ;;  %v4276_v63 = vpack.i.bf16 %v881_v15, %v880_v12 }
 0x2f3   :  { %v5145_v58 = vadd.f32 %v3228_v54, %v731_v57  ;;  %v4291_v0 = vpack.i.bf16 %v901_v20, %v900_v16 }
 0x2f4   :  { %v887_v3 = vmul.f32 %v5137_v18, %v5141_v55  ;;  %v891_v4 = vmul.f32 %v5052_v26, %v5141_v55  ;;  %v875_v5 = vmul.f32 %v5056_v28, %v5141_v55  ;;  %v895_v60 = vmul.f32 %v5068_v34, %v5141_v55 }
 0x2f5   :  { %v886_v1 = vmul.f32 %v5143_v62, %v5145_v58  ;;  %v890_v54 = vmul.f32 %v5054_v27, %v5145_v58  ;;  %v874_v6 = vmul.f32 %v5058_v29, %v5145_v58  ;;  %v894_v7 = vmul.f32 %v5070_v35, %v5145_v58 }
 0x2f6   :  { %v878_v8 = vmul.f32 %v5074_v37, %v5145_v58  ;;  %v879_v11 = vmul.f32 %v5072_v36, %v5141_v55  ;;  %v898_v12 = vmul.f32 %v5086_v46, %v5145_v58  ;;  %v899_v15 = vmul.f32 %v5084_v44, %v5141_v55 }
 0x2f7   :  { %v4241_v16 = vpack.i.bf16 %v891_v4, %v890_v54  ;;  %v4246_v17 = vpack.i.bf16 %v875_v5, %v874_v6  ;;  %v4261_v20 = vpack.i.bf16 %v895_v60, %v894_v7  ;;  %v882_v57 = vmul.f32 %v5090_v49, %v5145_v58 }
 0x2f8   :  { %v4266_v18 = vpack.i.bf16 %v879_v11, %v878_v8  ;;  %v4281_v62 = vpack.i.bf16 %v899_v15, %v898_v12  ;;  %v883_v37 = vmul.f32 %v5088_v48, %v5141_v55  ;;  %v902_v35 = vmul.f32 %v5109_v61, %v5145_v58 }
 0x2f9   :  { %4242 = vrot.lane.b32.xlu0 %v4241_v16, %s4645_s3  ;;  %4247 = vrot.lane.b32.xlu1 %v4246_v17, %s4645_s3  ;;  %v903_v4 = vmul.f32 %v5105_v59, %v5141_v55  ;;  %v5181_v5 = vpack.i.bf16 %v887_v3, %v886_v1 }
 0x2fa   :  { %v4286_v60 = vpack.i.bf16 %v883_v37, %v882_v57 }
 0x2fb   :  { %v5183_v54 = vpack.i.bf16 %v903_v4, %v902_v35 }
 0x2fd   :  { %4252 = vrot.lane.b32.xlu0 %v4251_v13, %s4645_s3  ;;  %4257 = vrot.lane.b32.xlu1 %v4256_v14, %s4645_s3 }
 0x301   :  { %4262 = vrot.lane.b32.xlu0 %v4261_v20, %s4645_s3  ;;  %4267 = vrot.lane.b32.xlu1 %v4266_v18, %s4645_s3 }
 0x305   :  { %4272 = vrot.lane.b32.xlu0 %v4271_v19, %s4645_s3  ;;  %4277 = vrot.lane.b32.xlu1 %v4276_v63, %s4645_s3 }
 0x309   :  { %4282 = vrot.lane.b32.xlu0 %v4281_v62, %s4645_s3  ;;  %4287 = vrot.lane.b32.xlu1 %v4286_v60, %s4645_s3 }
 0x30d   :  { %4292 = vrot.lane.b32.xlu0 %v4291_v0, %s4645_s3  ;;  %4297 = vrot.lane.b32.xlu1 %v4296_v21, %s4645_s3 }
 0x311   :  { %4302 = vrot.lane.b32.xlu0 %v5183_v54, %s4645_s3  ;;  %4307 = vrot.lane.b32.xlu1 %v5181_v5, %s4645_s3 }
 0x315   :  { %4312 = vrot.lane.b32.xlu0 %v4231_v9, %s4646_s2  ;;  %4317 = vrot.lane.b32.xlu1 %v4236_v10, %s4646_s2 }
 0x319   :  { %4322 = vrot.lane.b32.xlu0 %v4251_v13, %s4646_s2  ;;  %4347 = vrot.lane.b32.xlu1 %v4296_v21, %s4646_s2 }
 0x31d   :  { %4327 = vrot.lane.b32.xlu0 %v4256_v14, %s4646_s2 }
 0x321   :  { %4332 = vrot.lane.b32.xlu0 %v4271_v19, %s4646_s2 }
 0x325   :  { %4337 = vrot.lane.b32.xlu0 %v4276_v63, %s4646_s2 }
 0x329   :  { %4342 = vrot.lane.b32.xlu0 %v4291_v0, %s4646_s2 }
 0x32d   :  { %4352 = vrot.lane.b32.xlu0 %v4241_v16, %s4646_s2 }
 0x331   :  { %4357 = vrot.lane.b32.xlu0 %v4246_v17, %s4646_s2 }
 0x335   :  { %4362 = vrot.lane.b32.xlu0 %v4261_v20, %s4646_s2 }
 0x339   :  { %4367 = vrot.lane.b32.xlu0 %v4266_v18, %s4646_s2 }
 0x33d   :  { %4372 = vrot.lane.b32.xlu0 %v4281_v62, %s4646_s2 }
 0x341   :  { %4377 = vrot.lane.b32.xlu0 %v4286_v60, %s4646_s2 }
 0x363   :  { %v4233_v35 = vpop.permute.xlu0 %4232  ;;  %v4238_v37 = vpop.permute.xlu1 %4237 }
 0x364   :  { %v4235_v9 = vunpack.i.h.bf16 %v4233_v35  ;;  %v4234_v10 = vunpack.i.l.bf16 %v4233_v35  ;;  %v4240_v13 = vunpack.i.h.bf16 %v4238_v37  ;;  %v4239_v14 = vunpack.i.l.bf16 %v4238_v37 }
 0x366   :  { %v3923_v21 = vpack.c.bf16 %v4235_v9, %v4234_v10  ;;  %v3926_v63 = vpack.c.bf16 %v4240_v13, %v4239_v14 }
 0x368   :  { %3925 = vmatprep.subr.msk.bf16.mxu0 %vm5215_vm13, %v3923_v21 }
 0x369   :  { %3928 = vmatpush3.bf16.xpose.msk.msra.mxu0 %vm5215_vm13, %v3926_v63 }
 0x36b   :  { %v4243_v18 = vpop.permute.xlu0 %4242  ;;  %v4248_v62 = vpop.permute.xlu1 %4247 }
 0x36c   :  { %v4245_v0 = vunpack.i.h.bf16 %v4243_v18  ;;  %v4244_v3 = vunpack.i.l.bf16 %v4243_v18  ;;  %v4250_v1 = vunpack.i.h.bf16 %v4248_v62  ;;  %v4249_v6 = vunpack.i.l.bf16 %v4248_v62 }
 0x36e   :  { %v3929_v7 = vpack.c.bf16 %v4245_v0, %v4244_v3  ;;  %v3932_v8 = vpack.c.bf16 %v4250_v1, %v4249_v6 }
 0x36f   :  { %v4253_v11 = vpop.permute.xlu0 %4252  ;;  %v4258_v12 = vpop.permute.xlu1 %4257 }
 0x370   :  { %v4255_v15 = vunpack.i.h.bf16 %v4253_v11  ;;  %v4254_v16 = vunpack.i.l.bf16 %v4253_v11  ;;  %3931 = vmatprep.subr.msk.bf16.mxu0 %vm5215_vm13, %v3929_v7  ;;  %v4260_v20 = vunpack.i.h.bf16 %v4258_v12  ;;  %v4259_v57 = vunpack.i.l.bf16 %v4258_v12 }
 0x371   :  { %3934 = vmatpush3.bf16.xpose.msk.msra.mxu0 %vm5215_vm13, %v3932_v8 }
 0x372   :  { %v3935_v17 = vpack.c.bf16 %v4255_v15, %v4254_v16  ;;  %v3938_v9 = vpack.c.bf16 %v4260_v20, %v4259_v57 }
 0x373   :  { %v4263_v4 = vpop.permute.xlu0 %4262  ;;  %v4268_v60 = vpop.permute.xlu1 %4267 }
 0x374   :  { %v4265_v35 = vunpack.i.h.bf16 %v4263_v4  ;;  %v4264_v37 = vunpack.i.l.bf16 %v4263_v4  ;;  %3937 = vmatprep.subr.msk.bf16.mxu0 %vm5215_vm13, %v3935_v17  ;;  %v4270_v21 = vunpack.i.h.bf16 %v4268_v60  ;;  %v4269_v63 = vunpack.i.l.bf16 %v4268_v60 }
 0x376   :  { %v3941_v14 = vpack.c.bf16 %v4265_v35, %v4264_v37  ;;  %v3944_v1 = vpack.c.bf16 %v4270_v21, %v4269_v63 }
 0x377   :  { %v4273_v10 = vpop.permute.xlu0 %4272  ;;  %v4278_v13 = vpop.permute.xlu1 %4277 }
 0x378   :  { %v4275_v0 = vunpack.i.h.bf16 %v4273_v10  ;;  %v4274_v3 = vunpack.i.l.bf16 %v4273_v10  ;;  %v4280_v11 = vunpack.i.h.bf16 %v4278_v13  ;;  %v4279_v12 = vunpack.i.l.bf16 %v4278_v13 }
 0x379   :  { %3940 = vmatpush3.bf16.xpose.msk.msra.mxu0 %vm5215_vm13, %v3938_v9 }
 0x37a   :  { %3943 = vmatprep.subr.msk.bf16.mxu0 %vm5215_vm13, %v3941_v14  ;;  %v3947_v8 = vpack.c.bf16 %v4275_v0, %v4274_v3  ;;  %v3950_v57 = vpack.c.bf16 %v4280_v11, %v4279_v12 }
 0x37b   :  { %v4283_v18 = vpop.permute.xlu0 %4282  ;;  %v4288_v62 = vpop.permute.xlu1 %4287 }
 0x37c   :  { %v4285_v15 = vunpack.i.h.bf16 %v4283_v18  ;;  %v4284_v16 = vunpack.i.l.bf16 %v4283_v18  ;;  %v4290_v13 = vunpack.i.h.bf16 %v4288_v62  ;;  %v4289_v18 = vunpack.i.l.bf16 %v4288_v62 }
 0x37e   :  { %v3953_v4 = vpack.c.bf16 %v4285_v15, %v4284_v16 }
 0x37f   :  { %v4293_v6 = vpop.permute.xlu0 %4292  ;;  %v4298_v7 = vpop.permute.xlu1 %4297 }
 0x380   :  { %v4295_v3 = vunpack.i.h.bf16 %v4293_v6  ;;  %v4300_v15 = vunpack.i.h.bf16 %v4298_v7  ;;  %v4299_v16 = vunpack.i.l.bf16 %v4298_v7 }
 0x381   :  { %3946 = vmatpush3.bf16.xpose.msk.msra.mxu0 %vm5215_vm13, %v3944_v1  ;;  %v4294_v1 = vunpack.i.l.bf16 %v4293_v6 }
 0x382   :  { %3949 = vmatprep.subr.msk.bf16.mxu0 %vm5215_vm13, %v3947_v8  ;;  %v3956_v8 = vpack.c.bf16 %v4290_v13, %v4289_v18  ;;  %v3962_v62 = vpack.c.bf16 %v4300_v15, %v4299_v16 }
 0x383   :  { %v4303_v17 = vpop.permute.xlu0 %4302  ;;  %v4308_v20 = vpop.permute.xlu1 %4307  ;;  %v3959_v12 = vpack.c.bf16 %v4295_v3, %v4294_v1 }
 0x384   :  { %v4310_v6 = vunpack.i.h.bf16 %v4308_v20 }
 0x387   :  { %v4313_v60 = vpop.permute.xlu0 %4312  ;;  %v4318_v35 = vpop.permute.xlu1 %4317 }
 0x388   :  { %v4315_v37 = vunpack.i.h.bf16 %v4313_v60  ;;  %v4314_v9 = vunpack.i.l.bf16 %v4313_v60  ;;  %v4320_v10 = vunpack.i.h.bf16 %v4318_v35  ;;  %v4319_v14 = vunpack.i.l.bf16 %v4318_v35 }
 0x389   :  { %3952 = vmatpush3.bf16.xpose.msk.msra.mxu0 %vm5215_vm13, %v3950_v57  ;;  %v4304_v60 = vunpack.i.l.bf16 %v4303_v17 }
 0x38a   :  { %v3971_v21 = vpack.c.bf16 %v4315_v37, %v4314_v9  ;;  %v3973_v63 = vpack.c.bf16 %v4320_v10, %v4319_v14  ;;  %3955 = vmatprep.subr.msk.bf16.mxu0 %vm5215_vm13, %v3953_v4  ;;  %v4305_v4 = vunpack.i.h.bf16 %v4303_v17  ;;  %v4309_v9 = vunpack.i.l.bf16 %v4308_v20 }
 0x38b   :  { %v4323_v0 = vpop.permute.xlu0 %4322 }
 0x38c   :  { %3972 = vmatprep.subr.bf16.mxu1 %v3971_v21  ;;  %v3965_v37 = vpack.c.bf16 %v4305_v4, %v4304_v60  ;;  %v3968_v14 = vpack.c.bf16 %v4310_v6, %v4309_v9  ;;  %v4325_v13 = vunpack.i.h.bf16 %v4323_v0  ;;  %v4324_v18 = vunpack.i.l.bf16 %v4323_v0 }
 0x38d   :  { %3974 = vmatpush3.bf16.msra.mxu1 %v3973_v63  ;;  %v741_v60 = vmul.f32 0.5, %v5103_v56 }
 0x38e   :  { %v3979_v20 = vpack.c.bf16 %v4325_v13, %v4324_v18 }
 0x38f   :  { %v4328_v11 = vpop.permute.xlu0 %4327 }
 0x390   :  { %v4329_v15 = vunpack.i.l.bf16 %v4328_v11 }
 0x391   :  { %3958 = vmatpush3.bf16.xpose.msk.msra.mxu0 %vm5215_vm13, %v3956_v8 }
 0x392   :  { %3961 = vmatprep.subr.msk.bf16.mxu0 %vm5215_vm13, %v3959_v12  ;;  %v4330_v12 = vunpack.i.h.bf16 %v4328_v11  ;;  %v742_v11 = vmul.f32 0.5, %v5145_v58 }
 0x393   :  { %v4333_v57 = vpop.permute.xlu0 %4332 }
 0x394   :  { %v3981_v0 = vpack.c.bf16 %v4330_v12, %v4329_v15  ;;  %v4335_v9 = vunpack.i.h.bf16 %v4333_v57  ;;  %v4348_v12 = vpop.permute.xlu1 %4347 }
 0x397   :  { %v4338_v35 = vpop.permute.xlu0 %4337 }
 0x398   :  { %v4340_v56 = vunpack.i.h.bf16 %v4338_v35 }
 0x399   :  { %3964 = vmatpush3.bf16.xpose.msk.msra.mxu0 %vm5215_vm13, %v3962_v62 }
 0x39a   :  { %3967 = vmatprep.subr.msk.bf16.mxu0 %vm5215_vm13, %v3965_v37 }
 0x39b   :  { %v5249_v10 = vpop.permute.xlu0 %4342 }
 0x39c   :  { %v4345_v15 = vunpack.i.h.bf16 %v5249_v10 }
 0x39f   :  { %v4353_v21 = vpop.permute.xlu0 %4352 }
 0x3a0   :  { %v4355_v63 = vunpack.i.h.bf16 %v4353_v21  ;;  %v4354_v7 = vunpack.i.l.bf16 %v4353_v21 }
 0x3a1   :  { %3970 = vmatpush3.bf16.xpose.msk.msra.mxu0 %vm5215_vm13, %v3968_v14  ;;  %v4334_v14 = vunpack.i.l.bf16 %v4333_v57 }
 0x3a2   :  { %v3975_v17 = vpack.c.bf16 %v4355_v63, %v4354_v7 }
 0x3a3   :  { %v4358_v3 = vpop.permute.xlu0 %4357  ;;  %v3987_v13 = vpack.c.bf16 %v4335_v9, %v4334_v14 }
 0x3a4   :  { %v4360_v1 = vunpack.i.h.bf16 %v4358_v3  ;;  %v4359_v8 = vunpack.i.l.bf16 %v4358_v3  ;;  %3976 = vmatprep.subr.bf16.mxu1 %v3975_v17  ;;  %v743_v3 = vmul.f32 0.5, %v5141_v55  ;;  %v4350_v55 = vunpack.i.h.bf16 %v4348_v12 }
 0x3a6   :  { %v3977_v16 = vpack.c.bf16 %v4360_v1, %v4359_v8 }
 0x3a7   :  { %v4363_v4 = vpop.permute.xlu0 %4362 }
 0x3a8   :  { %v4365_v62 = vunpack.i.h.bf16 %v4363_v4  ;;  %v4364_v37 = vunpack.i.l.bf16 %v4363_v4  ;;  %3440 = vmatmul.mubr.msk.f32.vlgmr.msra.gmra.mrb[4].mxu0 %vm551_vm12, %v5118_v2  ;;  %3978 = vmatpush3.bf16.msra.mxu1 %v3977_v16  ;;  %v4339_v2 = vunpack.i.l.bf16 %v4338_v35  ;;  %v4344_v35 = vunpack.i.l.bf16 %v5249_v10  ;;  %v542_v10 = vld [vmem:[%s5987_s10 + $0x8] sm:$0xff] }
 0x3a9   :  { %3441 = vmatprep.mubr.msk.f32.mxu0 %vm551_vm12, %v741_v60  ;;  %3980 = vmatprep.subr.bf16.mxu1 %v3979_v20 }
 0x3aa   :  { %v3983_v6 = vpack.c.bf16 %v4365_v62, %v4364_v37  ;;  %v3989_v58 = vpack.c.bf16 %v4340_v56, %v4339_v2  ;;  %v3995_v37 = vpack.c.bf16 %v4345_v15, %v4344_v35 }
 0x3ab   :  { %v4368_v21 = vpop.permute.xlu0 %4367 }
 0x3ac   :  { %v4370_v63 = vunpack.i.h.bf16 %v4368_v21  ;;  %v4369_v7 = vunpack.i.l.bf16 %v4368_v21  ;;  %3442 = vmatmul.mubr.msk.f32.gmra.mrb[6].mxu0 %vm551_vm12, %v741_v60  ;;  %3982 = vmatpush3.bf16.msra.mxu1 %v3981_v0  ;;  %v4349_v60 = vunpack.i.l.bf16 %v4348_v12 }
 0x3ad   :  { %3443 = vmatprep.mubr.msk.f32.mxu0 %vm551_vm12, %v742_v11  ;;  %3984 = vmatprep.subr.bf16.mxu1 %v3983_v6  ;;  %v541_v6 = vld [vmem:[%s5987_s10] sm:$0xff] }
 0x3ae   :  { %v3985_v17 = vpack.c.bf16 %v4370_v63, %v4369_v7  ;;  %v3997_v0 = vpack.c.bf16 %v4350_v55, %v4349_v60  ;;  %v543_v63 = vld [vmem:[%s5987_s10 + $0x10] sm:$0xff]  ;;  %v544_v7 = vld [vmem:[%s5987_s10 + $0x18] sm:$0xff] }
 0x3af   :  { %v4373_v18 = vpop.permute.xlu0 %4372  ;;  %v548_v55 = vld [vmem:[%s5987_s10 + $0x38] sm:$0xff] }
 0x3b0   :  { %v4375_v1 = vunpack.i.h.bf16 %v4373_v18  ;;  %v4374_v57 = vunpack.i.l.bf16 %v4373_v18  ;;  %3444 = vmatmul.mubr.msk.f32.gmra.mrb[8].mxu0 %vm551_vm12, %v742_v11  ;;  %3986 = vmatpush3.bf16.msra.mxu1 %v3985_v17 }
 0x3b1   :  { %3445 = vmatprep.mubr.msk.f32.mxu0 %vm551_vm12, %v743_v3  ;;  %3988 = vmatprep.subr.bf16.mxu1 %v3987_v13 }
 0x3b2   :  { %v3991_v8 = vpack.c.bf16 %v4375_v1, %v4374_v57  ;;  %v546_v1 = vld [vmem:[%s5987_s10 + $0x28] sm:$0xff] }
 0x3b3   :  { %v4378_v16 = vpop.permute.xlu0 %4377 }
 0x3b4   :  { %v4380_v20 = vunpack.i.h.bf16 %v4378_v16  ;;  %v4379_v4 = vunpack.i.l.bf16 %v4378_v16  ;;  %3446 = vmatmul.mubr.msk.f32.gmra.mrb[10].mxu0 %vm551_vm12, %v743_v3  ;;  %3990 = vmatpush3.bf16.msra.mxu1 %v3989_v58  ;;  %v545_v3 = vld [vmem:[%s5987_s10 + $0x20] sm:$0xff] }
 0x3b5   :  { %3992 = vmatprep.subr.bf16.mxu1 %v3991_v8 }
 0x3b6   :  { %v3993_v62 = vpack.c.bf16 %v4380_v20, %v4379_v4  ;;  %v547_v4 = vld [vmem:[%s5987_s10 + $0x30] sm:$0xff] }
 0x3b8   :  { %3994 = vmatpush3.bf16.msra.mxu1 %v3993_v62 }
 0x3b9   :  { %3996 = vmatprep.subr.bf16.mxu1 %v3995_v37 }
 0x3bc   :  { %3998 = vmatpush3.bf16.msra.mxu1 %v3997_v0 }
 0x47b   :  { %v1142_v9 = vpop.f32.mrb[4].mxu0 }
 0x47c   :  { %v1143_v14 = vadd.f32 %v1142_v9, %v541_v6  ;;  %v1144_v21 = vpop.f32.mrb[5].mxu0 }
 0x47d   :  { %v1145_v11 = vadd.f32 %v1144_v21, %v542_v10 }
 0x47f   :  { %v1148_v56 = vpop.f32.mrb[6].mxu0  ;;  %v1165_v2 = vmax.f32 %v1143_v14, %v1145_v11 }
 0x480   :  { %v1149_v17 = vadd.f32 %v1148_v56, %v543_v63  ;;  %v1150_v13 = vpop.f32.mrb[7].mxu0 }
 0x481   :  { %v1151_v18 = vadd.f32 %v1150_v13, %v544_v7  ;;  %1166 = vmax.xlane.f32.xlu1 %v1165_v2 }
 0x483   :  { %v1154_v57 = vpop.f32.mrb[8].mxu0  ;;  %v1168_v58 = vmax.f32 %v1149_v17, %v1151_v18 }
 0x484   :  { %v1155_v8 = vadd.f32 %v1154_v57, %v545_v3  ;;  %v1156_v12 = vpop.f32.mrb[9].mxu0 }
 0x485   :  { %v1157_v15 = vadd.f32 %v1156_v12, %v546_v1  ;;  %1169 = vmax.xlane.f32.xlu1 %v1168_v58 }
 0x487   :  { %v1160_v35 = vpop.f32.mrb[10].mxu0  ;;  %v1171_v16 = vmax.f32 %v1155_v8, %v1157_v15 }
 0x488   :  { %v1162_v20 = vpop.f32.mrb[11].mxu0  ;;  %v5294_v60 = vadd.f32 %v1160_v35, %v547_v4  ;;  %v478_v4 = vld [vmem:[%s5988_s8 + $0x8] sm:$0xff] }
 0x489   :  { %1172 = vmax.xlane.f32.xlu0 %v1171_v16  ;;  %v5296_v62 = vadd.f32 %v1162_v20, %v548_v55 }
 0x48b   :  { %v1174_v37 = vmax.f32 %v5294_v60, %v5296_v62 }
 0x496   :  { %4382 = vrot.lane.b32.xlu1 %v5183_v54, %s4646_s2 }
 0x49a   :  { %4387 = vrot.lane.b32.xlu1 %v5181_v5, %s4646_s2 }
 0x4be   :  { %1175 = vmax.xlane.f32.xlu1 %v1174_v37  ;;  %v495_v37 = vld [vmem:[%s5988_s8 + $0x90] sm:$0xff] }
 0x50e   :  { %v1167_v54 = vpop.xlane.xlu1 %1166 }
 0x50f   :  { %v1177_v0 = vsub.f32 %v1143_v14, %v1167_v54  ;;  %v1178_v6 = vsub.f32 %v1145_v11, %v1167_v54  ;;  %v493_v14 = vld [vmem:[%s5988_s8 + $0x80] sm:$0xff]  ;;  %v494_v11 = vld [vmem:[%s5988_s8 + $0x88] sm:$0xff]  ;;  %v496_v54 = vld [vmem:[%s5988_s8 + $0x98] sm:$0xff] }
 0x511   :  { %v1187_v5 = vmul.f32 1.442695, %v1178_v6  ;;  %v1185_v10 = vmul.f32 1.442695, %v1177_v0 }
 0x512   :  { %v1170_v9 = vpop.xlane.xlu1 %1169 }
 0x513   :  { %v1179_v21 = vsub.f32 %v1149_v17, %v1170_v9  ;;  %v1180_v63 = vsub.f32 %v1151_v18, %v1170_v9  ;;  %4559 = vpow2.f32 %v1187_v5  ;;  %v479_v9 = vld [vmem:[%s5988_s8 + $0x10] sm:$0xff] }
 0x514   :  { %4561 = vpow2.f32 %v1185_v10  ;;  %v5328_v10 = vpack.c.bf16 %v496_v54, %v495_v37  ;;  %v485_v37 = vld [vmem:[%s5988_s8 + $0x40] sm:$0xff]  ;;  %v486_v54 = vld [vmem:[%s5988_s8 + $0x48] sm:$0xff] }
 0x515   :  { %v1191_v7 = vmul.f32 1.442695, %v1180_v63  ;;  %v1189_v13 = vmul.f32 1.442695, %v1179_v21  ;;  %v480_v21 = vld [vmem:[%s5988_s8 + $0x18] sm:$0xff]  ;;  %v497_v63 = vld [vmem:[%s5988_s8 + $0xa0] sm:$0xff] }
 0x516   :  { %v1173_v56 = vpop.xlane.xlu0 %1172  ;;  %v4383_v2 = vpop.permute.xlu1 %4382 }
 0x517   :  { %v1181_v3 = vsub.f32 %v1155_v8, %v1173_v56  ;;  %v1182_v1 = vsub.f32 %v1157_v15, %v1173_v56  ;;  %v4385_v57 = vunpack.i.h.bf16 %v4383_v2  ;;  %4563 = vpow2.f32 %v1191_v7  ;;  %v477_v15 = vld [vmem:[%s5988_s8] sm:$0xff]  ;;  %v498_v7 = vld [vmem:[%s5988_s8 + $0xa8] sm:$0xff] }
 0x518   :  { %v4384_v58 = vunpack.i.l.bf16 %v4383_v2  ;;  %4565 = vpow2.f32 %v1189_v13  ;;  %v5306_v8 = vpack.c.bf16 %v494_v11, %v493_v14  ;;  %v5323_v6 = vpack.c.bf16 %v478_v4, %v477_v15  ;;  %v502_v15 = vld [vmem:[%s5988_s8 + $0xc8] sm:$0xff] }
 0x519   :  { %v1195_v12 = vmul.f32 1.442695, %v1182_v1  ;;  %v1193_v35 = vmul.f32 1.442695, %v1181_v3  ;;  %v5347_v2 = vpack.c.bf16 %v480_v21, %v479_v9  ;;  %v5350_v13 = vpack.c.bf16 %v498_v7, %v497_v63  ;;  %v481_v3 = vld [vmem:[%s5988_s8 + $0x20] sm:$0xff]  ;;  %v482_v1 = vld [vmem:[%s5988_s8 + $0x28] sm:$0xff] }
 0x51a   :  { %v3999_v17 = vpack.c.bf16 %v4385_v57, %v4384_v58  ;;  %v4388_v18 = vpop.permute.xlu1 %4387  ;;  %v499_v58 = vld [vmem:[%s5988_s8 + $0xb0] sm:$0xff]  ;;  %v5368_v11 = vpack.c.bf16 %v482_v1, %v481_v3  ;;  %v504_v21 = vld [vmem:[%s5988_s8 + $0xd8] sm:$0xff]  ;;  %v5404_v63 = vpack.c.bf16 %v486_v54, %v485_v37 }
 0x51b   :  { %v4390_v16 = vunpack.i.h.bf16 %v4388_v18  ;;  %v4389_v20 = vunpack.i.l.bf16 %v4388_v18  ;;  %4567 = vpow2.f32 %v1195_v12  ;;  %v500_v12 = vld [vmem:[%s5988_s8 + $0xb8] sm:$0xff]  ;;  %v483_v18 = vld [vmem:[%s5988_s8 + $0x30] sm:$0xff] }
 0x51c   :  { %4000 = vmatprep.subr.bf16.mxu1 %v3999_v17  ;;  %4569 = vpow2.f32 %v1193_v35  ;;  %v5371_v17 = vpack.c.bf16 %v500_v12, %v499_v58  ;;  %v484_v35 = vld [vmem:[%s5988_s8 + $0x38] sm:$0xff]  ;;  %v503_v9 = vld [vmem:[%s5988_s8 + $0xd0] sm:$0xff]  ;;  %6055 = vst [vmem:[#allocation8_spill] sm:$0xff] %v5404_v63  ;;  %v505_v58 = vld [vmem:[%s5988_s8 + $0xe0] sm:$0xff] }
 0x51d   :  { %v4001_v55 = vpack.c.bf16 %v4390_v16, %v4389_v20  ;;  %v5320_v0 = vpop.eup %4559  ;;  %v501_v20 = vld [vmem:[%s5988_s8 + $0xc0] sm:$0xff]  ;;  %v5386_v4 = vpack.c.bf16 %v484_v35, %v483_v18  ;;  %v5407_v7 = vpack.c.bf16 %v504_v21, %v503_v9  ;;  %v487_v3 = vld [vmem:[%s5988_s8 + $0x50] sm:$0xff]  ;;  %v488_v1 = vld [vmem:[%s5988_s8 + $0x58] sm:$0xff] }
 0x51e   :  { %1361 = vmatprep.mubr.f32.mxu1 %v5320_v0  ;;  %v5325_v5 = vpop.eup %4561  ;;  %v506_v12 = vld [vmem:[%s5988_s8 + $0xe8] sm:$0xff]  ;;  %v5422_v18 = vpack.c.bf16 %v488_v1, %v487_v3  ;;  %v507_v37 = vld [vmem:[%s5988_s8 + $0xf0] sm:$0xff]  ;;  %v508_v54 = vld [vmem:[%s5988_s8 + $0xf8] sm:$0xff] }
 0x51f   :  { %4002 = vmatpush3.bf16.msra.mxu1 %v4001_v55  ;;  %v5389_v55 = vpack.c.bf16 %v502_v15, %v501_v20  ;;  %6056 = vst [vmem:[#allocation9_spill] sm:$0xff] %v5407_v7  ;;  %v5425_v35 = vpack.c.bf16 %v506_v12, %v505_v58  ;;  %v489_v20 = vld [vmem:[%s5988_s8 + $0x60] sm:$0xff]  ;;  %v490_v15 = vld [vmem:[%s5988_s8 + $0x68] sm:$0xff]  ;;  %v5443_v21 = vpack.c.bf16 %v508_v54, %v507_v37  ;;  %v491_v3 = vld [vmem:[%s5988_s8 + $0x70] sm:$0xff] }
 0x520   :  { %4004 = vmatprep.subr.bf16.mxu1 %v5306_v8  ;;  %6057 = vst [vmem:[#allocation10_spill] sm:$0xff] %v5422_v18  ;;  %v5440_v9 = vpack.c.bf16 %v490_v15, %v489_v20  ;;  %v492_v1 = vld [vmem:[%s5988_s8 + $0x78] sm:$0xff] }
 0x521   :  { %v5342_v56 = vpop.eup %4563  ;;  %6054 = vst [vmem:[#allocation7_spill] sm:$0xff] %v5389_v55  ;;  %6058 = vst [vmem:[#allocation11_spill] sm:$0xff] %v5425_v35  ;;  %v5452_v58 = vpack.c.bf16 %v492_v1, %v491_v3 }
 0x522   :  { %1362 = vmatmul.mubr.f32.vlgmr.msra.gmra.mrb[6].mxu1 %v5325_v5  ;;  %v5358_v57 = vpop.eup %4565  ;;  %6059 = vst [vmem:[#allocation12_spill] sm:$0xff] %v5440_v9  ;;  %6060 = vst [vmem:[#allocation13_spill] sm:$0xff] %v5443_v21 }
 0x523   :  { %1366 = vmatprep.mubr.f32.mxu1 %v5342_v56  ;;  %4006 = vmatpush3.bf16.msra.mxu1 %v5323_v6  ;;  %6061 = vst [vmem:[#allocation14_spill] sm:$0xff] %v5452_v58 }
 0x524   :  { %4008 = vmatprep.subr.bf16.mxu1 %v5328_v10 }
 0x525   :  { %v4568_v14 = vpop.eup %4567 }
 0x526   :  { %1367 = vmatmul.mubr.f32.gmra.mrb[8].mxu1 %v5358_v57  ;;  %v4570_v16 = vpop.eup %4569 }
 0x527   :  { %1371 = vmatprep.mubr.f32.mxu1 %v4568_v14  ;;  %4010 = vmatpush3.bf16.msra.mxu1 %v5347_v2 }
 0x528   :  { %4012 = vmatprep.subr.bf16.mxu1 %v5350_v13 }
 0x52a   :  { %1372 = vmatmul.mubr.f32.gmra.mrb[10].mxu1 %v4570_v16 }
 0x52b   :  { %4014 = vmatpush3.bf16.msra.mxu1 %v5368_v11 }
 0x52c   :  { %4016 = vmatprep.subr.bf16.mxu1 %v5371_v17 }
 0x52f   :  { %4018 = vmatpush3.bf16.msra.mxu1 %v5386_v4 }
 0x530   :  { %4020 = vmatprep.subr.bf16.mxu1 %v5389_v55 }
 0x533   :  { %4022 = vmatpush3.bf16.msra.mxu1 %v5404_v63 }
 0x534   :  { %4024 = vmatprep.subr.bf16.mxu1 %v5407_v7 }
 0x537   :  { %4026 = vmatpush3.bf16.msra.mxu1 %v5422_v18 }
 0x538   :  { %4028 = vmatprep.subr.bf16.mxu1 %v5425_v35 }
 0x53b   :  { %4030 = vmatpush3.bf16.msra.mxu1 %v5440_v9 }
 0x53c   :  { %4032 = vmatprep.subr.bf16.mxu1 %v5443_v21 }
 0x53f   :  { %4034 = vmatpush3.bf16.msra.mxu1 %v5452_v58 }
 0x54b   :  { %v1176_v12 = vpop.xlane.xlu1 %1175 }
 0x54c   :  { %v1183_v20 = vsub.f32 %v5294_v60, %v1176_v12  ;;  %v1184_v15 = vsub.f32 %v5296_v62, %v1176_v12  ;;  %v1479_v60 = vld [vmem:[%s5989_s15] sm:$0xff]  ;;  %v1480_v62 = vld [vmem:[%s5989_s15 + $0x8] sm:$0xff] }
 0x54e   :  { %v1197_v37 = vmul.f32 1.442695, %v1183_v20  ;;  %v1199_v54 = vmul.f32 1.442695, %v1184_v15 }
 0x550   :  { %4571 = vpow2.f32 %v1197_v37 }
 0x551   :  { %4573 = vpow2.f32 %v1199_v54 }
 0x55a   :  { %v4572_v35 = vpop.eup %4571 }
 0x55b   :  { %v4574_v18 = vpop.eup %4573 }
 0x55c   :  { %1376 = vmatprep.mubr.f32.mxu1 %v4574_v18 }
 0x55d   :  { %1377 = vmatmul.mubr.f32.gmra.mrb[12].mxu1 %v4572_v35 }
 0x55e   :  { %1446 = vmatprep.mubr.f32.mxu1 %v5320_v0  ;;  %v1481_v0 = vld [vmem:[%s5989_s15 + $0x10] sm:$0xff] }
 0x561   :  { %1447 = vmatmul.mubr.f32.vlgmr.msra.gmra.mrb[14].mxu1 %v5325_v5  ;;  %v4035_v5 = vpack.c.bf16 %v1480_v62, %v1479_v60 }
 0x562   :  { %1451 = vmatprep.mubr.f32.mxu1 %v5342_v56  ;;  %v1482_v56 = vld [vmem:[%s5989_s15 + $0x18] sm:$0xff] }
 0x563   :  { %4036 = vmatprep.subr.bf16.mxu0 %v4035_v5 }
 0x564   :  { %4038 = vmatpush3.bf16.msra.mxu0 %v4035_v5 }
 0x565   :  { %1452 = vmatmul.mubr.f32.gmra.mrb[16].mxu1 %v5358_v57  ;;  %v4039_v57 = vpack.c.bf16 %v1482_v56, %v1481_v0 }
 0x566   :  { %1456 = vmatprep.mubr.f32.mxu1 %v4568_v14 }
 0x567   :  { %4040 = vmatprep.subr.bf16.mxu0 %v4039_v57 }
 0x568   :  { %4042 = vmatpush3.bf16.msra.mxu0 %v4039_v57 }
 0x569   :  { %1457 = vmatmul.mubr.f32.gmra.mrb[18].mxu1 %v4570_v16 }
 0x56a   :  { %1461 = vmatprep.mubr.f32.mxu1 %v4574_v18 }
 0x56d   :  { %1462 = vmatmul.mubr.f32.gmra.mrb[20].mxu1 %v4572_v35 }
 0x5f5   :  { %v3479_v14 = vpop.f32.mrb[6].mxu1 }
 0x5f6   :  { %v3480_v16 = vpop.f32.mrb[7].mxu1 }
 0x5f7   :  { %v3481_v18 = vadd.f32 %v3480_v16, %v3479_v14 }
 0x5f9   :  { %v3482_v35 = vpop.f32.mrb[8].mxu1 }
 0x5fa   :  { %v3483_v3 = vpop.f32.mrb[9].mxu1 }
 0x5fb   :  { %v3484_v1 = vadd.f32 %v3483_v3, %v3482_v35 }
 0x5fd   :  { %v3485_v12 = vpop.f32.mrb[10].mxu1 }
 0x5fe   :  { %v3486_v20 = vpop.f32.mrb[11].mxu1 }
 0x5ff   :  { %v3487_v15 = vadd.f32 %v3486_v20, %v3485_v12 }
 0x630   :  { %v3488_v37 = vpop.f32.mrb[12].mxu1 }
 0x631   :  { %v3489_v54 = vpop.f32.mrb[13].mxu1 }
 0x632   :  { %v3490_v60 = vadd.f32 %v3489_v54, %v3488_v37 }
 0x634   :  { %v3523_v62 = vpop.f32.mrb[14].mxu1 }
 0x635   :  { %v3524_v58 = vpop.f32.mrb[15].mxu1 }
 0x636   :  { %v3525_v21 = vadd.f32 %v3524_v58, %v3523_v62 }
 0x638   :  { %v1467_v0 = vmax.f32 %v3525_v21, 1e-20  ;;  %v3526_v56 = vpop.f32.mrb[16].mxu1 }
 0x639   :  { %v3527_v5 = vpop.f32.mrb[17].mxu1 }
 0x63a   :  { %4575 = vrcp.f32 %v1467_v0  ;;  %v3528_v57 = vadd.f32 %v3527_v5, %v3526_v56 }
 0x63c   :  { %v1468_v9 = vmax.f32 %v3528_v57, 1e-20  ;;  %v3529_v7 = vpop.f32.mrb[18].mxu1 }
 0x63d   :  { %v3530_v14 = vpop.f32.mrb[19].mxu1 }
 0x63e   :  { %4577 = vrcp.f32 %v1468_v9  ;;  %v3531_v16 = vadd.f32 %v3530_v14, %v3529_v7 }
 0x640   :  { %v1469_v35 = vmax.f32 %v3531_v16, 1e-20  ;;  %v3532_v3 = vpop.f32.mrb[20].mxu1 }
 0x641   :  { %v3533_v63 = vpop.f32.mrb[21].mxu1 }
 0x642   :  { %4579 = vrcp.f32 %v1469_v35  ;;  %v3534_v12 = vadd.f32 %v3533_v63, %v3532_v3  ;;  %v3273_v63 = vld [vmem:[%s5990_s16] ss:$0 sm:$0xff] }
 0x644   :  { %v4576_v20 = vpop.eup %4575  ;;  %v1470_v37 = vmax.f32 %v3534_v12, 1e-20 }
 0x645   :  { %v1475_v54 = vmul.f32 %v4576_v20, %v3481_v18 }
 0x646   :  { %4581 = vrcp.f32 %v1470_v37 }
 0x647   :  { %3787 = vmatprep.mubr.msk.f32.mxu0 %vm551_vm12, %v1475_v54 }
 0x648   :  { %v4578_v21 = vpop.eup %4577 }
 0x649   :  { %v1476_v58 = vmul.f32 %v4578_v21, %v3484_v1 }
 0x64b   :  { %3788 = vmatmul.mubr.msk.f32.vlgmr.msra.gmra.mrb[12].mxu0 %vm551_vm12, %v1476_v58 }
 0x64c   :  { %v4580_v62 = vpop.eup %4579 }
 0x64d   :  { %v1477_v0 = vmul.f32 %v4580_v62, %v3487_v15 }
 0x64f   :  { %3790 = vmatprep.mubr.msk.f32.mxu0 %vm551_vm12, %v1477_v0 }
 0x650   :  { %v4582_v7 = vpop.eup %4581 }
 0x651   :  { %v1478_v9 = vmul.f32 %v4582_v7, %v3490_v60 }
 0x653   :  { %3791 = vmatmul.mubr.msk.f32.gmra.mrb[14].mxu0 %vm551_vm12, %v1478_v9  ;;  %v1677_v9 = vld [vmem:[%s5991_s19] sm:$0xff] }
 0x71e   :  { %v3789_v56 = vpop.f32.mrb[12].mxu0 }
 0x71f   :  { %v1581_v18 = vadd.f32 %v3789_v56, %v4872_v47  ;;  %v1561_v5 = vpop.f32.mrb[13].mxu0  ;;  %v1678_v56 = vld [vmem:[%s5991_s19 + $0x8] sm:$0xff] }
 0x720   :  { %v1580_v1 = vadd.f32 %v1561_v5, %v4864_v40  ;;  %v1680_v5 = vld [vmem:[%s5991_s19 + $0x18] sm:$0xff] }
 0x721   :  { %v5483_v57 = vadd.f32 %v3273_v63, %v1581_v18  ;;  %v1679_v18 = vld [vmem:[%s5991_s19 + $0x10] sm:$0xff] }
 0x722   :  { %v5485_v14 = vadd.f32 %v3273_v63, %v1580_v1  ;;  %v4047_v1 = vpack.c.bf16 %v1680_v5, %v1679_v18 }
 0x723   :  { %v1600_v15 = vsel %vm551_vm12, %v5483_v57, 0.0  ;;  %v1610_v47 = vmul.f32 %v5483_v57, %v5483_v57 }
 0x724   :  { %1601 = vadd.xlane.f32.xlu0 %v1600_v15  ;;  %v1597_v3 = vsel %vm551_vm12, %v5485_v14, 0.0  ;;  %v1789_v15 = vld [vmem:[%s5992_s21] sm:$0xff] }
 0x725   :  { %v1616_v20 = vsel %vm551_vm12, %v1610_v47, 0.0 }
 0x726   :  { %v3792_v60 = vpop.f32.mrb[14].mxu0 }
 0x727   :  { %v1583_v16 = vadd.f32 %v3792_v60, %v4870_v45  ;;  %v1571_v35 = vpop.f32.mrb[15].mxu0  ;;  %v1609_v45 = vmul.f32 %v5485_v14, %v5485_v14  ;;  %v1790_v60 = vld [vmem:[%s5992_s21 + $0x8] sm:$0xff] }
 0x728   :  { %v1582_v40 = vadd.f32 %v4862_v38, %v1571_v35  ;;  %1598 = vadd.xlane.f32.xlu0 %v1597_v3  ;;  %v4051_v35 = vpack.c.bf16 %v1790_v60, %v1789_v15  ;;  %v1792_v3 = vld [vmem:[%s5992_s21 + $0x18] sm:$0xff] }
 0x729   :  { %v5495_v12 = vadd.f32 %v3273_v63, %v1583_v16  ;;  %v1613_v21 = vsel %vm551_vm12, %v1609_v45, 0.0  ;;  %v1791_v16 = vld [vmem:[%s5992_s21 + $0x10] sm:$0xff] }
 0x72a   :  { %v5504_v58 = vadd.f32 %v3273_v63, %v1582_v40  ;;  %v4043_v63 = vpack.c.bf16 %v1678_v56, %v1677_v9  ;;  %v4055_v47 = vpack.c.bf16 %v1792_v3, %v1791_v16  ;;  %v1793_v40 = vld [vmem:[%s5992_s21 + $0x20] sm:$0xff]  ;;  %4052 = vmatprep.subr.bf16.mxu0 %v4051_v35 }
 0x72b   :  { %v1612_v37 = vmul.f32 %v5495_v12, %v5495_v12  ;;  %v1606_v38 = vsel %vm551_vm12, %v5495_v12, 0.0  ;;  %4054 = vmatpush3.bf16.msra.mxu0 %v4051_v35 }
 0x72c   :  { %1617 = vadd.xlane.f32.xlu0 %v1616_v20  ;;  %v1603_v62 = vsel %vm551_vm12, %v5504_v58, 0.0  ;;  %v1611_v0 = vmul.f32 %v5504_v58, %v5504_v58  ;;  %4044 = vmatprep.subr.bf16.mxu1 %v4043_v63  ;;  %v1794_v20 = vld [vmem:[%s5992_s21 + $0x28] sm:$0xff] }
 0x72d   :  { %v1622_v54 = vsel %vm551_vm12, %v1612_v37, 0.0  ;;  %4046 = vmatpush3.bf16.msra.mxu1 %v4043_v63  ;;  %4056 = vmatprep.subr.bf16.mxu0 %v4055_v47  ;;  %v4059_v37 = vpack.c.bf16 %v1794_v20, %v1793_v40 }
 0x72e   :  { %1623 = vadd.xlane.f32.xlu1 %v1622_v54  ;;  %v1619_v7 = vsel %vm551_vm12, %v1611_v0, 0.0  ;;  %4048 = vmatprep.subr.bf16.mxu1 %v4047_v1 }
 0x72f   :  { %4058 = vmatpush3.bf16.msra.mxu0 %v4055_v47 }
 0x730   :  { %1614 = vadd.xlane.f32.xlu0 %v1613_v21  ;;  %4060 = vmatprep.subr.bf16.mxu0 %v4059_v37 }
 0x731   :  { %4050 = vmatpush3.bf16.msra.mxu1 %v4047_v1 }
 0x733   :  { %4062 = vmatpush3.bf16.msra.mxu0 %v4059_v37 }
 0x734   :  { %1607 = vadd.xlane.f32.xlu0 %v1606_v38 }
 0x738   :  { %1604 = vadd.xlane.f32.xlu0 %v1603_v62 }
 0x73c   :  { %1620 = vadd.xlane.f32.xlu0 %v1619_v7 }
 0x7b1   :  { %v1602_v45 = vpop.xlane.xlu0 %1601 }
 0x7b2   :  { %v1626_v21 = vmul.f32 0.03125, %v1602_v45 }
 0x7b4   :  { %v1634_v62 = vmul.f32 %v1626_v21, %v1626_v21 }
 0x7b5   :  { %v1599_v54 = vpop.xlane.xlu0 %1598 }
 0x7b6   :  { %v1625_v0 = vmul.f32 0.03125, %v1599_v54 }
 0x7b8   :  { %v1633_v63 = vmul.f32 %v1625_v0, %v1625_v0 }
 0x7b9   :  { %v1618_v38 = vpop.xlane.xlu0 %1617 }
 0x7ba   :  { %v1630_v7 = vmul.f32 0.03125, %v1618_v38 }
 0x7bb   :  { %v1624_v15 = vpop.xlane.xlu1 %1623 }
 0x7bc   :  { %v1638_v9 = vsub.f32 %v1630_v7, %v1634_v62  ;;  %v1632_v3 = vmul.f32 0.03125, %v1624_v15  ;;  %v1642_v62 = vsub.f32 %v5483_v57, %v1626_v21  ;;  %v3275_v21 = vld [vmem:[%s5994_s18] ss:$0 sm:$0xff] }
 0x7bd   :  { %v1615_v56 = vpop.xlane.xlu0 %1614 }
 0x7be   :  { %v1646_v18 = vadd.f32 1e-05, %v1638_v9  ;;  %v1629_v5 = vmul.f32 0.03125, %v1615_v56 }
 0x7c0   :  { %4583 = vrsqrt.f32 %v1646_v18  ;;  %v1637_v1 = vsub.f32 %v1629_v5, %v1633_v63  ;;  %v1641_v18 = vsub.f32 %v5485_v14, %v1625_v0  ;;  %v3274_v5 = vld [vmem:[%s5993_s17] ss:$0 sm:$0xff] }
 0x7c1   :  { %v1608_v60 = vpop.xlane.xlu0 %1607 }
 0x7c2   :  { %v1645_v16 = vadd.f32 1e-05, %v1637_v1  ;;  %v1628_v35 = vmul.f32 0.03125, %v1608_v60 }
 0x7c4   :  { %4585 = vrsqrt.f32 %v1645_v16  ;;  %v1636_v47 = vmul.f32 %v1628_v35, %v1628_v35  ;;  %v1644_v0 = vsub.f32 %v5495_v12, %v1628_v35  ;;  %v1796_v35 = vld [vmem:[%s5992_s21 + $0x38] sm:$0xff] }
 0x7c5   :  { %v1605_v40 = vpop.xlane.xlu0 %1604 }
 0x7c6   :  { %v1640_v20 = vsub.f32 %v1632_v3, %v1636_v47  ;;  %v1627_v37 = vmul.f32 0.03125, %v1605_v40 }
 0x7c8   :  { %v1648_v45 = vadd.f32 1e-05, %v1640_v20  ;;  %v1635_v7 = vmul.f32 %v1627_v37, %v1627_v37 }
 0x7c9   :  { %v1621_v54 = vpop.xlane.xlu0 %1620 }
 0x7ca   :  { %v4584_v38 = vpop.eup %4583  ;;  %v1631_v9 = vmul.f32 0.03125, %v1621_v54  ;;  %4587 = vrsqrt.f32 %v1648_v45  ;;  %v1643_v54 = vsub.f32 %v5504_v58, %v1627_v37  ;;  %v3276_v37 = vld [vmem:[%s5995_s20] ss:$0 sm:$0xff] }
 0x7cb   :  { %v1654_v56 = vmul.f32 %v4584_v38, %v1642_v62 }
 0x7cc   :  { %v1639_v63 = vsub.f32 %v1631_v9, %v1635_v7 }
 0x7cd   :  { %v1664_v16 = vmul.f32 %v3274_v5, %v1654_v56 }
 0x7ce   :  { %v4586_v1 = vpop.eup %4585  ;;  %v1647_v15 = vadd.f32 1e-05, %v1639_v63 }
 0x7cf   :  { %v1653_v60 = vmul.f32 %v4586_v1, %v1641_v18  ;;  %v1674_v40 = vadd.f32 %v3275_v21, %v1664_v16  ;;  %v1795_v18 = vld [vmem:[%s5992_s21 + $0x30] sm:$0xff] }
 0x7d0   :  { %4589 = vrsqrt.f32 %v1647_v15  ;;  %v4063_v1 = vpack.c.bf16 %v1796_v35, %v1795_v18 }
 0x7d1   :  { %v1663_v3 = vmul.f32 %v3274_v5, %v1653_v60 }
 0x7d2   :  { %4064 = vmatprep.subr.bf16.mxu0 %v4063_v1 }
 0x7d3   :  { %v1673_v47 = vadd.f32 %v3275_v21, %v1663_v3  ;;  %4066 = vmatpush3.bf16.msra.mxu0 %v4063_v1 }
 0x7d4   :  { %v4588_v20 = vpop.eup %4587 }
 0x7d5   :  { %3801 = vmatprep.mubr.msk.f32.mxu1 %vm551_vm12, %v1673_v47  ;;  %v1656_v45 = vmul.f32 %v4588_v20, %v1644_v0 }
 0x7d6   :  { %3802 = vmatmul.mubr.msk.f32.vlgmr.msra.gmra.mrb[22].mxu1 %vm551_vm12, %v1674_v40 }
 0x7d7   :  { %v1666_v7 = vmul.f32 %v3274_v5, %v1656_v45 }
 0x7d9   :  { %v1676_v63 = vadd.f32 %v3275_v21, %v1666_v7 }
 0x7da   :  { %v4590_v38 = vpop.eup %4589 }
 0x7db   :  { %v1655_v62 = vmul.f32 %v4590_v38, %v1643_v54 }
 0x7dd   :  { %v1665_v9 = vmul.f32 %v3274_v5, %v1655_v62  ;;  %v3285_v62 = vld [vmem:[%s5996_s22] ss:$0 sm:$0xff] }
 0x7df   :  { %v1675_v56 = vadd.f32 %v3275_v21, %v1665_v9 }
 0x7e1   :  { %3804 = vmatprep.mubr.msk.f32.mxu1 %vm551_vm12, %v1675_v56 }
 0x7e2   :  { %3805 = vmatmul.mubr.msk.f32.gmra.mrb[24].mxu1 %vm551_vm12, %v1676_v63 }
 0x8a9   :  { %v3803_v5 = vpop.f32.mrb[22].mxu1 }
 0x8aa   :  { %v1772_v15 = vadd.f32 %v3803_v5, %v3276_v37  ;;  %v1766_v60 = vpop.f32.mrb[23].mxu1 }
 0x8ab   :  { %v1767_v16 = vadd.f32 %v3276_v37, %v1766_v60 }
 0x8ac   :  { %v1786_v3 = vmax.f32 %v1772_v15, 0.0 }
 0x8ad   :  { %v1785_v21 = vmax.f32 %v1767_v16, 0.0 }
 0x8af   :  { %3823 = vmatprep.mubr.msk.f32.mxu0 %vm1797_vm14, %v1785_v21 }
 0x8b0   :  { %3824 = vmatmul.mubr.msk.f32.vlgmr.msra.gmra.mrb[16].mxu0 %vm1797_vm14, %v1786_v3 }
 0x8b5   :  { %v3806_v47 = vpop.f32.mrb[24].mxu1 }
 0x8b6   :  { %v1782_v40 = vadd.f32 %v3806_v47, %v3276_v37  ;;  %v1776_v20 = vpop.f32.mrb[25].mxu1 }
 0x8b7   :  { %v1777_v0 = vadd.f32 %v3276_v37, %v1776_v20 }
 0x8b8   :  { %v1788_v54 = vmax.f32 %v1782_v40, 0.0 }
 0x8b9   :  { %v1787_v45 = vmax.f32 %v1777_v0, 0.0 }
 0x8bb   :  { %3826 = vmatprep.mubr.msk.f32.mxu0 %vm1797_vm14, %v1787_v45 }
 0x8bc   :  { %3827 = vmatmul.mubr.msk.f32.gmra.mrb[18].mxu0 %vm1797_vm14, %v1788_v54  ;;  %v3290_v54 = vld [vmem:[%s6044_s11 + $0x20] sm:$0xff] }
 0x983   :  { %v3825_v38 = vpop.f32.mrb[16].mxu0 }
 0x984   :  { %v1896_v7 = vadd.f32 %v3825_v38, %v5483_v57  ;;  %v1876_v9 = vpop.f32.mrb[17].mxu0  ;;  %v3291_v38 = vld [vmem:[%s6044_s11 + $0x28] sm:$0xff] }
 0x985   :  { %v1895_v56 = vadd.f32 %v1876_v9, %v5485_v14  ;;  %v3293_v9 = vld [vmem:[%s6044_s11 + $0x38] sm:$0xff] }
 0x986   :  { %v5575_v63 = vadd.f32 %v3285_v62, %v1896_v7  ;;  %v4067_v7 = vpack.c.bf16 %v3291_v38, %v3290_v54 }
 0x987   :  { %v5577_v18 = vadd.f32 %v3285_v62, %v1895_v56 }
 0x988   :  { %v1917_v35 = vsel %vm551_vm12, %v5575_v63, 0.0  ;;  %v1927_v1 = vmul.f32 %v5575_v63, %v5575_v63  ;;  %4068 = vmatprep.subr.bf16.mxu1 %v4067_v7 }
 0x989   :  { %1918 = vadd.xlane.f32.xlu1 %v1917_v35  ;;  %v1914_v37 = vsel %vm551_vm12, %v5577_v18, 0.0  ;;  %v1926_v57 = vmul.f32 %v5577_v18, %v5577_v18  ;;  %4070 = vmatpush3.bf16.msra.mxu1 %v4067_v7 }
 0x98a   :  { %1915 = vadd.xlane.f32.xlu0 %v1914_v37  ;;  %v1933_v14 = vsel %vm551_vm12, %v1927_v1, 0.0 }
 0x98b   :  { %v1930_v5 = vsel %vm551_vm12, %v1926_v57, 0.0 }
 0x98d   :  { %1934 = vadd.xlane.f32.xlu1 %v1933_v14 }
 0x98e   :  { %1931 = vadd.xlane.f32.xlu0 %v1930_v5 }
 0x98f   :  { %v3828_v15 = vpop.f32.mrb[18].mxu0 }
 0x990   :  { %v1898_v60 = vadd.f32 %v3828_v15, %v5495_v12  ;;  %v1886_v16 = vpop.f32.mrb[19].mxu0 }
 0x991   :  { %v1897_v21 = vadd.f32 %v1886_v16, %v5504_v58 }
 0x992   :  { %v5591_v3 = vadd.f32 %v3285_v62, %v1898_v60 }
 0x993   :  { %v5593_v47 = vadd.f32 %v3285_v62, %v1897_v21  ;;  %v3292_v62 = vld [vmem:[%s6044_s11 + $0x30] sm:$0xff] }
 0x994   :  { %v1923_v40 = vsel %vm551_vm12, %v5591_v3, 0.0  ;;  %v1929_v20 = vmul.f32 %v5591_v3, %v5591_v3  ;;  %v4071_v56 = vpack.c.bf16 %v3293_v9, %v3292_v62 }
 0x995   :  { %1924 = vadd.xlane.f32.xlu1 %v1923_v40  ;;  %v1920_v0 = vsel %vm551_vm12, %v5593_v47, 0.0  ;;  %v1928_v12 = vmul.f32 %v5593_v47, %v5593_v47 }
 0x996   :  { %1921 = vadd.xlane.f32.xlu0 %v1920_v0  ;;  %v1939_v58 = vsel %vm551_vm12, %v1929_v20, 0.0  ;;  %4072 = vmatprep.subr.bf16.mxu1 %v4071_v56 }
 0x997   :  { %v1936_v45 = vsel %vm551_vm12, %v1928_v12, 0.0  ;;  %4074 = vmatpush3.bf16.msra.mxu1 %v4071_v56 }
 0x999   :  { %1940 = vadd.xlane.f32.xlu1 %v1939_v58 }
 0x99a   :  { %1937 = vadd.xlane.f32.xlu0 %v1936_v45 }
 0xa16   :  { %v1919_v35 = vpop.xlane.xlu1 %1918 }
 0xa17   :  { %v1943_v1 = vmul.f32 0.03125, %v1919_v35  ;;  %v1916_v37 = vpop.xlane.xlu0 %1915 }
 0xa18   :  { %v1942_v57 = vmul.f32 0.03125, %v1916_v37 }
 0xa19   :  { %v1951_v5 = vmul.f32 %v1943_v1, %v1943_v1  ;;  %v1959_v55 = vsub.f32 %v5575_v63, %v1943_v1 }
 0xa1a   :  { %v1935_v14 = vpop.xlane.xlu1 %1934  ;;  %v1950_v16 = vmul.f32 %v1942_v57, %v1942_v57 }
 0xa1b   :  { %v1947_v15 = vmul.f32 0.03125, %v1935_v14  ;;  %v1932_v60 = vpop.xlane.xlu0 %1931 }
 0xa1c   :  { %v1946_v21 = vmul.f32 0.03125, %v1932_v60 }
 0xa1d   :  { %v1955_v40 = vsub.f32 %v1947_v15, %v1951_v5  ;;  %v1958_v15 = vsub.f32 %v5577_v18, %v1942_v57 }
 0xa1e   :  { %v1954_v20 = vsub.f32 %v1946_v21, %v1950_v16  ;;  %v3288_v21 = vld [vmem:[%s6046_s6 + $0x1] ss:$0 sm:$0xff] }
 0xa1f   :  { %v1963_v0 = vadd.f32 1e-05, %v1955_v40 }
 0xa20   :  { %v1962_v12 = vadd.f32 1e-05, %v1954_v20 }
 0xa21   :  { %4591 = vrsqrt.f32 %v1963_v0 }
 0xa22   :  { %4593 = vrsqrt.f32 %v1962_v12  ;;  %v1925_v58 = vpop.xlane.xlu1 %1924 }
 0xa23   :  { %v1945_v45 = vmul.f32 0.03125, %v1925_v58  ;;  %v1922_v54 = vpop.xlane.xlu0 %1921  ;;  %v3289_v58 = vld [vmem:[%s6047_s1 + $0x1] ss:$0 sm:$0xff] }
 0xa24   :  { %v1944_v38 = vmul.f32 0.03125, %v1922_v54 }
 0xa25   :  { %v1953_v7 = vmul.f32 %v1945_v45, %v1945_v45  ;;  %v1961_v57 = vsub.f32 %v5591_v3, %v1945_v45 }
 0xa26   :  { %v1941_v62 = vpop.xlane.xlu1 %1940  ;;  %v1952_v35 = vmul.f32 %v1944_v38, %v1944_v38 }
 0xa27   :  { %v1949_v9 = vmul.f32 0.03125, %v1941_v62  ;;  %v1938_v56 = vpop.xlane.xlu0 %1937 }
 0xa28   :  { %v1948_v37 = vmul.f32 0.03125, %v1938_v56 }
 0xa29   :  { %v1957_v14 = vsub.f32 %v1949_v9, %v1953_v7 }
 0xa2a   :  { %v1956_v60 = vsub.f32 %v1948_v37, %v1952_v35 }
 0xa2b   :  { %v4592_v5 = vpop.eup %4591  ;;  %v1965_v16 = vadd.f32 1e-05, %v1957_v14 }
 0xa2c   :  { %v4594_v40 = vpop.eup %4593  ;;  %v1971_v20 = vmul.f32 %v4592_v5, %v1959_v55  ;;  %v1964_v0 = vadd.f32 1e-05, %v1956_v60  ;;  %v1960_v55 = vsub.f32 %v5593_v47, %v1944_v38 }
 0xa2d   :  { %4595 = vrsqrt.f32 %v1965_v16  ;;  %v1970_v12 = vmul.f32 %v4594_v40, %v1958_v15  ;;  %v3295_v16 = vld [vmem:[%s5986_s14 + $0x1] ss:$0 sm:$0xff] }
 0xa2e   :  { %4597 = vrsqrt.f32 %v1964_v0  ;;  %v1981_v1 = vmul.f32 %v3288_v21, %v1971_v20 }
 0xa2f   :  { %v1980_v54 = vmul.f32 %v3288_v21, %v1970_v12 }
 0xa30   :  { %v1991_v7 = vadd.f32 %v3289_v58, %v1981_v1 }
 0xa31   :  { %v1990_v62 = vadd.f32 %v3289_v58, %v1980_v54 }
 0xa33   :  { %3837 = vmatprep.mubr.msk.f32.mxu1 %vm551_vm12, %v1990_v62 }
 0xa34   :  { %3838 = vmatmul.mubr.msk.f32.vlgmr.msra.gmra.mrb[26].mxu1 %vm551_vm12, %v1991_v7 }
 0xa37   :  { %v4596_v9 = vpop.eup %4595 }
 0xa38   :  { %v4598_v56 = vpop.eup %4597  ;;  %v1973_v35 = vmul.f32 %v4596_v9, %v1961_v57 }
 0xa39   :  { %v1972_v37 = vmul.f32 %v4598_v56, %v1960_v55 }
 0xa3a   :  { %v1983_v14 = vmul.f32 %v3288_v21, %v1973_v35 }
 0xa3b   :  { %v1982_v60 = vmul.f32 %v3288_v21, %v1972_v37 }
 0xa3c   :  { %v1993_v15 = vadd.f32 %v3289_v58, %v1983_v14 }
 0xa3d   :  { %v1992_v5 = vadd.f32 %v3289_v58, %v1982_v60 }
 0xa3f   :  { %3840 = vmatprep.mubr.msk.f32.mxu1 %vm551_vm12, %v1992_v5 }
 0xa40   :  { %3841 = vmatmul.mubr.msk.f32.gmra.mrb[28].mxu1 %vm551_vm12, %v1993_v15 }
 0xb07   :  { %v3839_v40 = vpop.f32.mrb[26].mxu1 }
 0xb08   :  { %v5634_v45 = vadd.f32 %v3839_v40, %v3295_v16  ;;  %v2085_v20 = vpop.f32.mrb[27].mxu1 }
 0xb09   :  { %v2086_v38 = vadd.f32 %v3295_v16, %v2085_v20 }
 0xb0a   :  { %v2125_v0 = vmul.f32 %v5634_v45, %v5050_v25  ;;  %v2109_v21 = vmul.f32 %v5634_v45, %v5048_v24  ;;  %v2129_v12 = vmul.f32 %v5634_v45, %v5060_v30  ;;  %v2113_v58 = vmul.f32 %v5634_v45, %v5064_v32 }
 0xb0b   :  { %v5644_v1 = vmul.f32 0.5, %v2086_v38  ;;  %v2124_v54 = vmul.f32 %v2086_v38, %v5044_v22  ;;  %v2108_v62 = vmul.f32 %v2086_v38, %v5046_v23  ;;  %v2128_v7 = vmul.f32 %v2086_v38, %v5062_v31 }
 0xb0c   :  { %v2112_v57 = vmul.f32 %v2086_v38, %v5066_v33  ;;  %v2132_v25 = vmul.f32 %v2086_v38, %v5078_v41  ;;  %v2133_v24 = vmul.f32 %v5634_v45, %v5076_v39  ;;  %v2116_v30 = vmul.f32 %v2086_v38, %v5082_v43 }
 0xb0d   :  { %3603 = vmatprep.mubr.msk.f32.mxu1 %vm551_vm12, %v5644_v1  ;;  %v4391_v32 = vpack.i.bf16 %v2125_v0, %v2124_v54  ;;  %v4396_v9 = vpack.i.bf16 %v2109_v21, %v2108_v62  ;;  %v4411_v55 = vpack.i.bf16 %v2129_v12, %v2128_v7  ;;  %v2117_v22 = vmul.f32 %v5634_v45, %v5080_v42 }
 0xb0e   :  { %v4416_v23 = vpack.i.bf16 %v2113_v58, %v2112_v57  ;;  %v4431_v31 = vpack.i.bf16 %v2133_v24, %v2132_v25  ;;  %v2136_v33 = vmul.f32 %v2086_v38, %v5094_v51  ;;  %v2137_v41 = vmul.f32 %v5634_v45, %v5092_v50 }
 0xb0f   :  { %4392 = vrot.lane.b32.xlu0 %v4391_v32, %s4645_s3  ;;  %4397 = vrot.lane.b32.xlu1 %v4396_v9, %s4645_s3  ;;  %v4436_v39 = vpack.i.bf16 %v2117_v22, %v2116_v30  ;;  %v2120_v43 = vmul.f32 %v2086_v38, %v5098_v53  ;;  %v2121_v56 = vmul.f32 %v5634_v45, %v5096_v52  ;;  %v6063_v38 = vld [vmem:[#allocation4_spill] sm:$0xff] }
 0xb10   :  { %v4451_v35 = vpack.i.bf16 %v2137_v41, %v2136_v33 }
 0xb11   :  { %v5666_v37 = vpack.i.bf16 %v2121_v56, %v2120_v43 }
 0xb13   :  { %v3842_v42 = vpop.f32.mrb[28].mxu1 }
 0xb14   :  { %v5668_v14 = vadd.f32 %v3842_v42, %v3295_v16  ;;  %v2095_v51 = vpop.f32.mrb[29].mxu1 }
 0xb15   :  { %v5670_v60 = vadd.f32 %v3295_v16, %v2095_v51  ;;  %v6062_v16 = vld [vmem:[#allocation3_spill] sm:$0xff] }
 0xb16   :  { %v2127_v50 = vmul.f32 %v5668_v14, %v5052_v26  ;;  %v2111_v5 = vmul.f32 %v5668_v14, %v5056_v28  ;;  %v2131_v53 = vmul.f32 %v5668_v14, %v5068_v34  ;;  %v2115_v52 = vmul.f32 %v5668_v14, %v5072_v36 }
 0xb17   :  { %v2126_v15 = vmul.f32 %v5670_v60, %v5054_v27  ;;  %v2110_v40 = vmul.f32 %v5670_v60, %v5058_v29  ;;  %v2130_v20 = vmul.f32 %v5670_v60, %v6062_v16  ;;  %v2114_v26 = vmul.f32 %v5670_v60, %v6063_v38 }
 0xb18   :  { %v2134_v28 = vmul.f32 %v5670_v60, %v5086_v46  ;;  %v2135_v34 = vmul.f32 %v5668_v14, %v5084_v44  ;;  %v2118_v36 = vmul.f32 %v5670_v60, %v5090_v49  ;;  %v2119_v27 = vmul.f32 %v5668_v14, %v5088_v48  ;;  %v6064_v44 = vld [vmem:[#allocation6_spill] sm:$0xff]  ;;  %v6065_v48 = vld [vmem:[#allocation5_spill] sm:$0xff] }
 0xb19   :  { %v4401_v0 = vpack.i.bf16 %v2127_v50, %v2126_v15  ;;  %v4406_v29 = vpack.i.bf16 %v2111_v5, %v2110_v40  ;;  %v4421_v21 = vpack.i.bf16 %v2131_v53, %v2130_v20  ;;  %v4426_v12 = vpack.i.bf16 %v2115_v52, %v2114_v26 }
 0xb1a   :  { %v4441_v58 = vpack.i.bf16 %v2135_v34, %v2134_v28  ;;  %v4446_v54 = vpack.i.bf16 %v2119_v27, %v2118_v36  ;;  %v2138_v62 = vmul.f32 %v5670_v60, %v5109_v61  ;;  %v2139_v46 = vmul.f32 %v5668_v14, %v5105_v59 }
 0xb1b   :  { %4402 = vrot.lane.b32.xlu1 %v4401_v0, %s4645_s3  ;;  %4407 = vrot.lane.b32.xlu0 %v4406_v29, %s4645_s3  ;;  %v2122_v49 = vmul.f32 %v5670_v60, %v6064_v44  ;;  %v2123_v7 = vmul.f32 %v5668_v14, %v6065_v48 }
 0xb1c   :  { %v5706_v57 = vpack.i.bf16 %v2139_v46, %v2138_v62 }
 0xb1d   :  { %v5708_v25 = vpack.i.bf16 %v2123_v7, %v2122_v49 }
 0xb1f   :  { %4412 = vrot.lane.b32.xlu1 %v4411_v55, %s4645_s3  ;;  %4417 = vrot.lane.b32.xlu0 %v4416_v23, %s4645_s3 }
 0xb23   :  { %4422 = vrot.lane.b32.xlu1 %v4421_v21, %s4645_s3  ;;  %4427 = vrot.lane.b32.xlu0 %v4426_v12, %s4645_s3 }
 0xb27   :  { %4432 = vrot.lane.b32.xlu1 %v4431_v31, %s4645_s3  ;;  %4437 = vrot.lane.b32.xlu0 %v4436_v39, %s4645_s3 }
 0xb2b   :  { %4442 = vrot.lane.b32.xlu1 %v4441_v58, %s4645_s3  ;;  %4447 = vrot.lane.b32.xlu0 %v4446_v54, %s4645_s3 }
 0xb2f   :  { %4452 = vrot.lane.b32.xlu1 %v4451_v35, %s4645_s3  ;;  %4457 = vrot.lane.b32.xlu0 %v5666_v37, %s4645_s3 }
 0xb33   :  { %4462 = vrot.lane.b32.xlu1 %v5706_v57, %s4645_s3  ;;  %4467 = vrot.lane.b32.xlu0 %v5708_v25, %s4645_s3 }
 0xb37   :  { %4472 = vrot.lane.b32.xlu1 %v4391_v32, %s4646_s2  ;;  %4477 = vrot.lane.b32.xlu0 %v4396_v9, %s4646_s2 }
 0xb3b   :  { %4482 = vrot.lane.b32.xlu1 %v4411_v55, %s4646_s2  ;;  %4502 = vrot.lane.b32.xlu0 %v4451_v35, %s4646_s2 }
 0xb3f   :  { %4487 = vrot.lane.b32.xlu1 %v4416_v23, %s4646_s2  ;;  %4532 = vrot.lane.b32.xlu0 %v4446_v54, %s4646_s2 }
 0xb43   :  { %4492 = vrot.lane.b32.xlu1 %v4431_v31, %s4646_s2 }
 0xb47   :  { %4497 = vrot.lane.b32.xlu1 %v4436_v39, %s4646_s2 }
 0xb4b   :  { %4507 = vrot.lane.b32.xlu1 %v4401_v0, %s4646_s2 }
 0xb4f   :  { %4512 = vrot.lane.b32.xlu1 %v4406_v29, %s4646_s2 }
 0xb53   :  { %4517 = vrot.lane.b32.xlu1 %v4421_v21, %s4646_s2 }
 0xb57   :  { %4522 = vrot.lane.b32.xlu1 %v4426_v12, %s4646_s2 }
 0xb5b   :  { %4527 = vrot.lane.b32.xlu1 %v4441_v58, %s4646_s2 }
 0xb81   :  { %v4398_v59 = vpop.permute.xlu1 %4397  ;;  %v4393_v61 = vpop.permute.xlu0 %4392 }
 0xb82   :  { %v4400_v24 = vunpack.i.h.bf16 %v4398_v59  ;;  %v4399_v30 = vunpack.i.l.bf16 %v4398_v59  ;;  %v4395_v32 = vunpack.i.h.bf16 %v4393_v61  ;;  %v4394_v9 = vunpack.i.l.bf16 %v4393_v61 }
 0xb84   :  { %v4078_v55 = vpack.c.bf16 %v4400_v24, %v4399_v30  ;;  %v4075_v22 = vpack.c.bf16 %v4395_v32, %v4394_v9 }
 0xb86   :  { %4077 = vmatprep.subr.msk.bf16.mxu1 %vm5215_vm13, %v4075_v22 }
 0xb87   :  { %4080 = vmatpush3.bf16.xpose.msk.msra.mxu1 %vm5215_vm13, %v4078_v55 }
 0xb8d   :  { %v4403_v23 = vpop.permute.xlu1 %4402  ;;  %v4408_v31 = vpop.permute.xlu0 %4407 }
 0xb8e   :  { %v4405_v33 = vunpack.i.h.bf16 %v4403_v23  ;;  %v4404_v41 = vunpack.i.l.bf16 %v4403_v23  ;;  %v4410_v39 = vunpack.i.h.bf16 %v4408_v31  ;;  %v4409_v43 = vunpack.i.l.bf16 %v4408_v31 }
 0xb90   :  { %v4081_v56 = vpack.c.bf16 %v4405_v33, %v4404_v41  ;;  %v4084_v35 = vpack.c.bf16 %v4410_v39, %v4409_v43 }
 0xb91   :  { %v4413_v42 = vpop.permute.xlu1 %4412  ;;  %v4418_v51 = vpop.permute.xlu0 %4417 }
 0xb92   :  { %v4415_v50 = vunpack.i.h.bf16 %v4413_v42  ;;  %v4414_v5 = vunpack.i.l.bf16 %v4413_v42  ;;  %4083 = vmatprep.subr.msk.bf16.mxu1 %vm5215_vm13, %v4081_v56  ;;  %v4420_v52 = vunpack.i.h.bf16 %v4418_v51  ;;  %v4419_v15 = vunpack.i.l.bf16 %v4418_v51 }
 0xb93   :  { %4086 = vmatpush3.bf16.xpose.msk.msra.mxu1 %vm5215_vm13, %v4084_v35 }
 0xb94   :  { %v4087_v53 = vpack.c.bf16 %v4415_v50, %v4414_v5  ;;  %v4090_v26 = vpack.c.bf16 %v4420_v52, %v4419_v15 }
 0xb95   :  { %v4423_v40 = vpop.permute.xlu1 %4422  ;;  %v4428_v16 = vpop.permute.xlu0 %4427 }
 0xb96   :  { %v4425_v20 = vunpack.i.h.bf16 %v4423_v40  ;;  %v4424_v38 = vunpack.i.l.bf16 %v4423_v40  ;;  %4089 = vmatprep.subr.msk.bf16.mxu1 %vm5215_vm13, %v4087_v53  ;;  %v4430_v27 = vunpack.i.h.bf16 %v4428_v16  ;;  %v4429_v0 = vunpack.i.l.bf16 %v4428_v16 }
 0xb98   :  { %v4093_v36 = vpack.c.bf16 %v4425_v20, %v4424_v38  ;;  %v4096_v54 = vpack.c.bf16 %v4430_v27, %v4429_v0 }
 0xb99   :  { %v4433_v28 = vpop.permute.xlu1 %4432  ;;  %v4438_v34 = vpop.permute.xlu0 %4437 }
 0xb9a   :  { %v4435_v12 = vunpack.i.h.bf16 %v4433_v28  ;;  %v4434_v58 = vunpack.i.l.bf16 %v4433_v28  ;;  %v4440_v49 = vunpack.i.h.bf16 %v4438_v34  ;;  %v4439_v48 = vunpack.i.l.bf16 %v4438_v34 }
 0xb9b   :  { %4092 = vmatpush3.bf16.xpose.msk.msra.mxu1 %vm5215_vm13, %v4090_v26 }
 0xb9c   :  { %4095 = vmatprep.subr.msk.bf16.mxu1 %vm5215_vm13, %v4093_v36  ;;  %v4099_v44 = vpack.c.bf16 %v4435_v12, %v4434_v58  ;;  %v4102_v30 = vpack.c.bf16 %v4440_v49, %v4439_v48 }
 0xb9d   :  { %v4443_v29 = vpop.permute.xlu1 %4442  ;;  %v4448_v21 = vpop.permute.xlu0 %4447 }
 0xb9e   :  { %v4445_v7 = vunpack.i.h.bf16 %v4443_v29  ;;  %v4444_v59 = vunpack.i.l.bf16 %v4443_v29  ;;  %v4450_v43 = vunpack.i.h.bf16 %v4448_v21  ;;  %v4449_v56 = vunpack.i.l.bf16 %v4448_v21 }
 0xba0   :  { %v4105_v32 = vpack.c.bf16 %v4445_v7, %v4444_v59  ;;  %v4108_v50 = vpack.c.bf16 %v4450_v43, %v4449_v56 }
 0xba1   :  { %v4453_v62 = vpop.permute.xlu1 %4452  ;;  %v4458_v46 = vpop.permute.xlu0 %4457 }
 0xba2   :  { %v4455_v42 = vunpack.i.h.bf16 %v4453_v62  ;;  %v4454_v51 = vunpack.i.l.bf16 %v4453_v62  ;;  %v4460_v52 = vunpack.i.h.bf16 %v4458_v46  ;;  %v4459_v15 = vunpack.i.l.bf16 %v4458_v46 }
 0xba3   :  { %4098 = vmatpush3.bf16.xpose.msk.msra.mxu1 %vm5215_vm13, %v4096_v54 }
 0xba4   :  { %4101 = vmatprep.subr.msk.bf16.mxu1 %vm5215_vm13, %v4099_v44  ;;  %v4111_v53 = vpack.c.bf16 %v4455_v42, %v4454_v51  ;;  %v4114_v38 = vpack.c.bf16 %v4460_v52, %v4459_v15 }
 0xba5   :  { %v4463_v61 = vpop.permute.xlu1 %4462  ;;  %v4468_v24 = vpop.permute.xlu0 %4467 }
 0xba6   :  { %v4465_v16 = vunpack.i.h.bf16 %v4463_v61  ;;  %v4464_v20 = vunpack.i.l.bf16 %v4463_v61  ;;  %v4470_v34 = vunpack.i.h.bf16 %v4468_v24  ;;  %v4469_v36 = vunpack.i.l.bf16 %v4468_v24 }
 0xba8   :  { %v4117_v28 = vpack.c.bf16 %v4465_v16, %v4464_v20  ;;  %v4120_v12 = vpack.c.bf16 %v4470_v34, %v4469_v36  ;;  %v2107_v20 = vmul.f32 0.5, %v5668_v14  ;;  %v4634_v14 = vld [vmem:[%s5987_s10 + $0x8] sm:$0xff] }
 0xba9   :  { %v4473_v9 = vpop.permute.xlu1 %4472  ;;  %v4478_v55 = vpop.permute.xlu0 %4477 }
 0xbaa   :  { %v4475_v22 = vunpack.i.h.bf16 %v4473_v9  ;;  %v4474_v23 = vunpack.i.l.bf16 %v4473_v9  ;;  %v4480_v31 = vunpack.i.h.bf16 %v4478_v55  ;;  %v4479_v33 = vunpack.i.l.bf16 %v4478_v55 }
 0xbab   :  { %4104 = vmatpush3.bf16.xpose.msk.msra.mxu1 %vm5215_vm13, %v4102_v30 }
 0xbac   :  { %v4123_v41 = vpack.c.bf16 %v4475_v22, %v4474_v23  ;;  %v4125_v39 = vpack.c.bf16 %v4480_v31, %v4479_v33  ;;  %4107 = vmatprep.subr.msk.bf16.mxu1 %vm5215_vm13, %v4105_v32  ;;  %v2105_v33 = vmul.f32 0.5, %v5634_v45 }
 0xbad   :  { %v4483_v35 = vpop.permute.xlu1 %4482  ;;  %v4503_v32 = vpop.permute.xlu0 %4502 }
 0xbae   :  { %4124 = vmatprep.subr.bf16.mxu0 %v4123_v41  ;;  %v4485_v58 = vunpack.i.h.bf16 %v4483_v35  ;;  %v4484_v54 = vunpack.i.l.bf16 %v4483_v35  ;;  %v4504_v16 = vunpack.i.l.bf16 %v4503_v32 }
 0xbaf   :  { %4126 = vmatpush3.bf16.msra.mxu0 %v4125_v39 }
 0xbb0   :  { %v4131_v59 = vpack.c.bf16 %v4485_v58, %v4484_v54  ;;  %v4636_v54 = vld [vmem:[%s5987_s10 + $0x18] sm:$0xff] }
 0xbb1   :  { %v4488_v5 = vpop.permute.xlu1 %4487  ;;  %v4533_v35 = vpop.permute.xlu0 %4532 }
 0xbb2   :  { %v4490_v49 = vunpack.i.h.bf16 %v4488_v5  ;;  %v4489_v48 = vunpack.i.l.bf16 %v4488_v5  ;;  %v4535_v45 = vunpack.i.h.bf16 %v4533_v35 }
 0xbb3   :  { %4110 = vmatpush3.bf16.xpose.msk.msra.mxu1 %vm5215_vm13, %v4108_v50  ;;  %v2106_v50 = vmul.f32 0.5, %v5670_v60 }
 0xbb4   :  { %4113 = vmatprep.subr.msk.bf16.mxu1 %vm5215_vm13, %v4111_v53  ;;  %v4133_v9 = vpack.c.bf16 %v4490_v49, %v4489_v48 }
 0xbb5   :  { %v4493_v40 = vpop.permute.xlu1 %4492 }
 0xbb6   :  { %v4495_v22 = vunpack.i.h.bf16 %v4493_v40  ;;  %v4494_v23 = vunpack.i.l.bf16 %v4493_v40  ;;  %v4505_v40 = vunpack.i.h.bf16 %v4503_v32  ;;  %v4640_v32 = vld [vmem:[%s5987_s10 + $0x38] sm:$0xff] }
 0xbb8   :  { %v4139_v42 = vpack.c.bf16 %v4495_v22, %v4494_v23 }
 0xbb9   :  { %v4498_v26 = vpop.permute.xlu1 %4497 }
 0xbba   :  { %v4500_v39 = vunpack.i.h.bf16 %v4498_v26  ;;  %v4499_v43 = vunpack.i.l.bf16 %v4498_v26 }
 0xbbb   :  { %4116 = vmatpush3.bf16.xpose.msk.msra.mxu1 %vm5215_vm13, %v4114_v38  ;;  %v4147_v38 = vpack.c.bf16 %v4505_v40, %v4504_v16 }
 0xbbc   :  { %4119 = vmatprep.subr.msk.bf16.mxu1 %vm5215_vm13, %v4117_v28  ;;  %v4141_v52 = vpack.c.bf16 %v4500_v39, %v4499_v43  ;;  %v4633_v28 = vld [vmem:[%s5987_s10] sm:$0xff] }
 0xbbd   :  { %v4508_v27 = vpop.permute.xlu1 %4507 }
 0xbbe   :  { %v4510_v0 = vunpack.i.h.bf16 %v4508_v27  ;;  %v4509_v29 = vunpack.i.l.bf16 %v4508_v27 }
 0xbc0   :  { %v4127_v21 = vpack.c.bf16 %v4510_v0, %v4509_v29 }
 0xbc1   :  { %v4513_v62 = vpop.permute.xlu1 %4512 }
 0xbc2   :  { %v4515_v46 = vunpack.i.h.bf16 %v4513_v62  ;;  %v4514_v44 = vunpack.i.l.bf16 %v4513_v62  ;;  %4128 = vmatprep.subr.bf16.mxu0 %v4127_v21  ;;  %v4635_v21 = vld [vmem:[%s5987_s10 + $0x10] sm:$0xff] }
 0xbc3   :  { %4122 = vmatpush3.bf16.xpose.msk.msra.mxu1 %vm5215_vm13, %v4120_v12 }
 0xbc4   :  { %v4129_v7 = vpack.c.bf16 %v4515_v46, %v4514_v44 }
 0xbc5   :  { %v4518_v61 = vpop.permute.xlu1 %4517 }
 0xbc6   :  { %v4520_v24 = vunpack.i.h.bf16 %v4518_v61  ;;  %v4519_v30 = vunpack.i.l.bf16 %v4518_v61  ;;  %4130 = vmatpush3.bf16.msra.mxu0 %v4129_v7 }
 0xbc7   :  { %4132 = vmatprep.subr.bf16.mxu0 %v4131_v59  ;;  %v4637_v59 = vld [vmem:[%s5987_s10 + $0x20] sm:$0xff] }
 0xbc8   :  { %v4135_v55 = vpack.c.bf16 %v4520_v24, %v4519_v30  ;;  %v4638_v24 = vld [vmem:[%s5987_s10 + $0x28] sm:$0xff] }
 0xbc9   :  { %v4523_v31 = vpop.permute.xlu1 %4522 }
 0xbca   :  { %v4525_v41 = vunpack.i.h.bf16 %v4523_v31  ;;  %v4524_v19 = vunpack.i.l.bf16 %v4523_v31  ;;  %3604 = vmatmul.mubr.msk.f32.vlgmr.msra.gmra.mrb[30].mxu1 %vm551_vm12, %v5644_v1  ;;  %4134 = vmatpush3.bf16.msra.mxu0 %v4133_v9  ;;  %v4534_v1 = vunpack.i.l.bf16 %v4533_v35 }
 0xbcb   :  { %3605 = vmatprep.mubr.msk.f32.mxu1 %vm551_vm12, %v2105_v33  ;;  %4136 = vmatprep.subr.bf16.mxu0 %v4135_v55 }
 0xbcc   :  { %v4137_v56 = vpack.c.bf16 %v4525_v41, %v4524_v19  ;;  %v4145_v60 = vpack.c.bf16 %v4535_v45, %v4534_v1 }
 0xbcd   :  { %v4528_v51 = vpop.permute.xlu1 %4527 }
 0xbce   :  { %v4530_v5 = vunpack.i.h.bf16 %v4528_v51  ;;  %v4529_v53 = vunpack.i.l.bf16 %v4528_v51  ;;  %3606 = vmatmul.mubr.msk.f32.gmra.mrb[32].mxu1 %vm551_vm12, %v2105_v33  ;;  %4138 = vmatpush3.bf16.msra.mxu0 %v4137_v56 }
 0xbcf   :  { %3607 = vmatprep.mubr.msk.f32.mxu1 %vm551_vm12, %v2106_v50  ;;  %4140 = vmatprep.subr.bf16.mxu0 %v4139_v42 }
 0xbd0   :  { %v4143_v15 = vpack.c.bf16 %v4530_v5, %v4529_v53 }
 0xbd2   :  { %3608 = vmatmul.mubr.msk.f32.gmra.mrb[34].mxu1 %vm551_vm12, %v2106_v50  ;;  %4142 = vmatpush3.bf16.msra.mxu0 %v4141_v52 }
 0xbd3   :  { %3609 = vmatprep.mubr.msk.f32.mxu1 %vm551_vm12, %v2107_v20  ;;  %4144 = vmatprep.subr.bf16.mxu0 %v4143_v15 }
 0xbd6   :  { %3610 = vmatmul.mubr.msk.f32.gmra.mrb[36].mxu1 %vm551_vm12, %v2107_v20  ;;  %4146 = vmatpush3.bf16.msra.mxu0 %v4145_v60 }
 0xbd7   :  { %4148 = vmatprep.subr.bf16.mxu0 %v4147_v38 }
 0xc9d   :  { %v2378_v26 = vpop.f32.mrb[30].mxu1 }
 0xc9e   :  { %v2379_v34 = vadd.f32 %v4633_v28, %v2378_v26  ;;  %v2380_v36 = vpop.f32.mrb[31].mxu1 }
 0xc9f   :  { %v2381_v27 = vadd.f32 %v4634_v14, %v2380_v36  ;;  %v6068_v36 = vld [vmem:[#allocation9_spill] sm:$0xff]  ;;  %v6071_v14 = vld [vmem:[#allocation12_spill] sm:$0xff] }
 0xca1   :  { %v2401_v0 = vmax.f32 %v2379_v34, %v2381_v27  ;;  %v2384_v29 = vpop.f32.mrb[32].mxu1 }
 0xca2   :  { %v2385_v12 = vadd.f32 %v4635_v21, %v2384_v29  ;;  %v2386_v58 = vpop.f32.mrb[33].mxu1 }
 0xca3   :  { %v2387_v62 = vadd.f32 %v4636_v54, %v2386_v58  ;;  %2402 = vmax.xlane.f32.xlu0 %v2401_v0 }
 0xca5   :  { %v2404_v46 = vmax.f32 %v2385_v12, %v2387_v62  ;;  %v2390_v44 = vpop.f32.mrb[34].mxu1 }
 0xca6   :  { %v2392_v49 = vpop.f32.mrb[35].mxu1  ;;  %v5802_v61 = vadd.f32 %v4637_v59, %v2390_v44  ;;  %v3338_v59 = vld [vmem:[%s5989_s15 + $0x30] sm:$0xff] }
 0xca7   :  { %2405 = vmax.xlane.f32.xlu1 %v2404_v46  ;;  %v5807_v30 = vadd.f32 %v4638_v24, %v2392_v49  ;;  %v3339_v24 = vld [vmem:[%s5989_s15 + $0x38] sm:$0xff] }
 0xca9   :  { %v2396_v48 = vpop.f32.mrb[36].mxu1 }
 0xcaa   :  { %v2398_v7 = vpop.f32.mrb[37].mxu1 }
 0xcab   :  { %v5819_v9 = vadd.f32 %v4640_v32, %v2398_v7  ;;  %v3337_v7 = vld [vmem:[%s5989_s15 + $0x28] sm:$0xff] }
 0xcb8   :  { %4542 = vrot.lane.b32.xlu1 %v5706_v57, %s4646_s2  ;;  %v2407_v57 = vmax.f32 %v5802_v61, %v5807_v30 }
 0xcb9   :  { %4537 = vrot.lane.b32.xlu0 %v5666_v37, %s4646_s2  ;;  %v4639_v37 = vld [vmem:[%s5987_s10 + $0x30] sm:$0xff] }
 0xcbc   :  { %4547 = vrot.lane.b32.xlu1 %v5708_v25, %s4646_s2  ;;  %v5814_v25 = vadd.f32 %v4639_v37, %v2396_v48  ;;  %v3336_v48 = vld [vmem:[%s5989_s15 + $0x20] sm:$0xff] }
 0xcbe   :  { %v2410_v55 = vmax.f32 %v5814_v25, %v5819_v9 }
 0xcd8   :  { %2408 = vmax.xlane.f32.xlu0 %v2407_v57 }
 0xce0   :  { %2411 = vmax.xlane.f32.xlu1 %v2410_v55 }
 0xd30   :  { %v2403_v22 = vpop.xlane.xlu0 %2402 }
 0xd31   :  { %v2413_v23 = vsub.f32 %v2379_v34, %v2403_v22  ;;  %v2414_v31 = vsub.f32 %v2381_v27, %v2403_v22  ;;  %v6067_v34 = vld [vmem:[#allocation8_spill] sm:$0xff] }
 0xd33   :  { %v2423_v33 = vmul.f32 1.442695, %v2414_v31  ;;  %v2421_v39 = vmul.f32 1.442695, %v2413_v23 }
 0xd34   :  { %v2406_v41 = vpop.xlane.xlu1 %2405  ;;  %v4538_v19 = vpop.permute.xlu0 %4537 }
 0xd35   :  { %v2415_v43 = vsub.f32 %v2385_v12, %v2406_v41  ;;  %v2416_v56 = vsub.f32 %v2387_v62, %v2406_v41  ;;  %v4540_v35 = vunpack.i.h.bf16 %v4538_v19  ;;  %4599 = vpow2.f32 %v2423_v33 }
 0xd36   :  { %v4539_v42 = vunpack.i.l.bf16 %v4538_v19  ;;  %4601 = vpow2.f32 %v2421_v39 }
 0xd37   :  { %v2427_v51 = vmul.f32 1.442695, %v2416_v56  ;;  %v2425_v53 = vmul.f32 1.442695, %v2415_v43 }
 0xd38   :  { %v4149_v50 = vpack.c.bf16 %v4540_v35, %v4539_v42  ;;  %v4543_v5 = vpop.permute.xlu1 %4542 }
 0xd39   :  { %v4545_v45 = vunpack.i.h.bf16 %v4543_v5  ;;  %v4544_v1 = vunpack.i.l.bf16 %v4543_v5  ;;  %4603 = vpow2.f32 %v2427_v51 }
 0xd3a   :  { %4150 = vmatpush3.bf16.msra.mxu0 %v4149_v50  ;;  %4605 = vpow2.f32 %v2425_v53 }
 0xd3b   :  { %v4151_v52 = vpack.c.bf16 %v4545_v45, %v4544_v1 }
 0xd3c   :  { %v4548_v15 = vpop.permute.xlu1 %4547 }
 0xd3d   :  { %v4550_v40 = vunpack.i.h.bf16 %v4548_v15  ;;  %v4549_v16 = vunpack.i.l.bf16 %v4548_v15  ;;  %4152 = vmatprep.subr.bf16.mxu0 %v4151_v52 }
 0xd3f   :  { %v4153_v20 = vpack.c.bf16 %v4550_v40, %v4549_v16  ;;  %v4600_v60 = vpop.eup %4599 }
 0xd40   :  { %2597 = vmatprep.mubr.f32.mxu0 %v4600_v60  ;;  %v4602_v38 = vpop.eup %4601 }
 0xd41   :  { %4154 = vmatpush3.bf16.msra.mxu0 %v4153_v20 }
 0xd42   :  { %4156 = vmatprep.subr.bf16.mxu0 %v5306_v8  ;;  %v6066_v8 = vld [vmem:[#allocation7_spill] sm:$0xff] }
 0xd43   :  { %v4604_v26 = vpop.eup %4603 }
 0xd44   :  { %2598 = vmatmul.mubr.f32.vlgmr.msra.gmra.mrb[20].mxu0 %v4602_v38  ;;  %v4606_v28 = vpop.eup %4605 }
 0xd45   :  { %2602 = vmatprep.mubr.f32.mxu0 %v4604_v26  ;;  %4158 = vmatpush3.bf16.msra.mxu0 %v5323_v6  ;;  %v6069_v6 = vld [vmem:[#allocation10_spill] sm:$0xff] }
 0xd46   :  { %4160 = vmatprep.subr.bf16.mxu0 %v5328_v10  ;;  %v6070_v10 = vld [vmem:[#allocation11_spill] sm:$0xff] }
 0xd48   :  { %2603 = vmatmul.mubr.f32.gmra.mrb[22].mxu0 %v4606_v28 }
 0xd49   :  { %4162 = vmatpush3.bf16.msra.mxu0 %v5347_v2  ;;  %v6072_v2 = vld [vmem:[#allocation13_spill] sm:$0xff] }
 0xd4a   :  { %4164 = vmatprep.subr.bf16.mxu0 %v5350_v13  ;;  %v6073_v13 = vld [vmem:[#allocation14_spill] sm:$0xff] }
 0xd4d   :  { %4166 = vmatpush3.bf16.msra.mxu0 %v5368_v11 }
 0xd4e   :  { %4168 = vmatprep.subr.bf16.mxu0 %v5371_v17 }
 0xd51   :  { %4170 = vmatpush3.bf16.msra.mxu0 %v5386_v4 }
 0xd52   :  { %4172 = vmatprep.subr.bf16.mxu0 %v6066_v8 }
 0xd55   :  { %4174 = vmatpush3.bf16.msra.mxu0 %v6067_v34 }
 0xd56   :  { %4176 = vmatprep.subr.bf16.mxu0 %v6068_v36 }
 0xd59   :  { %4178 = vmatpush3.bf16.msra.mxu0 %v6069_v6 }
 0xd5a   :  { %4180 = vmatprep.subr.bf16.mxu0 %v6070_v10 }
 0xd5d   :  { %4182 = vmatpush3.bf16.msra.mxu0 %v6071_v14  ;;  %v3345_v14 = vld [vmem:[%s5990_s16 + $0x1] ss:$0 sm:$0xff] }
 0xd5e   :  { %4184 = vmatprep.subr.bf16.mxu0 %v6072_v2 }
 0xd61   :  { %4186 = vmatpush3.bf16.msra.mxu0 %v6073_v13 }
 0xd65   :  { %v2409_v11 = vpop.xlane.xlu0 %2408 }
 0xd66   :  { %v2417_v17 = vsub.f32 %v5802_v61, %v2409_v11  ;;  %v2418_v4 = vsub.f32 %v5807_v30, %v2409_v11  ;;  %v4187_v61 = vpack.c.bf16 %v3337_v7, %v3336_v48  ;;  %v4191_v30 = vpack.c.bf16 %v3339_v24, %v3338_v59  ;;  %v3351_v24 = vld [vmem:[%s5991_s19 + $0x28] sm:$0xff] }
 0xd68   :  { %v2429_v27 = vmul.f32 1.442695, %v2417_v17  ;;  %v2431_v0 = vmul.f32 1.442695, %v2418_v4  ;;  %4188 = vmatprep.subr.bf16.mxu1 %v4187_v61 }
 0xd69   :  { %4190 = vmatpush3.bf16.msra.mxu1 %v4187_v61  ;;  %v3350_v61 = vld [vmem:[%s5991_s19 + $0x20] sm:$0xff] }
 0xd6a   :  { %4607 = vpow2.f32 %v2429_v27  ;;  %4192 = vmatprep.subr.bf16.mxu1 %v4191_v30 }
 0xd6b   :  { %4609 = vpow2.f32 %v2431_v0 }
 0xd6d   :  { %v2412_v29 = vpop.xlane.xlu1 %2411  ;;  %4194 = vmatpush3.bf16.msra.mxu1 %v4191_v30  ;;  %v3352_v30 = vld [vmem:[%s5991_s19 + $0x30] sm:$0xff] }
 0xd6e   :  { %v2419_v21 = vsub.f32 %v5814_v25, %v2412_v29  ;;  %v2420_v12 = vsub.f32 %v5819_v9, %v2412_v29 }
 0xd70   :  { %v2433_v58 = vmul.f32 1.442695, %v2419_v21  ;;  %v2435_v54 = vmul.f32 1.442695, %v2420_v12 }
 0xd72   :  { %4611 = vpow2.f32 %v2433_v58 }
 0xd73   :  { %4613 = vpow2.f32 %v2435_v54 }
 0xd74   :  { %v4608_v62 = vpop.eup %4607 }
 0xd75   :  { %v4610_v46 = vpop.eup %4609 }
 0xd76   :  { %2607 = vmatprep.mubr.f32.mxu0 %v4610_v46 }
 0xd77   :  { %2608 = vmatmul.mubr.f32.gmra.mrb[24].mxu0 %v4608_v62 }
 0xd7c   :  { %v4612_v44 = vpop.eup %4611 }
 0xd7d   :  { %v4614_v49 = vpop.eup %4613 }
 0xd7e   :  { %2612 = vmatprep.mubr.f32.mxu0 %v4614_v49 }
 0xd7f   :  { %2613 = vmatmul.mubr.f32.gmra.mrb[26].mxu0 %v4612_v44 }
 0xd80   :  { %2682 = vmatprep.mubr.f32.mxu0 %v4600_v60 }
 0xd83   :  { %2683 = vmatmul.mubr.f32.vlgmr.msra.gmra.mrb[28].mxu0 %v4602_v38 }
 0xd84   :  { %2687 = vmatprep.mubr.f32.mxu0 %v4604_v26 }
 0xd87   :  { %2688 = vmatmul.mubr.f32.gmra.mrb[30].mxu0 %v4606_v28 }
 0xd88   :  { %2692 = vmatprep.mubr.f32.mxu0 %v4610_v46 }
 0xd8b   :  { %2693 = vmatmul.mubr.f32.gmra.mrb[32].mxu0 %v4608_v62 }
 0xd8c   :  { %2697 = vmatprep.mubr.f32.mxu0 %v4614_v49 }
 0xd8f   :  { %2698 = vmatmul.mubr.f32.gmra.mrb[34].mxu0 %v4612_v44 }
 0xe17   :  { %v3643_v57 = vpop.f32.mrb[20].mxu0 }
 0xe18   :  { %v3644_v37 = vpop.f32.mrb[21].mxu0 }
 0xe19   :  { %v3645_v25 = vadd.f32 %v3644_v37, %v3643_v57  ;;  %v4195_v57 = vpack.c.bf16 %v3351_v24, %v3350_v61  ;;  %v3353_v37 = vld [vmem:[%s5991_s19 + $0x38] sm:$0xff] }
 0xe1b   :  { %v3646_v32 = vpop.f32.mrb[22].mxu0  ;;  %4196 = vmatprep.subr.bf16.mxu0 %v4195_v57 }
 0xe1c   :  { %v3647_v9 = vpop.f32.mrb[23].mxu0  ;;  %4198 = vmatpush3.bf16.msra.mxu0 %v4195_v57 }
 0xe1d   :  { %v3648_v55 = vadd.f32 %v3647_v9, %v3646_v32  ;;  %v3360_v32 = vld [vmem:[%s5992_s21 + $0x40] sm:$0xff]  ;;  %v3361_v9 = vld [vmem:[%s5992_s21 + $0x48] sm:$0xff] }
 0xe4a   :  { %v3649_v22 = vpop.f32.mrb[24].mxu0 }
 0xe4b   :  { %v3650_v23 = vpop.f32.mrb[25].mxu0 }
 0xe4c   :  { %v3651_v31 = vadd.f32 %v3650_v23, %v3649_v22  ;;  %v4203_v22 = vpack.c.bf16 %v3361_v9, %v3360_v32  ;;  %v3363_v23 = vld [vmem:[%s5992_s21 + $0x58] sm:$0xff] }
 0xe4e   :  { %4204 = vmatprep.subr.bf16.mxu1 %v4203_v22 }
 0xe52   :  { %v3652_v33 = vpop.f32.mrb[26].mxu0 }
 0xe53   :  { %v3653_v41 = vpop.f32.mrb[27].mxu0 }
 0xe54   :  { %v3654_v19 = vadd.f32 %v3653_v41, %v3652_v33  ;;  %v3364_v33 = vld [vmem:[%s5992_s21 + $0x60] sm:$0xff]  ;;  %v3365_v41 = vld [vmem:[%s5992_s21 + $0x68] sm:$0xff] }
 0xe56   :  { %v3687_v39 = vpop.f32.mrb[28].mxu0 }
 0xe57   :  { %v3688_v43 = vpop.f32.mrb[29].mxu0 }
 0xe58   :  { %v3689_v56 = vadd.f32 %v3688_v43, %v3687_v39 }
 0xe5a   :  { %v2703_v35 = vmax.f32 %v3689_v56, 1e-20  ;;  %v3690_v42 = vpop.f32.mrb[30].mxu0 }
 0xe5b   :  { %v3691_v51 = vpop.f32.mrb[31].mxu0 }
 0xe5c   :  { %4615 = vrcp.f32 %v2703_v35  ;;  %v3692_v50 = vadd.f32 %v3691_v51, %v3690_v42 }
 0xe5e   :  { %v2704_v5 = vmax.f32 %v3692_v50, 1e-20  ;;  %v3693_v53 = vpop.f32.mrb[32].mxu0 }
 0xe5f   :  { %v3694_v45 = vpop.f32.mrb[33].mxu0 }
 0xe60   :  { %4617 = vrcp.f32 %v2704_v5  ;;  %v3695_v1 = vadd.f32 %v3694_v45, %v3693_v53 }
 0xe62   :  { %v2705_v52 = vmax.f32 %v3695_v1, 1e-20  ;;  %v3696_v15 = vpop.f32.mrb[34].mxu0 }
 0xe63   :  { %v3697_v40 = vpop.f32.mrb[35].mxu0 }
 0xe64   :  { %4619 = vrcp.f32 %v2705_v52  ;;  %v3698_v16 = vadd.f32 %v3697_v40, %v3696_v15 }
 0xe66   :  { %v4616_v20 = vpop.eup %4615  ;;  %v2706_v60 = vmax.f32 %v3698_v16, 1e-20 }
 0xe67   :  { %v2711_v38 = vmul.f32 %v4616_v20, %v3645_v25  ;;  %v4199_v25 = vpack.c.bf16 %v3353_v37, %v3352_v30  ;;  %v3366_v37 = vld [vmem:[%s5992_s21 + $0x70] sm:$0xff] }
 0xe68   :  { %4621 = vrcp.f32 %v2706_v60 }
 0xe69   :  { %3851 = vmatprep.mubr.msk.f32.mxu1 %vm551_vm12, %v2711_v38  ;;  %4200 = vmatprep.subr.bf16.mxu0 %v4199_v25 }
 0xe6a   :  { %v4618_v26 = vpop.eup %4617  ;;  %4202 = vmatpush3.bf16.msra.mxu0 %v4199_v25  ;;  %v3367_v25 = vld [vmem:[%s5992_s21 + $0x78] sm:$0xff] }
 0xe6b   :  { %v2712_v28 = vmul.f32 %v4618_v26, %v3648_v55  ;;  %v3362_v55 = vld [vmem:[%s5992_s21 + $0x50] sm:$0xff]  ;;  %v4215_v32 = vpack.c.bf16 %v3367_v25, %v3366_v37 }
 0xe6d   :  { %3852 = vmatmul.mubr.msk.f32.vlgmr.msra.gmra.mrb[38].mxu1 %vm551_vm12, %v2712_v28 }
 0xe6e   :  { %v4620_v8 = vpop.eup %4619  ;;  %4206 = vmatpush3.bf16.msra.mxu1 %v4203_v22 }
 0xe6f   :  { %v2713_v34 = vmul.f32 %v4620_v8, %v3651_v31  ;;  %v4207_v31 = vpack.c.bf16 %v3363_v23, %v3362_v55 }
 0xe71   :  { %3854 = vmatprep.mubr.msk.f32.mxu1 %vm551_vm12, %v2713_v34  ;;  %4208 = vmatprep.subr.bf16.mxu1 %v4207_v31 }
 0xe72   :  { %v4622_v36 = vpop.eup %4621  ;;  %4210 = vmatpush3.bf16.msra.mxu1 %v4207_v31 }
 0xe73   :  { %v2714_v6 = vmul.f32 %v4622_v36, %v3654_v19  ;;  %v4211_v19 = vpack.c.bf16 %v3365_v41, %v3364_v33 }
 0xe75   :  { %3855 = vmatmul.mubr.msk.f32.gmra.mrb[40].mxu1 %vm551_vm12, %v2714_v6  ;;  %4212 = vmatprep.subr.bf16.mxu1 %v4211_v19 }
 0xe76   :  { %4214 = vmatpush3.bf16.msra.mxu1 %v4211_v19 }
 0xe77   :  { %4216 = vmatprep.subr.bf16.mxu1 %v4215_v32 }
 0xe7a   :  { %4218 = vmatpush3.bf16.msra.mxu1 %v4215_v32 }
 0xf40   :  { %v3853_v10 = vpop.f32.mrb[38].mxu1 }
 0xf41   :  { %v2818_v2 = vadd.f32 %v3853_v10, %v5575_v63  ;;  %v2798_v13 = vpop.f32.mrb[39].mxu1 }
 0xf42   :  { %v2817_v11 = vadd.f32 %v2798_v13, %v5577_v18 }
 0xf43   :  { %v5864_v17 = vadd.f32 %v3345_v14, %v2818_v2 }
 0xf44   :  { %v5866_v4 = vadd.f32 %v3345_v14, %v2817_v11 }
 0xf45   :  { %v2840_v27 = vsel %vm551_vm12, %v5864_v17, 0.0  ;;  %v2850_v12 = vmul.f32 %v5864_v17, %v5864_v17 }
 0xf46   :  { %2841 = vadd.xlane.f32.xlu0 %v2840_v27  ;;  %v2837_v21 = vsel %vm551_vm12, %v5866_v4, 0.0  ;;  %v2849_v58 = vmul.f32 %v5866_v4, %v5866_v4 }
 0xf47   :  { %v2856_v18 = vsel %vm551_vm12, %v2850_v12, 0.0 }
 0xf48   :  { %v3856_v0 = vpop.f32.mrb[40].mxu1  ;;  %v2853_v46 = vsel %vm551_vm12, %v2849_v58, 0.0 }
 0xf49   :  { %v2808_v29 = vpop.f32.mrb[41].mxu1  ;;  %v2820_v63 = vadd.f32 %v3856_v0, %v5591_v3 }
 0xf4a   :  { %2838 = vadd.xlane.f32.xlu0 %v2837_v21  ;;  %v2819_v62 = vadd.f32 %v2808_v29, %v5593_v47 }
 0xf4b   :  { %v5878_v54 = vadd.f32 %v3345_v14, %v2820_v63  ;;  %v3349_v63 = vld [vmem:[%s5994_s18 + $0x1] ss:$0 sm:$0xff] }
 0xf4c   :  { %v5882_v44 = vadd.f32 %v3345_v14, %v2819_v62  ;;  %v3348_v14 = vld [vmem:[%s5993_s17 + $0x1] ss:$0 sm:$0xff] }
 0xf4d   :  { %v2846_v49 = vsel %vm551_vm12, %v5878_v54, 0.0  ;;  %v2852_v47 = vmul.f32 %v5878_v54, %v5878_v54 }
 0xf4e   :  { %2857 = vadd.xlane.f32.xlu0 %v2856_v18  ;;  %v2843_v3 = vsel %vm551_vm12, %v5882_v44, 0.0  ;;  %v2851_v48 = vmul.f32 %v5882_v44, %v5882_v44 }
 0xf4f   :  { %v2862_v59 = vsel %vm551_vm12, %v2852_v47, 0.0 }
 0xf50   :  { %v2859_v7 = vsel %vm551_vm12, %v2851_v48, 0.0 }
 0xf52   :  { %2854 = vadd.xlane.f32.xlu0 %v2853_v46 }
 0xf56   :  { %2847 = vadd.xlane.f32.xlu0 %v2846_v49 }
 0xf5a   :  { %2844 = vadd.xlane.f32.xlu0 %v2843_v3 }
 0xf5e   :  { %2860 = vadd.xlane.f32.xlu0 %v2859_v7 }
 0xf62   :  { %2863 = vadd.xlane.f32.xlu0 %v2862_v59 }
 0xfd3   :  { %v2842_v39 = vpop.xlane.xlu0 %2841 }
 0xfd4   :  { %v2866_v56 = vmul.f32 0.03125, %v2842_v39 }
 0xfd6   :  { %v2874_v42 = vmul.f32 %v2866_v56, %v2866_v56  ;;  %v2882_v28 = vsub.f32 %v5864_v17, %v2866_v56 }
 0xfd7   :  { %v2839_v43 = vpop.xlane.xlu0 %2838 }
 0xfd8   :  { %v2865_v51 = vmul.f32 0.03125, %v2839_v43 }
 0xfda   :  { %v2873_v45 = vmul.f32 %v2865_v51, %v2865_v51  ;;  %v2881_v2 = vsub.f32 %v5866_v4, %v2865_v51 }
 0xfdb   :  { %v2858_v35 = vpop.xlane.xlu0 %2857 }
 0xfdc   :  { %v2870_v50 = vmul.f32 0.03125, %v2858_v35 }
 0xfde   :  { %v2878_v5 = vsub.f32 %v2870_v50, %v2874_v42 }
 0xfdf   :  { %v2855_v53 = vpop.xlane.xlu0 %2854 }
 0xfe0   :  { %v2886_v1 = vadd.f32 1e-05, %v2878_v5  ;;  %v2869_v52 = vmul.f32 0.03125, %v2855_v53 }
 0xfe2   :  { %4623 = vrsqrt.f32 %v2886_v1  ;;  %v2877_v15 = vsub.f32 %v2869_v52, %v2873_v45  ;;  %v3373_v1 = vld [vmem:[%s5996_s22 + $0x1] ss:$0 sm:$0xff] }
 0xfe3   :  { %v2848_v40 = vpop.xlane.xlu0 %2847 }
 0xfe4   :  { %v2885_v16 = vadd.f32 1e-05, %v2877_v15  ;;  %v2868_v8 = vmul.f32 0.03125, %v2848_v40 }
 0xfe6   :  { %4625 = vrsqrt.f32 %v2885_v16  ;;  %v2876_v27 = vmul.f32 %v2868_v8, %v2868_v8  ;;  %v2884_v7 = vsub.f32 %v5878_v54, %v2868_v8  ;;  %v3355_v54 = vld [vmem:[%s5995_s20 + $0x1] ss:$0 sm:$0xff] }
 0xfe7   :  { %v2845_v20 = vpop.xlane.xlu0 %2844 }
 0xfe8   :  { %v2867_v60 = vmul.f32 0.03125, %v2845_v20 }
 0xfea   :  { %v2875_v34 = vmul.f32 %v2867_v60, %v2867_v60  ;;  %v2883_v49 = vsub.f32 %v5882_v44, %v2867_v60 }
 0xfeb   :  { %v2861_v38 = vpop.xlane.xlu0 %2860 }
 0xfec   :  { %v4624_v26 = vpop.eup %4623  ;;  %v2871_v36 = vmul.f32 0.03125, %v2861_v38 }
 0xfed   :  { %v2894_v6 = vmul.f32 %v4624_v26, %v2882_v28 }
 0xfee   :  { %v2879_v10 = vsub.f32 %v2871_v36, %v2875_v34 }
 0xfef   :  { %v2864_v13 = vpop.xlane.xlu0 %2863  ;;  %v2904_v12 = vmul.f32 %v3348_v14, %v2894_v6 }
 0xff0   :  { %v4626_v11 = vpop.eup %4625  ;;  %v2887_v0 = vadd.f32 1e-05, %v2879_v10  ;;  %v2872_v29 = vmul.f32 0.03125, %v2864_v13 }
 0xff1   :  { %v2893_v21 = vmul.f32 %v4626_v11, %v2881_v2  ;;  %v2914_v46 = vadd.f32 %v3349_v63, %v2904_v12  ;;  %v3374_v2 = vld [vmem:[%s5998_s23] ss:$0 sm:$0xff] }
 0xff2   :  { %4627 = vrsqrt.f32 %v2887_v0  ;;  %v2880_v17 = vsub.f32 %v2872_v29, %v2876_v27  ;;  %v3375_v11 = vld [vmem:[%s5999_s24] ss:$0 sm:$0xff] }
 0xff3   :  { %v2903_v18 = vmul.f32 %v3348_v14, %v2893_v21  ;;  %v3376_v29 = vld [vmem:[%s6000_s25] ss:$0 sm:$0xff] }
 0xff4   :  { %v2888_v58 = vadd.f32 1e-05, %v2880_v17 }
 0xff5   :  { %v2913_v62 = vadd.f32 %v3349_v63, %v2903_v18 }
 0xff6   :  { %4629 = vrsqrt.f32 %v2888_v58 }
 0xff7   :  { %3865 = vmatprep.mubr.msk.f32.mxu0 %vm551_vm12, %v2913_v62 }
 0xff8   :  { %3866 = vmatmul.mubr.msk.f32.vlgmr.msra.gmra.mrb[36].mxu0 %vm551_vm12, %v2914_v46 }
 0xffc   :  { %v4628_v3 = vpop.eup %4627 }
 0xffd   :  { %v2895_v48 = vmul.f32 %v4628_v3, %v2883_v49 }
 0xfff   :  { %v2905_v47 = vmul.f32 %v3348_v14, %v2895_v48 }
0x1000   :  { %v4630_v59 = vpop.eup %4629 }
0x1001   :  { %v2915_v61 = vadd.f32 %v3349_v63, %v2905_v47  ;;  %v2896_v24 = vmul.f32 %v4630_v59, %v2884_v7 }
0x1003   :  { %3868 = vmatprep.mubr.msk.f32.mxu0 %vm551_vm12, %v2915_v61  ;;  %v2906_v30 = vmul.f32 %v3348_v14, %v2896_v24 }
0x1005   :  { %v2916_v57 = vadd.f32 %v3349_v63, %v2906_v30 }
0x1007   :  { %3869 = vmatmul.mubr.msk.f32.gmra.mrb[38].mxu0 %vm551_vm12, %v2916_v57 }
0x10cb   :  { %v3867_v9 = vpop.f32.mrb[36].mxu0 }
0x10cc   :  { %v3014_v55 = vadd.f32 %v3867_v9, %v3355_v54  ;;  %v3008_v22 = vpop.f32.mrb[37].mxu0 }
0x10cd   :  { %v3009_v23 = vadd.f32 %v3355_v54, %v3008_v22 }
0x10ce   :  { %v3028_v33 = vmax.f32 %v3014_v55, 0.0 }
0x10cf   :  { %v3027_v31 = vmax.f32 %v3009_v23, 0.0 }
0x10d1   :  { %3887 = vmatprep.mubr.msk.f32.mxu1 %vm1797_vm14, %v3027_v31 }
0x10d2   :  { %3888 = vmatmul.mubr.msk.f32.vlgmr.msra.gmra.mrb[42].mxu1 %vm1797_vm14, %v3028_v33 }
0x10da   :  { %v3870_v41 = vpop.f32.mrb[38].mxu0 }
0x10db   :  { %v3024_v19 = vadd.f32 %v3870_v41, %v3355_v54  ;;  %v3018_v39 = vpop.f32.mrb[39].mxu0 }
0x10dc   :  { %v3019_v43 = vadd.f32 %v3355_v54, %v3018_v39 }
0x10dd   :  { %v3030_v35 = vmax.f32 %v3024_v19, 0.0 }
0x10de   :  { %v3029_v56 = vmax.f32 %v3019_v43, 0.0 }
0x10e0   :  { %3890 = vmatprep.mubr.msk.f32.mxu1 %vm1797_vm14, %v3029_v56 }
0x10e1   :  { %3891 = vmatmul.mubr.msk.f32.gmra.mrb[44].mxu1 %vm1797_vm14, %v3030_v35 }
0x11a5   :  { %v3889_v42 = vpop.f32.mrb[42].mxu1 }
0x11a6   :  { %v3118_v51 = vpop.f32.mrb[43].mxu1 }
0x11a7   :  { %v3135_v53 = vadd.f32 %v3118_v51, %v5866_v4  ;;  %v32_v4 = vstv %s5997_s26 }
0x11a8   :  { %33 = vst [vmem:[#allocation2] sm:$0x1] %v32_v4 }
0x11a9   :  { %v3145_v15 = vadd.f32 %v3373_v1, %v3135_v53 }
0x11af   :  { %v3377_v63 = vld [vmem:[#allocation2] ss:$0 sm:$0xff] }
0x11b4   :  { %v3892_v50 = vpop.f32.mrb[44].mxu1 }
0x11b5   :  { %v3127_v5 = vpop.f32.mrb[45].mxu1 }
0x11b6   :  { %v3136_v45 = vadd.f32 %v3127_v5, %v5882_v44 }
0x11b8   :  { %v3146_v52 = vadd.f32 %v3373_v1, %v3136_v45 }
0x11ba   :  { %v3148_v40 = vrot.slane %v3146_v52, 7 }
0x11bc   :  { %v3151_v16 = vsel %vm3150_vm15, %v3145_v15, %v3148_v40 }
0x11bd   :  { %v3155_v20 = vsel %vm3154_vm0, %v3151_v16, 0.0  ;;  %v3158_v60 = vmul.f32 %v3151_v16, %v3151_v16 }
0x11be   :  { %3156 = vadd.xlane.f32.xlu0 %v3155_v20 }
0x11bf   :  { %v3159_v38 = vsel %vm3154_vm0, %v3158_v60, 0.0 }
0x11c0   :  { %3160 = vadd.xlane.f32.xlu1 %v3159_v38 }
0x124b   :  { %v3157_v44 = vpop.xlane.xlu0 %3156 }
0x124c   :  { %v3162_v26 = vmul.f32 0.03125, %v3157_v44 }
0x124d   :  { %v3161_v28 = vpop.xlane.xlu1 %3160 }
0x124e   :  { %v3164_v8 = vmul.f32 %v3162_v26, %v3162_v26  ;;  %v3163_v34 = vmul.f32 0.03125, %v3161_v28  ;;  %v3166_v10 = vsub.f32 %v3151_v16, %v3162_v26 }
0x1250   :  { %v3165_v36 = vsub.f32 %v3163_v34, %v3164_v8 }
0x1252   :  { %v3167_v6 = vadd.f32 1e-05, %v3165_v36 }
0x1254   :  { %4631 = vrsqrt.f32 %v3167_v6 }
0x125e   :  { %v4632_v14 = vpop.eup %4631 }
0x125f   :  { %v3169_v13 = vmul.f32 %v4632_v14, %v3166_v10 }
0x1261   :  { %v3176_v27 = vmul.f32 %v3374_v2, %v3169_v13 }
0x1263   :  { %v3183_v0 = vadd.f32 %v3375_v11, %v3176_v27 }
0x1265   :  { %v3184_v21 = vmax.f32 %v3183_v0, 0.0 }
0x1267   :  { %v3192_v12 = vmul.f32 %v3376_v29, %v3184_v21 }
0x1269   :  { %v3193_v17 = vsel %vm3154_vm0, %v3192_v12, 0.0 }
0x126a   :  { %3194 = vadd.xlane.f32.xlu0 %v3193_v17 }
0x12f7   :  { %v3195_v18 = vpop.xlane.xlu0 %3194 }
0x12f8   :  { %v3203_v58 = vadd.f32 %v3377_v63, %v3195_v18 }
0x12fa   :  { %3205 = vst.msk [vmem:[%s6001_s27] sm:$0x3] %vm3204_vm1, %v3203_v58 }

</bundles_post_ra>
